<compile_context>
chip_gen: v5e
topology: v5e:2x2
jax: 0.10.0
libtpu: 0.0.40
codegen_flags: <defaults>
</compile_context>

<pallas_src>
import functools

import jax
import jax.numpy as jnp
import numpy as np
from jax.experimental import pallas as pl
from jax.experimental.pallas import tpu as pltpu


# --------------------------- fractal structure (static) ---------------------------

def build_fractal_structure(n_cols):
    """Returns (max_depth, count[i], list of (col, depth) positions holding an MHA)."""
    max_depth = 2 ** (n_cols - 1)
    count = [0] * max_depth
    positions = []
    dist = max_depth
    for c in range(n_cols):
        for i in range(max_depth):
            if (i + 1) % dist == 0:
                positions.append((c, i))
                count[i] += 1
        dist //= 2
    return max_depth, count, positions


# ------------------------------- fused Pallas kernel -------------------------------

def fractal_kernel(x_ref, wq_ref, wk_ref, wv_ref, wp_ref, bp_ref, o_ref, *,
                   n_head, n_cols, schedule):
    """Whole FractalBlock forward for one batch element.

    x_ref            : (1, T, C)
    wq/wk/wv_ref     : (N_mod, n_head, C, D)   pre-transposed per-head projections
    wp_ref           : (N_mod, n_head, D, C)   per-head slab of proj.weight.T
    bp_ref           : (N_mod, 1, C)           proj bias
    o_ref            : (1, T, C)
    """
    x = x_ref[0].astype(jnp.float32)                 # (T, C)
    T, C = x.shape
    scale = 1.0 / float(C) ** 0.5                    # matches PyTorch: C ** (-0.5), C = n_embed

    # Causal mask built once, shared by every attention instance in the schedule.
    row = jax.lax.broadcasted_iota(jnp.int32, (T, T), 0)
    col = jax.lax.broadcasted_iota(jnp.int32, (T, T), 1)
    keep = row >= col
    neg_big = jnp.float32(-1e30)                     # finite mask value (no inf arithmetic)

    def mha(xin, m):
        """MultiHeadAttention module #m on a (T, C) input.  Heads accumulate directly
        into the output projection: no lane slicing, no concat, no weight transposes."""
        acc = jnp.zeros((T, C), jnp.float32)
        for h in range(n_head):                      # small static loop, unrolled at trace time
            qh = jnp.dot(xin, wq_ref[m, h], preferred_element_type=jnp.float32)   # (T, D)
            kh = jnp.dot(xin, wk_ref[m, h], preferred_element_type=jnp.float32)   # (T, D)
            vh = jnp.dot(xin, wv_ref[m, h], preferred_element_type=jnp.float32)   # (T, D)
            # q @ k.T without materializing a transpose (contract the D dims).
            wei = jax.lax.dot_general(qh, kh, (((1,), (1,)), ((), ())),
                                      preferred_element_type=jnp.float32) * scale  # (T, T)
            wei = jnp.where(keep, wei, neg_big)
            wei = wei - jnp.max(wei, axis=-1, keepdims=True)
            e = jnp.exp(wei)
            p = e * pl.reciprocal(jnp.sum(e, axis=-1, keepdims=True), approx=True)
            hv = jnp.dot(p, vh, preferred_element_type=jnp.float32)               # (T, D)
            acc = acc + jnp.dot(hv, wp_ref[m, h], preferred_element_type=jnp.float32)
        return acc + bp_ref[m]                       # bias (1, C) broadcasts over T

    # Fractal routing schedule (static, generated by the wrapper).  Dropout p=0.0 -> identity.
    out = [x] * n_cols
    for level in schedule:                           # level: tuple of (column, module_index)
        ys = [mha(out[c], m) for (c, m) in level]
        mean = ys[0]
        for y in ys[1:]:
            mean = mean + y
        mean = mean * (1.0 / len(ys))
        for c, _ in level:
            out[c] = mean

    # TODO(synk): output last dim is C=32 (<128 lanes); a lane-dense (B, T*C) slab would
    # avoid masked stores but needs an in-kernel sublane->lane reshuffle; not worth it at
    # this size.
    o_ref[0] = out[n_cols - 1].astype(o_ref.dtype)


# --------------------------------- host wrapper -----------------------------------

def pack_fractal_weights(params, positions, n_head):
    """Stack per-module weights, pre-transposed and split per head (wrapper plumbing)."""
    C = params[positions[0]]["wq"].shape[0]
    D = C // n_head
    wqt, wkt, wvt, wpt, bps = [], [], [], [], []
    for pos in positions:
        p = params[pos]
        wqt.append(jnp.stack([p["wq"][h * D:(h + 1) * D, :].T for h in range(n_head)]))  # (H, C, D)
        wkt.append(jnp.stack([p["wk"][h * D:(h + 1) * D, :].T for h in range(n_head)]))
        wvt.append(jnp.stack([p["wv"][h * D:(h + 1) * D, :].T for h in range(n_head)]))
        wpt.append(jnp.stack([p["wp"][:, h * D:(h + 1) * D].T for h in range(n_head)]))  # (H, D, C)
        bps.append(p["bp"].reshape(1, C))
    return (jnp.stack(wqt), jnp.stack(wkt), jnp.stack(wvt), jnp.stack(wpt), jnp.stack(bps))


def fractal_block_forward(x, params, n_cols, n_head):
    """Exact port of FractalBlock.forward, fused into a single pallas_call."""
    B, T, C = x.shape
    D = C // n_head
    max_depth, count, positions = build_fractal_structure(n_cols)
    pos_idx = {p: i for i, p in enumerate(positions)}
    schedule = tuple(
        tuple((c, pos_idx[(c, i)]) for c in range(n_cols - count[i], n_cols))
        for i in range(max_depth)
    )
    WQT, WKT, WVT, WPT, BP = pack_fractal_weights(params, positions, n_head)
    N = len(positions)

    kernel = functools.partial(fractal_kernel, n_head=n_head, n_cols=n_cols,
                               schedule=schedule)
    return pl.pallas_call(
        kernel,
        out_shape=jax.ShapeDtypeStruct((B, T, C), x.dtype),
        grid=(B,),
        in_specs=[
            pl.BlockSpec((1, T, C), lambda b: (b, 0, 0)),
            pl.BlockSpec((N, n_head, C, D), lambda b: (0, 0, 0, 0)),
            pl.BlockSpec((N, n_head, C, D), lambda b: (0, 0, 0, 0)),
            pl.BlockSpec((N, n_head, C, D), lambda b: (0, 0, 0, 0)),
            pl.BlockSpec((N, n_head, D, C), lambda b: (0, 0, 0, 0)),
            pl.BlockSpec((N, 1, C), lambda b: (0, 0, 0)),
        ],
        out_specs=pl.BlockSpec((1, T, C), lambda b: (b, 0, 0)),
        compiler_params=pltpu.CompilerParams(dimension_semantics=("parallel",)),
    )(x, WQT, WKT, WVT, WPT, BP)


# --------------------------------- parameter init ----------------------------------

def init_mha_params(key, n_embed):
    kq, kk, kv, kp, kb = jax.random.split(key, 5)
    s = 1.0 / np.sqrt(n_embed)
    return {
        "wq": jax.random.normal(kq, (n_embed, n_embed), jnp.float32) * s,
        "wk": jax.random.normal(kk, (n_embed, n_embed), jnp.float32) * s,
        "wv": jax.random.normal(kv, (n_embed, n_embed), jnp.float32) * s,
        "wp": jax.random.normal(kp, (n_embed, n_embed), jnp.float32) * s,
        "bp": jax.random.normal(kb, (n_embed,), jnp.float32) * s,
    }


def init_fractal_params(key, n_embed, n_cols):
    _, _, positions = build_fractal_structure(n_cols)
    keys = jax.random.split(key, len(positions))
    return {pos: init_mha_params(k, n_embed) for pos, k in zip(positions, keys)}


# ------------------------------- pure-JAX reference --------------------------------

def mha_ref(x, p, n_head):
    B, T, C = x.shape
    D = C // n_head
    q = (x @ p["wq"].T).reshape(B, T, n_head, D).transpose(0, 2, 1, 3)
    k = (x @ p["wk"].T).reshape(B, T, n_head, D).transpose(0, 2, 1, 3)
    v = (x @ p["wv"].T).reshape(B, T, n_head, D).transpose(0, 2, 1, 3)
    wei = jnp.einsum("bhtd,bhsd->bhts", q, k) * (C ** -0.5)
    mask = jnp.tril(jnp.ones((T, T), bool))
    wei = jnp.where(mask, wei, -jnp.inf)
    wei = jax.nn.softmax(wei, axis=-1)
    o = jnp.einsum("bhts,bhsd->bhtd", wei, v).transpose(0, 2, 1, 3).reshape(B, T, C)
    return o @ p["wp"].T + p["bp"]


def fractal_block_ref(x, params, n_cols, n_head):
    max_depth, count, _ = build_fractal_structure(n_cols)
    out = [x for _ in range(n_cols)]
    for i in range(max_depth):
        st = n_cols - count[i]
        cur = [mha_ref(out[c], params[(c, i)], n_head) for c in range(st, n_cols)]
        n_out = jnp.mean(jnp.stack(cur), axis=0)
        for c in range(st, n_cols):
            out[c] = n_out
    return out[-1]


# ------------------------------------- main -----------------------------------------

if __name__ == "__main__":
    # Small config consistent with the module: n_embed=32, n_head=4, n_cols=3.
    B, T = 2, 8                     # T <= block_size (32)
    n_embed, n_head, n_cols = 32, 4, 3

    key = jax.random.PRNGKey(0)
    kx, kp = jax.random.split(key)
    x = jax.random.normal(kx, (B, T, n_embed), jnp.float32)
    params = init_fractal_params(kp, n_embed, n_cols)

    y = jax.block_until_ready(fractal_block_forward(x, params, n_cols, n_head))
    y_ref = jax.block_until_ready(fractal_block_ref(x, params, n_cols, n_head))

    # Slightly relaxed tolerance: pl.reciprocal(approx=True) in the softmax compounds over
    # the 4 fractal depth levels; structural errors would be orders of magnitude larger.
    np.testing.assert_allclose(np.asarray(y), np.asarray(y_ref), rtol=2e-2, atol=2e-2)

    print("KERNEL_OK")
</pallas_src>

<mosaic_0001>
module attributes {stable_mosaic.version = 11 : i64} {
  func.func @fractal_kernel(%arg0: i32, %arg1: memref<1x8x32xf32, #tpu.memory_space<vmem>>, %arg2: memref<7x4x32x8xf32, #tpu.memory_space<vmem>>, %arg3: memref<7x4x32x8xf32, #tpu.memory_space<vmem>>, %arg4: memref<7x4x32x8xf32, #tpu.memory_space<vmem>>, %arg5: memref<7x4x8x32xf32, #tpu.memory_space<vmem>>, %arg6: memref<7x1x32xf32, #tpu.memory_space<vmem>>, %arg7: memref<1x8x32xf32, #tpu.memory_space<vmem>>) attributes {dimension_semantics = [#tpu.dimension_semantics<parallel>], iteration_bounds = array<i64: 2>, scalar_prefetch = 0 : i64, scratch_operands = 0 : i64, tpu.core_type = #tpu.core_type<tc>, window_params = [{transform_indices = @transform_0, window_bounds = array<i64: 1, 8, 32>}, {pipeline_mode = #tpu.pipeline_mode<synchronous>, transform_indices = @transform_1, window_bounds = array<i64: 7, 4, 32, 8>}, {pipeline_mode = #tpu.pipeline_mode<synchronous>, transform_indices = @transform_2, window_bounds = array<i64: 7, 4, 32, 8>}, {pipeline_mode = #tpu.pipeline_mode<synchronous>, transform_indices = @transform_3, window_bounds = array<i64: 7, 4, 32, 8>}, {pipeline_mode = #tpu.pipeline_mode<synchronous>, transform_indices = @transform_4, window_bounds = array<i64: 7, 4, 8, 32>}, {pipeline_mode = #tpu.pipeline_mode<synchronous>, transform_indices = @transform_5, window_bounds = array<i64: 7, 1, 32>}, {transform_indices = @transform_6, window_bounds = array<i64: 1, 8, 32>}]} {
    %c0 = arith.constant 0 : index
    %c0_0 = arith.constant 0 : index
    %c0_1 = arith.constant 0 : index
    %0 = vector.load %arg1[%c0, %c0_0, %c0_1] : memref<1x8x32xf32, #tpu.memory_space<vmem>>, vector<1x8x32xf32>
    %1 = vector.shape_cast %0 : vector<1x8x32xf32> to vector<8x32xf32>
    %2 = tpu.iota {dimensions = array<i32: 0>} : vector<8x8xi32>
    %3 = tpu.iota {dimensions = array<i32: 1>} : vector<8x8xi32>
    %4 = arith.cmpi sge, %2, %3 : vector<8x8xi32>
    %cst = arith.constant 0.000000e+00 : f32
    %5 = vector.broadcast %cst : f32 to vector<8x32xf32>
    %c3 = arith.constant 3 : index
    %c0_2 = arith.constant 0 : index
    %c0_3 = arith.constant 0 : index
    %c0_4 = arith.constant 0 : index
    %6 = vector.load %arg2[%c3, %c0_2, %c0_3, %c0_4] : memref<7x4x32x8xf32, #tpu.memory_space<vmem>>, vector<1x1x32x8xf32>
    %7 = vector.shape_cast %6 : vector<1x1x32x8xf32> to vector<32x8xf32>
    %cst_5 = arith.constant dense<0.000000e+00> : vector<8x8xf32>
    %8 = tpu.matmul %1, %7, %cst_5 {dimension_numbers = #tpu.dot_dimension_numbers<[1], [0], [0], [1], [0, 0, 1, 1], [], []>} : vector<8x32xf32>, vector<32x8xf32>, vector<8x8xf32> -> vector<8x8xf32>
    %c3_6 = arith.constant 3 : index
    %c0_7 = arith.constant 0 : index
    %c0_8 = arith.constant 0 : index
    %c0_9 = arith.constant 0 : index
    %9 = vector.load %arg3[%c3_6, %c0_7, %c0_8, %c0_9] : memref<7x4x32x8xf32, #tpu.memory_space<vmem>>, vector<1x1x32x8xf32>
    %10 = vector.shape_cast %9 : vector<1x1x32x8xf32> to vector<32x8xf32>
    %cst_10 = arith.constant dense<0.000000e+00> : vector<8x8xf32>
    %11 = tpu.matmul %1, %10, %cst_10 {dimension_numbers = #tpu.dot_dimension_numbers<[1], [0], [0], [1], [0, 0, 1, 1], [], []>} : vector<8x32xf32>, vector<32x8xf32>, vector<8x8xf32> -> vector<8x8xf32>
    %c3_11 = arith.constant 3 : index
    %c0_12 = arith.constant 0 : index
    %c0_13 = arith.constant 0 : index
    %c0_14 = arith.constant 0 : index
    %12 = vector.load %arg4[%c3_11, %c0_12, %c0_13, %c0_14] : memref<7x4x32x8xf32, #tpu.memory_space<vmem>>, vector<1x1x32x8xf32>
    %13 = vector.shape_cast %12 : vector<1x1x32x8xf32> to vector<32x8xf32>
    %cst_15 = arith.constant dense<0.000000e+00> : vector<8x8xf32>
    %14 = tpu.matmul %1, %13, %cst_15 {dimension_numbers = #tpu.dot_dimension_numbers<[1], [0], [0], [1], [0, 0, 1, 1], [], []>} : vector<8x32xf32>, vector<32x8xf32>, vector<8x8xf32> -> vector<8x8xf32>
    %cst_16 = arith.constant dense<0.000000e+00> : vector<8x8xf32>
    %15 = tpu.matmul %8, %11, %cst_16 {dimension_numbers = #tpu.dot_dimension_numbers<[1], [1], [0], [0], [0, 0, 1, 0], [], []>} : vector<8x8xf32>, vector<8x8xf32>, vector<8x8xf32> -> vector<8x8xf32>
    %cst_17 = arith.constant 0.176776692 : f32
    %16 = vector.broadcast %cst_17 : f32 to vector<8x8xf32>
    %17 = arith.mulf %15, %16 : vector<8x8xf32>
    %cst_18 = arith.constant -1.000000e+30 : f32
    %18 = vector.broadcast %cst_18 : f32 to vector<8x8xf32>
    %19 = arith.select %4, %17, %18 : vector<8x8xi1>, vector<8x8xf32>
    %cst_19 = arith.constant dense<0xFF800000> : vector<8xf32>
    %20 = vector.multi_reduction <maximumf>, %19, %cst_19 [1] : vector<8x8xf32> to vector<8xf32>
    %21 = vector.shape_cast %20 : vector<8xf32> to vector<8x1xf32>
    %22 = vector.broadcast %21 : vector<8x1xf32> to vector<8x8xf32>
    %23 = arith.subf %19, %22 : vector<8x8xf32>
    %24 = math.exp %23 : vector<8x8xf32>
    %cst_20 = arith.constant dense<0.000000e+00> : vector<8xf32>
    %25 = vector.multi_reduction <add>, %24, %cst_20 [1] : vector<8x8xf32> to vector<8xf32>
    %26 = vector.shape_cast %25 : vector<8xf32> to vector<8x1xf32>
    %27 = tpu.reciprocal %26 {approx = true} : vector<8x1xf32> -> vector<8x1xf32>
    %28 = vector.broadcast %27 : vector<8x1xf32> to vector<8x8xf32>
    %29 = arith.mulf %24, %28 : vector<8x8xf32>
    %cst_21 = arith.constant dense<0.000000e+00> : vector<8x8xf32>
    %30 = tpu.matmul %29, %14, %cst_21 {dimension_numbers = #tpu.dot_dimension_numbers<[1], [0], [0], [1], [0, 0, 1, 1], [], []>} : vector<8x8xf32>, vector<8x8xf32>, vector<8x8xf32> -> vector<8x8xf32>
    %c3_22 = arith.constant 3 : index
    %c0_23 = arith.constant 0 : index
    %c0_24 = arith.constant 0 : index
    %c0_25 = arith.constant 0 : index
    %31 = vector.load %arg5[%c3_22, %c0_23, %c0_24, %c0_25] : memref<7x4x8x32xf32, #tpu.memory_space<vmem>>, vector<1x1x8x32xf32>
    %32 = vector.shape_cast %31 : vector<1x1x8x32xf32> to vector<8x32xf32>
    %cst_26 = arith.constant dense<0.000000e+00> : vector<8x32xf32>
    %33 = tpu.matmul %30, %32, %cst_26 {dimension_numbers = #tpu.dot_dimension_numbers<[1], [0], [0], [1], [0, 0, 1, 1], [], []>} : vector<8x8xf32>, vector<8x32xf32>, vector<8x32xf32> -> vector<8x32xf32>
    %34 = arith.addf %5, %33 : vector<8x32xf32>
    %c3_27 = arith.constant 3 : index
    %c1 = arith.constant 1 : index
    %c0_28 = arith.constant 0 : index
    %c0_29 = arith.constant 0 : index
    %35 = vector.load %arg2[%c3_27, %c1, %c0_28, %c0_29] : memref<7x4x32x8xf32, #tpu.memory_space<vmem>>, vector<1x1x32x8xf32>
    %36 = vector.shape_cast %35 : vector<1x1x32x8xf32> to vector<32x8xf32>
    %cst_30 = arith.constant dense<0.000000e+00> : vector<8x8xf32>
    %37 = tpu.matmul %1, %36, %cst_30 {dimension_numbers = #tpu.dot_dimension_numbers<[1], [0], [0], [1], [0, 0, 1, 1], [], []>} : vector<8x32xf32>, vector<32x8xf32>, vector<8x8xf32> -> vector<8x8xf32>
    %c3_31 = arith.constant 3 : index
    %c1_32 = arith.constant 1 : index
    %c0_33 = arith.constant 0 : index
    %c0_34 = arith.constant 0 : index
    %38 = vector.load %arg3[%c3_31, %c1_32, %c0_33, %c0_34] : memref<7x4x32x8xf32, #tpu.memory_space<vmem>>, vector<1x1x32x8xf32>
    %39 = vector.shape_cast %38 : vector<1x1x32x8xf32> to vector<32x8xf32>
    %cst_35 = arith.constant dense<0.000000e+00> : vector<8x8xf32>
    %40 = tpu.matmul %1, %39, %cst_35 {dimension_numbers = #tpu.dot_dimension_numbers<[1], [0], [0], [1], [0, 0, 1, 1], [], []>} : vector<8x32xf32>, vector<32x8xf32>, vector<8x8xf32> -> vector<8x8xf32>
    %c3_36 = arith.constant 3 : index
    %c1_37 = arith.constant 1 : index
    %c0_38 = arith.constant 0 : index
    %c0_39 = arith.constant 0 : index
    %41 = vector.load %arg4[%c3_36, %c1_37, %c0_38, %c0_39] : memref<7x4x32x8xf32, #tpu.memory_space<vmem>>, vector<1x1x32x8xf32>
    %42 = vector.shape_cast %41 : vector<1x1x32x8xf32> to vector<32x8xf32>
    %cst_40 = arith.constant dense<0.000000e+00> : vector<8x8xf32>
    %43 = tpu.matmul %1, %42, %cst_40 {dimension_numbers = #tpu.dot_dimension_numbers<[1], [0], [0], [1], [0, 0, 1, 1], [], []>} : vector<8x32xf32>, vector<32x8xf32>, vector<8x8xf32> -> vector<8x8xf32>
    %cst_41 = arith.constant dense<0.000000e+00> : vector<8x8xf32>
    %44 = tpu.matmul %37, %40, %cst_41 {dimension_numbers = #tpu.dot_dimension_numbers<[1], [1], [0], [0], [0, 0, 1, 0], [], []>} : vector<8x8xf32>, vector<8x8xf32>, vector<8x8xf32> -> vector<8x8xf32>
    %cst_42 = arith.constant 0.176776692 : f32
    %45 = vector.broadcast %cst_42 : f32 to vector<8x8xf32>
    %46 = arith.mulf %44, %45 : vector<8x8xf32>
    %cst_43 = arith.constant -1.000000e+30 : f32
    %47 = vector.broadcast %cst_43 : f32 to vector<8x8xf32>
    %48 = arith.select %4, %46, %47 : vector<8x8xi1>, vector<8x8xf32>
    %cst_44 = arith.constant dense<0xFF800000> : vector<8xf32>
    %49 = vector.multi_reduction <maximumf>, %48, %cst_44 [1] : vector<8x8xf32> to vector<8xf32>
    %50 = vector.shape_cast %49 : vector<8xf32> to vector<8x1xf32>
    %51 = vector.broadcast %50 : vector<8x1xf32> to vector<8x8xf32>
    %52 = arith.subf %48, %51 : vector<8x8xf32>
    %53 = math.exp %52 : vector<8x8xf32>
    %cst_45 = arith.constant dense<0.000000e+00> : vector<8xf32>
    %54 = vector.multi_reduction <add>, %53, %cst_45 [1] : vector<8x8xf32> to vector<8xf32>
    %55 = vector.shape_cast %54 : vector<8xf32> to vector<8x1xf32>
    %56 = tpu.reciprocal %55 {approx = true} : vector<8x1xf32> -> vector<8x1xf32>
    %57 = vector.broadcast %56 : vector<8x1xf32> to vector<8x8xf32>
    %58 = arith.mulf %53, %57 : vector<8x8xf32>
    %cst_46 = arith.constant dense<0.000000e+00> : vector<8x8xf32>
    %59 = tpu.matmul %58, %43, %cst_46 {dimension_numbers = #tpu.dot_dimension_numbers<[1], [0], [0], [1], [0, 0, 1, 1], [], []>} : vector<8x8xf32>, vector<8x8xf32>, vector<8x8xf32> -> vector<8x8xf32>
    %c3_47 = arith.constant 3 : index
    %c1_48 = arith.constant 1 : index
    %c0_49 = arith.constant 0 : index
    %c0_50 = arith.constant 0 : index
    %60 = vector.load %arg5[%c3_47, %c1_48, %c0_49, %c0_50] : memref<7x4x8x32xf32, #tpu.memory_space<vmem>>, vector<1x1x8x32xf32>
    %61 = vector.shape_cast %60 : vector<1x1x8x32xf32> to vector<8x32xf32>
    %cst_51 = arith.constant dense<0.000000e+00> : vector<8x32xf32>
    %62 = tpu.matmul %59, %61, %cst_51 {dimension_numbers = #tpu.dot_dimension_numbers<[1], [0], [0], [1], [0, 0, 1, 1], [], []>} : vector<8x8xf32>, vector<8x32xf32>, vector<8x32xf32> -> vector<8x32xf32>
    %63 = arith.addf %34, %62 : vector<8x32xf32>
    %c3_52 = arith.constant 3 : index
    %c2 = arith.constant 2 : index
    %c0_53 = arith.constant 0 : index
    %c0_54 = arith.constant 0 : index
    %64 = vector.load %arg2[%c3_52, %c2, %c0_53, %c0_54] : memref<7x4x32x8xf32, #tpu.memory_space<vmem>>, vector<1x1x32x8xf32>
    %65 = vector.shape_cast %64 : vector<1x1x32x8xf32> to vector<32x8xf32>
    %cst_55 = arith.constant dense<0.000000e+00> : vector<8x8xf32>
    %66 = tpu.matmul %1, %65, %cst_55 {dimension_numbers = #tpu.dot_dimension_numbers<[1], [0], [0], [1], [0, 0, 1, 1], [], []>} : vector<8x32xf32>, vector<32x8xf32>, vector<8x8xf32> -> vector<8x8xf32>
    %c3_56 = arith.constant 3 : index
    %c2_57 = arith.constant 2 : index
    %c0_58 = arith.constant 0 : index
    %c0_59 = arith.constant 0 : index
    %67 = vector.load %arg3[%c3_56, %c2_57, %c0_58, %c0_59] : memref<7x4x32x8xf32, #tpu.memory_space<vmem>>, vector<1x1x32x8xf32>
    %68 = vector.shape_cast %67 : vector<1x1x32x8xf32> to vector<32x8xf32>
    %cst_60 = arith.constant dense<0.000000e+00> : vector<8x8xf32>
    %69 = tpu.matmul %1, %68, %cst_60 {dimension_numbers = #tpu.dot_dimension_numbers<[1], [0], [0], [1], [0, 0, 1, 1], [], []>} : vector<8x32xf32>, vector<32x8xf32>, vector<8x8xf32> -> vector<8x8xf32>
    %c3_61 = arith.constant 3 : index
    %c2_62 = arith.constant 2 : index
    %c0_63 = arith.constant 0 : index
    %c0_64 = arith.constant 0 : index
    %70 = vector.load %arg4[%c3_61, %c2_62, %c0_63, %c0_64] : memref<7x4x32x8xf32, #tpu.memory_space<vmem>>, vector<1x1x32x8xf32>
    %71 = vector.shape_cast %70 : vector<1x1x32x8xf32> to vector<32x8xf32>
    %cst_65 = arith.constant dense<0.000000e+00> : vector<8x8xf32>
    %72 = tpu.matmul %1, %71, %cst_65 {dimension_numbers = #tpu.dot_dimension_numbers<[1], [0], [0], [1], [0, 0, 1, 1], [], []>} : vector<8x32xf32>, vector<32x8xf32>, vector<8x8xf32> -> vector<8x8xf32>
    %cst_66 = arith.constant dense<0.000000e+00> : vector<8x8xf32>
    %73 = tpu.matmul %66, %69, %cst_66 {dimension_numbers = #tpu.dot_dimension_numbers<[1], [1], [0], [0], [0, 0, 1, 0], [], []>} : vector<8x8xf32>, vector<8x8xf32>, vector<8x8xf32> -> vector<8x8xf32>
    %cst_67 = arith.constant 0.176776692 : f32
    %74 = vector.broadcast %cst_67 : f32 to vector<8x8xf32>
    %75 = arith.mulf %73, %74 : vector<8x8xf32>
    %cst_68 = arith.constant -1.000000e+30 : f32
    %76 = vector.broadcast %cst_68 : f32 to vector<8x8xf32>
    %77 = arith.select %4, %75, %76 : vector<8x8xi1>, vector<8x8xf32>
    %cst_69 = arith.constant dense<0xFF800000> : vector<8xf32>
    %78 = vector.multi_reduction <maximumf>, %77, %cst_69 [1] : vector<8x8xf32> to vector<8xf32>
    %79 = vector.shape_cast %78 : vector<8xf32> to vector<8x1xf32>
    %80 = vector.broadcast %79 : vector<8x1xf32> to vector<8x8xf32>
    %81 = arith.subf %77, %80 : vector<8x8xf32>
    %82 = math.exp %81 : vector<8x8xf32>
    %cst_70 = arith.constant dense<0.000000e+00> : vector<8xf32>
    %83 = vector.multi_reduction <add>, %82, %cst_70 [1] : vector<8x8xf32> to vector<8xf32>
    %84 = vector.shape_cast %83 : vector<8xf32> to vector<8x1xf32>
    %85 = tpu.reciprocal %84 {approx = true} : vector<8x1xf32> -> vector<8x1xf32>
    %86 = vector.broadcast %85 : vector<8x1xf32> to vector<8x8xf32>
    %87 = arith.mulf %82, %86 : vector<8x8xf32>
    %cst_71 = arith.constant dense<0.000000e+00> : vector<8x8xf32>
    %88 = tpu.matmul %87, %72, %cst_71 {dimension_numbers = #tpu.dot_dimension_numbers<[1], [0], [0], [1], [0, 0, 1, 1], [], []>} : vector<8x8xf32>, vector<8x8xf32>, vector<8x8xf32> -> vector<8x8xf32>
    %c3_72 = arith.constant 3 : index
    %c2_73 = arith.constant 2 : index
    %c0_74 = arith.constant 0 : index
    %c0_75 = arith.constant 0 : index
    %89 = vector.load %arg5[%c3_72, %c2_73, %c0_74, %c0_75] : memref<7x4x8x32xf32, #tpu.memory_space<vmem>>, vector<1x1x8x32xf32>
    %90 = vector.shape_cast %89 : vector<1x1x8x32xf32> to vector<8x32xf32>
    %cst_76 = arith.constant dense<0.000000e+00> : vector<8x32xf32>
    %91 = tpu.matmul %88, %90, %cst_76 {dimension_numbers = #tpu.dot_dimension_numbers<[1], [0], [0], [1], [0, 0, 1, 1], [], []>} : vector<8x8xf32>, vector<8x32xf32>, vector<8x32xf32> -> vector<8x32xf32>
    %92 = arith.addf %63, %91 : vector<8x32xf32>
    %c3_77 = arith.constant 3 : index
    %c3_78 = arith.constant 3 : index
    %c0_79 = arith.constant 0 : index
    %c0_80 = arith.constant 0 : index
    %93 = vector.load %arg2[%c3_77, %c3_78, %c0_79, %c0_80] : memref<7x4x32x8xf32, #tpu.memory_space<vmem>>, vector<1x1x32x8xf32>
    %94 = vector.shape_cast %93 : vector<1x1x32x8xf32> to vector<32x8xf32>
    %cst_81 = arith.constant dense<0.000000e+00> : vector<8x8xf32>
    %95 = tpu.matmul %1, %94, %cst_81 {dimension_numbers = #tpu.dot_dimension_numbers<[1], [0], [0], [1], [0, 0, 1, 1], [], []>} : vector<8x32xf32>, vector<32x8xf32>, vector<8x8xf32> -> vector<8x8xf32>
    %c3_82 = arith.constant 3 : index
    %c3_83 = arith.constant 3 : index
    %c0_84 = arith.constant 0 : index
    %c0_85 = arith.constant 0 : index
    %96 = vector.load %arg3[%c3_82, %c3_83, %c0_84, %c0_85] : memref<7x4x32x8xf32, #tpu.memory_space<vmem>>, vector<1x1x32x8xf32>
    %97 = vector.shape_cast %96 : vector<1x1x32x8xf32> to vector<32x8xf32>
    %cst_86 = arith.constant dense<0.000000e+00> : vector<8x8xf32>
    %98 = tpu.matmul %1, %97, %cst_86 {dimension_numbers = #tpu.dot_dimension_numbers<[1], [0], [0], [1], [0, 0, 1, 1], [], []>} : vector<8x32xf32>, vector<32x8xf32>, vector<8x8xf32> -> vector<8x8xf32>
    %c3_87 = arith.constant 3 : index
    %c3_88 = arith.constant 3 : index
    %c0_89 = arith.constant 0 : index
    %c0_90 = arith.constant 0 : index
    %99 = vector.load %arg4[%c3_87, %c3_88, %c0_89, %c0_90] : memref<7x4x32x8xf32, #tpu.memory_space<vmem>>, vector<1x1x32x8xf32>
    %100 = vector.shape_cast %99 : vector<1x1x32x8xf32> to vector<32x8xf32>
    %cst_91 = arith.constant dense<0.000000e+00> : vector<8x8xf32>
    %101 = tpu.matmul %1, %100, %cst_91 {dimension_numbers = #tpu.dot_dimension_numbers<[1], [0], [0], [1], [0, 0, 1, 1], [], []>} : vector<8x32xf32>, vector<32x8xf32>, vector<8x8xf32> -> vector<8x8xf32>
    %cst_92 = arith.constant dense<0.000000e+00> : vector<8x8xf32>
    %102 = tpu.matmul %95, %98, %cst_92 {dimension_numbers = #tpu.dot_dimension_numbers<[1], [1], [0], [0], [0, 0, 1, 0], [], []>} : vector<8x8xf32>, vector<8x8xf32>, vector<8x8xf32> -> vector<8x8xf32>
    %cst_93 = arith.constant 0.176776692 : f32
    %103 = vector.broadcast %cst_93 : f32 to vector<8x8xf32>
    %104 = arith.mulf %102, %103 : vector<8x8xf32>
    %cst_94 = arith.constant -1.000000e+30 : f32
    %105 = vector.broadcast %cst_94 : f32 to vector<8x8xf32>
    %106 = arith.select %4, %104, %105 : vector<8x8xi1>, vector<8x8xf32>
    %cst_95 = arith.constant dense<0xFF800000> : vector<8xf32>
    %107 = vector.multi_reduction <maximumf>, %106, %cst_95 [1] : vector<8x8xf32> to vector<8xf32>
    %108 = vector.shape_cast %107 : vector<8xf32> to vector<8x1xf32>
    %109 = vector.broadcast %108 : vector<8x1xf32> to vector<8x8xf32>
    %110 = arith.subf %106, %109 : vector<8x8xf32>
    %111 = math.exp %110 : vector<8x8xf32>
    %cst_96 = arith.constant dense<0.000000e+00> : vector<8xf32>
    %112 = vector.multi_reduction <add>, %111, %cst_96 [1] : vector<8x8xf32> to vector<8xf32>
    %113 = vector.shape_cast %112 : vector<8xf32> to vector<8x1xf32>
    %114 = tpu.reciprocal %113 {approx = true} : vector<8x1xf32> -> vector<8x1xf32>
    %115 = vector.broadcast %114 : vector<8x1xf32> to vector<8x8xf32>
    %116 = arith.mulf %111, %115 : vector<8x8xf32>
    %cst_97 = arith.constant dense<0.000000e+00> : vector<8x8xf32>
    %117 = tpu.matmul %116, %101, %cst_97 {dimension_numbers = #tpu.dot_dimension_numbers<[1], [0], [0], [1], [0, 0, 1, 1], [], []>} : vector<8x8xf32>, vector<8x8xf32>, vector<8x8xf32> -> vector<8x8xf32>
    %c3_98 = arith.constant 3 : index
    %c3_99 = arith.constant 3 : index
    %c0_100 = arith.constant 0 : index
    %c0_101 = arith.constant 0 : index
    %118 = vector.load %arg5[%c3_98, %c3_99, %c0_100, %c0_101] : memref<7x4x8x32xf32, #tpu.memory_space<vmem>>, vector<1x1x8x32xf32>
    %119 = vector.shape_cast %118 : vector<1x1x8x32xf32> to vector<8x32xf32>
    %cst_102 = arith.constant dense<0.000000e+00> : vector<8x32xf32>
    %120 = tpu.matmul %117, %119, %cst_102 {dimension_numbers = #tpu.dot_dimension_numbers<[1], [0], [0], [1], [0, 0, 1, 1], [], []>} : vector<8x8xf32>, vector<8x32xf32>, vector<8x32xf32> -> vector<8x32xf32>
    %121 = arith.addf %92, %120 : vector<8x32xf32>
    %c3_103 = arith.constant 3 : index
    %c0_104 = arith.constant 0 : index
    %c0_105 = arith.constant 0 : index
    %122 = vector.load %arg6[%c3_103, %c0_104, %c0_105] : memref<7x1x32xf32, #tpu.memory_space<vmem>>, vector<1x1x32xf32>
    %123 = vector.shape_cast %122 : vector<1x1x32xf32> to vector<1x32xf32>
    %124 = vector.broadcast %123 : vector<1x32xf32> to vector<8x32xf32>
    %125 = arith.addf %121, %124 : vector<8x32xf32>
    %cst_106 = arith.constant 1.000000e+00 : f32
    %126 = vector.broadcast %cst_106 : f32 to vector<8x32xf32>
    %127 = arith.mulf %125, %126 : vector<8x32xf32>
    %cst_107 = arith.constant 0.000000e+00 : f32
    %128 = vector.broadcast %cst_107 : f32 to vector<8x32xf32>
    %c1_108 = arith.constant 1 : index
    %c0_109 = arith.constant 0 : index
    %c0_110 = arith.constant 0 : index
    %c0_111 = arith.constant 0 : index
    %129 = vector.load %arg2[%c1_108, %c0_109, %c0_110, %c0_111] : memref<7x4x32x8xf32, #tpu.memory_space<vmem>>, vector<1x1x32x8xf32>
    %130 = vector.shape_cast %129 : vector<1x1x32x8xf32> to vector<32x8xf32>
    %cst_112 = arith.constant dense<0.000000e+00> : vector<8x8xf32>
    %131 = tpu.matmul %1, %130, %cst_112 {dimension_numbers = #tpu.dot_dimension_numbers<[1], [0], [0], [1], [0, 0, 1, 1], [], []>} : vector<8x32xf32>, vector<32x8xf32>, vector<8x8xf32> -> vector<8x8xf32>
    %c1_113 = arith.constant 1 : index
    %c0_114 = arith.constant 0 : index
    %c0_115 = arith.constant 0 : index
    %c0_116 = arith.constant 0 : index
    %132 = vector.load %arg3[%c1_113, %c0_114, %c0_115, %c0_116] : memref<7x4x32x8xf32, #tpu.memory_space<vmem>>, vector<1x1x32x8xf32>
    %133 = vector.shape_cast %132 : vector<1x1x32x8xf32> to vector<32x8xf32>
    %cst_117 = arith.constant dense<0.000000e+00> : vector<8x8xf32>
    %134 = tpu.matmul %1, %133, %cst_117 {dimension_numbers = #tpu.dot_dimension_numbers<[1], [0], [0], [1], [0, 0, 1, 1], [], []>} : vector<8x32xf32>, vector<32x8xf32>, vector<8x8xf32> -> vector<8x8xf32>
    %c1_118 = arith.constant 1 : index
    %c0_119 = arith.constant 0 : index
    %c0_120 = arith.constant 0 : index
    %c0_121 = arith.constant 0 : index
    %135 = vector.load %arg4[%c1_118, %c0_119, %c0_120, %c0_121] : memref<7x4x32x8xf32, #tpu.memory_space<vmem>>, vector<1x1x32x8xf32>
    %136 = vector.shape_cast %135 : vector<1x1x32x8xf32> to vector<32x8xf32>
    %cst_122 = arith.constant dense<0.000000e+00> : vector<8x8xf32>
    %137 = tpu.matmul %1, %136, %cst_122 {dimension_numbers = #tpu.dot_dimension_numbers<[1], [0], [0], [1], [0, 0, 1, 1], [], []>} : vector<8x32xf32>, vector<32x8xf32>, vector<8x8xf32> -> vector<8x8xf32>
    %cst_123 = arith.constant dense<0.000000e+00> : vector<8x8xf32>
    %138 = tpu.matmul %131, %134, %cst_123 {dimension_numbers = #tpu.dot_dimension_numbers<[1], [1], [0], [0], [0, 0, 1, 0], [], []>} : vector<8x8xf32>, vector<8x8xf32>, vector<8x8xf32> -> vector<8x8xf32>
    %cst_124 = arith.constant 0.176776692 : f32
    %139 = vector.broadcast %cst_124 : f32 to vector<8x8xf32>
    %140 = arith.mulf %138, %139 : vector<8x8xf32>
    %cst_125 = arith.constant -1.000000e+30 : f32
    %141 = vector.broadcast %cst_125 : f32 to vector<8x8xf32>
    %142 = arith.select %4, %140, %141 : vector<8x8xi1>, vector<8x8xf32>
    %cst_126 = arith.constant dense<0xFF800000> : vector<8xf32>
    %143 = vector.multi_reduction <maximumf>, %142, %cst_126 [1] : vector<8x8xf32> to vector<8xf32>
    %144 = vector.shape_cast %143 : vector<8xf32> to vector<8x1xf32>
    %145 = vector.broadcast %144 : vector<8x1xf32> to vector<8x8xf32>
    %146 = arith.subf %142, %145 : vector<8x8xf32>
    %147 = math.exp %146 : vector<8x8xf32>
    %cst_127 = arith.constant dense<0.000000e+00> : vector<8xf32>
    %148 = vector.multi_reduction <add>, %147, %cst_127 [1] : vector<8x8xf32> to vector<8xf32>
    %149 = vector.shape_cast %148 : vector<8xf32> to vector<8x1xf32>
    %150 = tpu.reciprocal %149 {approx = true} : vector<8x1xf32> -> vector<8x1xf32>
    %151 = vector.broadcast %150 : vector<8x1xf32> to vector<8x8xf32>
    %152 = arith.mulf %147, %151 : vector<8x8xf32>
    %cst_128 = arith.constant dense<0.000000e+00> : vector<8x8xf32>
    %153 = tpu.matmul %152, %137, %cst_128 {dimension_numbers = #tpu.dot_dimension_numbers<[1], [0], [0], [1], [0, 0, 1, 1], [], []>} : vector<8x8xf32>, vector<8x8xf32>, vector<8x8xf32> -> vector<8x8xf32>
    %c1_129 = arith.constant 1 : index
    %c0_130 = arith.constant 0 : index
    %c0_131 = arith.constant 0 : index
    %c0_132 = arith.constant 0 : index
    %154 = vector.load %arg5[%c1_129, %c0_130, %c0_131, %c0_132] : memref<7x4x8x32xf32, #tpu.memory_space<vmem>>, vector<1x1x8x32xf32>
    %155 = vector.shape_cast %154 : vector<1x1x8x32xf32> to vector<8x32xf32>
    %cst_133 = arith.constant dense<0.000000e+00> : vector<8x32xf32>
    %156 = tpu.matmul %153, %155, %cst_133 {dimension_numbers = #tpu.dot_dimension_numbers<[1], [0], [0], [1], [0, 0, 1, 1], [], []>} : vector<8x8xf32>, vector<8x32xf32>, vector<8x32xf32> -> vector<8x32xf32>
    %157 = arith.addf %128, %156 : vector<8x32xf32>
    %c1_134 = arith.constant 1 : index
    %c1_135 = arith.constant 1 : index
    %c0_136 = arith.constant 0 : index
    %c0_137 = arith.constant 0 : index
    %158 = vector.load %arg2[%c1_134, %c1_135, %c0_136, %c0_137] : memref<7x4x32x8xf32, #tpu.memory_space<vmem>>, vector<1x1x32x8xf32>
    %159 = vector.shape_cast %158 : vector<1x1x32x8xf32> to vector<32x8xf32>
    %cst_138 = arith.constant dense<0.000000e+00> : vector<8x8xf32>
    %160 = tpu.matmul %1, %159, %cst_138 {dimension_numbers = #tpu.dot_dimension_numbers<[1], [0], [0], [1], [0, 0, 1, 1], [], []>} : vector<8x32xf32>, vector<32x8xf32>, vector<8x8xf32> -> vector<8x8xf32>
    %c1_139 = arith.constant 1 : index
    %c1_140 = arith.constant 1 : index
    %c0_141 = arith.constant 0 : index
    %c0_142 = arith.constant 0 : index
    %161 = vector.load %arg3[%c1_139, %c1_140, %c0_141, %c0_142] : memref<7x4x32x8xf32, #tpu.memory_space<vmem>>, vector<1x1x32x8xf32>
    %162 = vector.shape_cast %161 : vector<1x1x32x8xf32> to vector<32x8xf32>
    %cst_143 = arith.constant dense<0.000000e+00> : vector<8x8xf32>
    %163 = tpu.matmul %1, %162, %cst_143 {dimension_numbers = #tpu.dot_dimension_numbers<[1], [0], [0], [1], [0, 0, 1, 1], [], []>} : vector<8x32xf32>, vector<32x8xf32>, vector<8x8xf32> -> vector<8x8xf32>
    %c1_144 = arith.constant 1 : index
    %c1_145 = arith.constant 1 : index
    %c0_146 = arith.constant 0 : index
    %c0_147 = arith.constant 0 : index
    %164 = vector.load %arg4[%c1_144, %c1_145, %c0_146, %c0_147] : memref<7x4x32x8xf32, #tpu.memory_space<vmem>>, vector<1x1x32x8xf32>
    %165 = vector.shape_cast %164 : vector<1x1x32x8xf32> to vector<32x8xf32>
    %cst_148 = arith.constant dense<0.000000e+00> : vector<8x8xf32>
    %166 = tpu.matmul %1, %165, %cst_148 {dimension_numbers = #tpu.dot_dimension_numbers<[1], [0], [0], [1], [0, 0, 1, 1], [], []>} : vector<8x32xf32>, vector<32x8xf32>, vector<8x8xf32> -> vector<8x8xf32>
    %cst_149 = arith.constant dense<0.000000e+00> : vector<8x8xf32>
    %167 = tpu.matmul %160, %163, %cst_149 {dimension_numbers = #tpu.dot_dimension_numbers<[1], [1], [0], [0], [0, 0, 1, 0], [], []>} : vector<8x8xf32>, vector<8x8xf32>, vector<8x8xf32> -> vector<8x8xf32>
    %cst_150 = arith.constant 0.176776692 : f32
    %168 = vector.broadcast %cst_150 : f32 to vector<8x8xf32>
    %169 = arith.mulf %167, %168 : vector<8x8xf32>
    %cst_151 = arith.constant -1.000000e+30 : f32
    %170 = vector.broadcast %cst_151 : f32 to vector<8x8xf32>
    %171 = arith.select %4, %169, %170 : vector<8x8xi1>, vector<8x8xf32>
    %cst_152 = arith.constant dense<0xFF800000> : vector<8xf32>
    %172 = vector.multi_reduction <maximumf>, %171, %cst_152 [1] : vector<8x8xf32> to vector<8xf32>
    %173 = vector.shape_cast %172 : vector<8xf32> to vector<8x1xf32>
    %174 = vector.broadcast %173 : vector<8x1xf32> to vector<8x8xf32>
    %175 = arith.subf %171, %174 : vector<8x8xf32>
    %176 = math.exp %175 : vector<8x8xf32>
    %cst_153 = arith.constant dense<0.000000e+00> : vector<8xf32>
    %177 = vector.multi_reduction <add>, %176, %cst_153 [1] : vector<8x8xf32> to vector<8xf32>
    %178 = vector.shape_cast %177 : vector<8xf32> to vector<8x1xf32>
    %179 = tpu.reciprocal %178 {approx = true} : vector<8x1xf32> -> vector<8x1xf32>
    %180 = vector.broadcast %179 : vector<8x1xf32> to vector<8x8xf32>
    %181 = arith.mulf %176, %180 : vector<8x8xf32>
    %cst_154 = arith.constant dense<0.000000e+00> : vector<8x8xf32>
    %182 = tpu.matmul %181, %166, %cst_154 {dimension_numbers = #tpu.dot_dimension_numbers<[1], [0], [0], [1], [0, 0, 1, 1], [], []>} : vector<8x8xf32>, vector<8x8xf32>, vector<8x8xf32> -> vector<8x8xf32>
    %c1_155 = arith.constant 1 : index
    %c1_156 = arith.constant 1 : index
    %c0_157 = arith.constant 0 : index
    %c0_158 = arith.constant 0 : index
    %183 = vector.load %arg5[%c1_155, %c1_156, %c0_157, %c0_158] : memref<7x4x8x32xf32, #tpu.memory_space<vmem>>, vector<1x1x8x32xf32>
    %184 = vector.shape_cast %183 : vector<1x1x8x32xf32> to vector<8x32xf32>
    %cst_159 = arith.constant dense<0.000000e+00> : vector<8x32xf32>
    %185 = tpu.matmul %182, %184, %cst_159 {dimension_numbers = #tpu.dot_dimension_numbers<[1], [0], [0], [1], [0, 0, 1, 1], [], []>} : vector<8x8xf32>, vector<8x32xf32>, vector<8x32xf32> -> vector<8x32xf32>
    %186 = arith.addf %157, %185 : vector<8x32xf32>
    %c1_160 = arith.constant 1 : index
    %c2_161 = arith.constant 2 : index
    %c0_162 = arith.constant 0 : index
    %c0_163 = arith.constant 0 : index
    %187 = vector.load %arg2[%c1_160, %c2_161, %c0_162, %c0_163] : memref<7x4x32x8xf32, #tpu.memory_space<vmem>>, vector<1x1x32x8xf32>
    %188 = vector.shape_cast %187 : vector<1x1x32x8xf32> to vector<32x8xf32>
    %cst_164 = arith.constant dense<0.000000e+00> : vector<8x8xf32>
    %189 = tpu.matmul %1, %188, %cst_164 {dimension_numbers = #tpu.dot_dimension_numbers<[1], [0], [0], [1], [0, 0, 1, 1], [], []>} : vector<8x32xf32>, vector<32x8xf32>, vector<8x8xf32> -> vector<8x8xf32>
    %c1_165 = arith.constant 1 : index
    %c2_166 = arith.constant 2 : index
    %c0_167 = arith.constant 0 : index
    %c0_168 = arith.constant 0 : index
    %190 = vector.load %arg3[%c1_165, %c2_166, %c0_167, %c0_168] : memref<7x4x32x8xf32, #tpu.memory_space<vmem>>, vector<1x1x32x8xf32>
    %191 = vector.shape_cast %190 : vector<1x1x32x8xf32> to vector<32x8xf32>
    %cst_169 = arith.constant dense<0.000000e+00> : vector<8x8xf32>
    %192 = tpu.matmul %1, %191, %cst_169 {dimension_numbers = #tpu.dot_dimension_numbers<[1], [0], [0], [1], [0, 0, 1, 1], [], []>} : vector<8x32xf32>, vector<32x8xf32>, vector<8x8xf32> -> vector<8x8xf32>
    %c1_170 = arith.constant 1 : index
    %c2_171 = arith.constant 2 : index
    %c0_172 = arith.constant 0 : index
    %c0_173 = arith.constant 0 : index
    %193 = vector.load %arg4[%c1_170, %c2_171, %c0_172, %c0_173] : memref<7x4x32x8xf32, #tpu.memory_space<vmem>>, vector<1x1x32x8xf32>
    %194 = vector.shape_cast %193 : vector<1x1x32x8xf32> to vector<32x8xf32>
    %cst_174 = arith.constant dense<0.000000e+00> : vector<8x8xf32>
    %195 = tpu.matmul %1, %194, %cst_174 {dimension_numbers = #tpu.dot_dimension_numbers<[1], [0], [0], [1], [0, 0, 1, 1], [], []>} : vector<8x32xf32>, vector<32x8xf32>, vector<8x8xf32> -> vector<8x8xf32>
    %cst_175 = arith.constant dense<0.000000e+00> : vector<8x8xf32>
    %196 = tpu.matmul %189, %192, %cst_175 {dimension_numbers = #tpu.dot_dimension_numbers<[1], [1], [0], [0], [0, 0, 1, 0], [], []>} : vector<8x8xf32>, vector<8x8xf32>, vector<8x8xf32> -> vector<8x8xf32>
    %cst_176 = arith.constant 0.176776692 : f32
    %197 = vector.broadcast %cst_176 : f32 to vector<8x8xf32>
    %198 = arith.mulf %196, %197 : vector<8x8xf32>
    %cst_177 = arith.constant -1.000000e+30 : f32
    %199 = vector.broadcast %cst_177 : f32 to vector<8x8xf32>
    %200 = arith.select %4, %198, %199 : vector<8x8xi1>, vector<8x8xf32>
    %cst_178 = arith.constant dense<0xFF800000> : vector<8xf32>
    %201 = vector.multi_reduction <maximumf>, %200, %cst_178 [1] : vector<8x8xf32> to vector<8xf32>
    %202 = vector.shape_cast %201 : vector<8xf32> to vector<8x1xf32>
    %203 = vector.broadcast %202 : vector<8x1xf32> to vector<8x8xf32>
    %204 = arith.subf %200, %203 : vector<8x8xf32>
    %205 = math.exp %204 : vector<8x8xf32>
    %cst_179 = arith.constant dense<0.000000e+00> : vector<8xf32>
    %206 = vector.multi_reduction <add>, %205, %cst_179 [1] : vector<8x8xf32> to vector<8xf32>
    %207 = vector.shape_cast %206 : vector<8xf32> to vector<8x1xf32>
    %208 = tpu.reciprocal %207 {approx = true} : vector<8x1xf32> -> vector<8x1xf32>
    %209 = vector.broadcast %208 : vector<8x1xf32> to vector<8x8xf32>
    %210 = arith.mulf %205, %209 : vector<8x8xf32>
    %cst_180 = arith.constant dense<0.000000e+00> : vector<8x8xf32>
    %211 = tpu.matmul %210, %195, %cst_180 {dimension_numbers = #tpu.dot_dimension_numbers<[1], [0], [0], [1], [0, 0, 1, 1], [], []>} : vector<8x8xf32>, vector<8x8xf32>, vector<8x8xf32> -> vector<8x8xf32>
    %c1_181 = arith.constant 1 : index
    %c2_182 = arith.constant 2 : index
    %c0_183 = arith.constant 0 : index
    %c0_184 = arith.constant 0 : index
    %212 = vector.load %arg5[%c1_181, %c2_182, %c0_183, %c0_184] : memref<7x4x8x32xf32, #tpu.memory_space<vmem>>, vector<1x1x8x32xf32>
    %213 = vector.shape_cast %212 : vector<1x1x8x32xf32> to vector<8x32xf32>
    %cst_185 = arith.constant dense<0.000000e+00> : vector<8x32xf32>
    %214 = tpu.matmul %211, %213, %cst_185 {dimension_numbers = #tpu.dot_dimension_numbers<[1], [0], [0], [1], [0, 0, 1, 1], [], []>} : vector<8x8xf32>, vector<8x32xf32>, vector<8x32xf32> -> vector<8x32xf32>
    %215 = arith.addf %186, %214 : vector<8x32xf32>
    %c1_186 = arith.constant 1 : index
    %c3_187 = arith.constant 3 : index
    %c0_188 = arith.constant 0 : index
    %c0_189 = arith.constant 0 : index
    %216 = vector.load %arg2[%c1_186, %c3_187, %c0_188, %c0_189] : memref<7x4x32x8xf32, #tpu.memory_space<vmem>>, vector<1x1x32x8xf32>
    %217 = vector.shape_cast %216 : vector<1x1x32x8xf32> to vector<32x8xf32>
    %cst_190 = arith.constant dense<0.000000e+00> : vector<8x8xf32>
    %218 = tpu.matmul %1, %217, %cst_190 {dimension_numbers = #tpu.dot_dimension_numbers<[1], [0], [0], [1], [0, 0, 1, 1], [], []>} : vector<8x32xf32>, vector<32x8xf32>, vector<8x8xf32> -> vector<8x8xf32>
    %c1_191 = arith.constant 1 : index
    %c3_192 = arith.constant 3 : index
    %c0_193 = arith.constant 0 : index
    %c0_194 = arith.constant 0 : index
    %219 = vector.load %arg3[%c1_191, %c3_192, %c0_193, %c0_194] : memref<7x4x32x8xf32, #tpu.memory_space<vmem>>, vector<1x1x32x8xf32>
    %220 = vector.shape_cast %219 : vector<1x1x32x8xf32> to vector<32x8xf32>
    %cst_195 = arith.constant dense<0.000000e+00> : vector<8x8xf32>
    %221 = tpu.matmul %1, %220, %cst_195 {dimension_numbers = #tpu.dot_dimension_numbers<[1], [0], [0], [1], [0, 0, 1, 1], [], []>} : vector<8x32xf32>, vector<32x8xf32>, vector<8x8xf32> -> vector<8x8xf32>
    %c1_196 = arith.constant 1 : index
    %c3_197 = arith.constant 3 : index
    %c0_198 = arith.constant 0 : index
    %c0_199 = arith.constant 0 : index
    %222 = vector.load %arg4[%c1_196, %c3_197, %c0_198, %c0_199] : memref<7x4x32x8xf32, #tpu.memory_space<vmem>>, vector<1x1x32x8xf32>
    %223 = vector.shape_cast %222 : vector<1x1x32x8xf32> to vector<32x8xf32>
    %cst_200 = arith.constant dense<0.000000e+00> : vector<8x8xf32>
    %224 = tpu.matmul %1, %223, %cst_200 {dimension_numbers = #tpu.dot_dimension_numbers<[1], [0], [0], [1], [0, 0, 1, 1], [], []>} : vector<8x32xf32>, vector<32x8xf32>, vector<8x8xf32> -> vector<8x8xf32>
    %cst_201 = arith.constant dense<0.000000e+00> : vector<8x8xf32>
    %225 = tpu.matmul %218, %221, %cst_201 {dimension_numbers = #tpu.dot_dimension_numbers<[1], [1], [0], [0], [0, 0, 1, 0], [], []>} : vector<8x8xf32>, vector<8x8xf32>, vector<8x8xf32> -> vector<8x8xf32>
    %cst_202 = arith.constant 0.176776692 : f32
    %226 = vector.broadcast %cst_202 : f32 to vector<8x8xf32>
    %227 = arith.mulf %225, %226 : vector<8x8xf32>
    %cst_203 = arith.constant -1.000000e+30 : f32
    %228 = vector.broadcast %cst_203 : f32 to vector<8x8xf32>
    %229 = arith.select %4, %227, %228 : vector<8x8xi1>, vector<8x8xf32>
    %cst_204 = arith.constant dense<0xFF800000> : vector<8xf32>
    %230 = vector.multi_reduction <maximumf>, %229, %cst_204 [1] : vector<8x8xf32> to vector<8xf32>
    %231 = vector.shape_cast %230 : vector<8xf32> to vector<8x1xf32>
    %232 = vector.broadcast %231 : vector<8x1xf32> to vector<8x8xf32>
    %233 = arith.subf %229, %232 : vector<8x8xf32>
    %234 = math.exp %233 : vector<8x8xf32>
    %cst_205 = arith.constant dense<0.000000e+00> : vector<8xf32>
    %235 = vector.multi_reduction <add>, %234, %cst_205 [1] : vector<8x8xf32> to vector<8xf32>
    %236 = vector.shape_cast %235 : vector<8xf32> to vector<8x1xf32>
    %237 = tpu.reciprocal %236 {approx = true} : vector<8x1xf32> -> vector<8x1xf32>
    %238 = vector.broadcast %237 : vector<8x1xf32> to vector<8x8xf32>
    %239 = arith.mulf %234, %238 : vector<8x8xf32>
    %cst_206 = arith.constant dense<0.000000e+00> : vector<8x8xf32>
    %240 = tpu.matmul %239, %224, %cst_206 {dimension_numbers = #tpu.dot_dimension_numbers<[1], [0], [0], [1], [0, 0, 1, 1], [], []>} : vector<8x8xf32>, vector<8x8xf32>, vector<8x8xf32> -> vector<8x8xf32>
    %c1_207 = arith.constant 1 : index
    %c3_208 = arith.constant 3 : index
    %c0_209 = arith.constant 0 : index
    %c0_210 = arith.constant 0 : index
    %241 = vector.load %arg5[%c1_207, %c3_208, %c0_209, %c0_210] : memref<7x4x8x32xf32, #tpu.memory_space<vmem>>, vector<1x1x8x32xf32>
    %242 = vector.shape_cast %241 : vector<1x1x8x32xf32> to vector<8x32xf32>
    %cst_211 = arith.constant dense<0.000000e+00> : vector<8x32xf32>
    %243 = tpu.matmul %240, %242, %cst_211 {dimension_numbers = #tpu.dot_dimension_numbers<[1], [0], [0], [1], [0, 0, 1, 1], [], []>} : vector<8x8xf32>, vector<8x32xf32>, vector<8x32xf32> -> vector<8x32xf32>
    %244 = arith.addf %215, %243 : vector<8x32xf32>
    %c1_212 = arith.constant 1 : index
    %c0_213 = arith.constant 0 : index
    %c0_214 = arith.constant 0 : index
    %245 = vector.load %arg6[%c1_212, %c0_213, %c0_214] : memref<7x1x32xf32, #tpu.memory_space<vmem>>, vector<1x1x32xf32>
    %246 = vector.shape_cast %245 : vector<1x1x32xf32> to vector<1x32xf32>
    %247 = vector.broadcast %246 : vector<1x32xf32> to vector<8x32xf32>
    %248 = arith.addf %244, %247 : vector<8x32xf32>
    %cst_215 = arith.constant 0.000000e+00 : f32
    %249 = vector.broadcast %cst_215 : f32 to vector<8x32xf32>
    %c4 = arith.constant 4 : index
    %c0_216 = arith.constant 0 : index
    %c0_217 = arith.constant 0 : index
    %c0_218 = arith.constant 0 : index
    %250 = vector.load %arg2[%c4, %c0_216, %c0_217, %c0_218] : memref<7x4x32x8xf32, #tpu.memory_space<vmem>>, vector<1x1x32x8xf32>
    %251 = vector.shape_cast %250 : vector<1x1x32x8xf32> to vector<32x8xf32>
    %cst_219 = arith.constant dense<0.000000e+00> : vector<8x8xf32>
    %252 = tpu.matmul %127, %251, %cst_219 {dimension_numbers = #tpu.dot_dimension_numbers<[1], [0], [0], [1], [0, 0, 1, 1], [], []>} : vector<8x32xf32>, vector<32x8xf32>, vector<8x8xf32> -> vector<8x8xf32>
    %c4_220 = arith.constant 4 : index
    %c0_221 = arith.constant 0 : index
    %c0_222 = arith.constant 0 : index
    %c0_223 = arith.constant 0 : index
    %253 = vector.load %arg3[%c4_220, %c0_221, %c0_222, %c0_223] : memref<7x4x32x8xf32, #tpu.memory_space<vmem>>, vector<1x1x32x8xf32>
    %254 = vector.shape_cast %253 : vector<1x1x32x8xf32> to vector<32x8xf32>
    %cst_224 = arith.constant dense<0.000000e+00> : vector<8x8xf32>
    %255 = tpu.matmul %127, %254, %cst_224 {dimension_numbers = #tpu.dot_dimension_numbers<[1], [0], [0], [1], [0, 0, 1, 1], [], []>} : vector<8x32xf32>, vector<32x8xf32>, vector<8x8xf32> -> vector<8x8xf32>
    %c4_225 = arith.constant 4 : index
    %c0_226 = arith.constant 0 : index
    %c0_227 = arith.constant 0 : index
    %c0_228 = arith.constant 0 : index
    %256 = vector.load %arg4[%c4_225, %c0_226, %c0_227, %c0_228] : memref<7x4x32x8xf32, #tpu.memory_space<vmem>>, vector<1x1x32x8xf32>
    %257 = vector.shape_cast %256 : vector<1x1x32x8xf32> to vector<32x8xf32>
    %cst_229 = arith.constant dense<0.000000e+00> : vector<8x8xf32>
    %258 = tpu.matmul %127, %257, %cst_229 {dimension_numbers = #tpu.dot_dimension_numbers<[1], [0], [0], [1], [0, 0, 1, 1], [], []>} : vector<8x32xf32>, vector<32x8xf32>, vector<8x8xf32> -> vector<8x8xf32>
    %cst_230 = arith.constant dense<0.000000e+00> : vector<8x8xf32>
    %259 = tpu.matmul %252, %255, %cst_230 {dimension_numbers = #tpu.dot_dimension_numbers<[1], [1], [0], [0], [0, 0, 1, 0], [], []>} : vector<8x8xf32>, vector<8x8xf32>, vector<8x8xf32> -> vector<8x8xf32>
    %cst_231 = arith.constant 0.176776692 : f32
    %260 = vector.broadcast %cst_231 : f32 to vector<8x8xf32>
    %261 = arith.mulf %259, %260 : vector<8x8xf32>
    %cst_232 = arith.constant -1.000000e+30 : f32
    %262 = vector.broadcast %cst_232 : f32 to vector<8x8xf32>
    %263 = arith.select %4, %261, %262 : vector<8x8xi1>, vector<8x8xf32>
    %cst_233 = arith.constant dense<0xFF800000> : vector<8xf32>
    %264 = vector.multi_reduction <maximumf>, %263, %cst_233 [1] : vector<8x8xf32> to vector<8xf32>
    %265 = vector.shape_cast %264 : vector<8xf32> to vector<8x1xf32>
    %266 = vector.broadcast %265 : vector<8x1xf32> to vector<8x8xf32>
    %267 = arith.subf %263, %266 : vector<8x8xf32>
    %268 = math.exp %267 : vector<8x8xf32>
    %cst_234 = arith.constant dense<0.000000e+00> : vector<8xf32>
    %269 = vector.multi_reduction <add>, %268, %cst_234 [1] : vector<8x8xf32> to vector<8xf32>
    %270 = vector.shape_cast %269 : vector<8xf32> to vector<8x1xf32>
    %271 = tpu.reciprocal %270 {approx = true} : vector<8x1xf32> -> vector<8x1xf32>
    %272 = vector.broadcast %271 : vector<8x1xf32> to vector<8x8xf32>
    %273 = arith.mulf %268, %272 : vector<8x8xf32>
    %cst_235 = arith.constant dense<0.000000e+00> : vector<8x8xf32>
    %274 = tpu.matmul %273, %258, %cst_235 {dimension_numbers = #tpu.dot_dimension_numbers<[1], [0], [0], [1], [0, 0, 1, 1], [], []>} : vector<8x8xf32>, vector<8x8xf32>, vector<8x8xf32> -> vector<8x8xf32>
    %c4_236 = arith.constant 4 : index
    %c0_237 = arith.constant 0 : index
    %c0_238 = arith.constant 0 : index
    %c0_239 = arith.constant 0 : index
    %275 = vector.load %arg5[%c4_236, %c0_237, %c0_238, %c0_239] : memref<7x4x8x32xf32, #tpu.memory_space<vmem>>, vector<1x1x8x32xf32>
    %276 = vector.shape_cast %275 : vector<1x1x8x32xf32> to vector<8x32xf32>
    %cst_240 = arith.constant dense<0.000000e+00> : vector<8x32xf32>
    %277 = tpu.matmul %274, %276, %cst_240 {dimension_numbers = #tpu.dot_dimension_numbers<[1], [0], [0], [1], [0, 0, 1, 1], [], []>} : vector<8x8xf32>, vector<8x32xf32>, vector<8x32xf32> -> vector<8x32xf32>
    %278 = arith.addf %249, %277 : vector<8x32xf32>
    %c4_241 = arith.constant 4 : index
    %c1_242 = arith.constant 1 : index
    %c0_243 = arith.constant 0 : index
    %c0_244 = arith.constant 0 : index
    %279 = vector.load %arg2[%c4_241, %c1_242, %c0_243, %c0_244] : memref<7x4x32x8xf32, #tpu.memory_space<vmem>>, vector<1x1x32x8xf32>
    %280 = vector.shape_cast %279 : vector<1x1x32x8xf32> to vector<32x8xf32>
    %cst_245 = arith.constant dense<0.000000e+00> : vector<8x8xf32>
    %281 = tpu.matmul %127, %280, %cst_245 {dimension_numbers = #tpu.dot_dimension_numbers<[1], [0], [0], [1], [0, 0, 1, 1], [], []>} : vector<8x32xf32>, vector<32x8xf32>, vector<8x8xf32> -> vector<8x8xf32>
    %c4_246 = arith.constant 4 : index
    %c1_247 = arith.constant 1 : index
    %c0_248 = arith.constant 0 : index
    %c0_249 = arith.constant 0 : index
    %282 = vector.load %arg3[%c4_246, %c1_247, %c0_248, %c0_249] : memref<7x4x32x8xf32, #tpu.memory_space<vmem>>, vector<1x1x32x8xf32>
    %283 = vector.shape_cast %282 : vector<1x1x32x8xf32> to vector<32x8xf32>
    %cst_250 = arith.constant dense<0.000000e+00> : vector<8x8xf32>
    %284 = tpu.matmul %127, %283, %cst_250 {dimension_numbers = #tpu.dot_dimension_numbers<[1], [0], [0], [1], [0, 0, 1, 1], [], []>} : vector<8x32xf32>, vector<32x8xf32>, vector<8x8xf32> -> vector<8x8xf32>
    %c4_251 = arith.constant 4 : index
    %c1_252 = arith.constant 1 : index
    %c0_253 = arith.constant 0 : index
    %c0_254 = arith.constant 0 : index
    %285 = vector.load %arg4[%c4_251, %c1_252, %c0_253, %c0_254] : memref<7x4x32x8xf32, #tpu.memory_space<vmem>>, vector<1x1x32x8xf32>
    %286 = vector.shape_cast %285 : vector<1x1x32x8xf32> to vector<32x8xf32>
    %cst_255 = arith.constant dense<0.000000e+00> : vector<8x8xf32>
    %287 = tpu.matmul %127, %286, %cst_255 {dimension_numbers = #tpu.dot_dimension_numbers<[1], [0], [0], [1], [0, 0, 1, 1], [], []>} : vector<8x32xf32>, vector<32x8xf32>, vector<8x8xf32> -> vector<8x8xf32>
    %cst_256 = arith.constant dense<0.000000e+00> : vector<8x8xf32>
    %288 = tpu.matmul %281, %284, %cst_256 {dimension_numbers = #tpu.dot_dimension_numbers<[1], [1], [0], [0], [0, 0, 1, 0], [], []>} : vector<8x8xf32>, vector<8x8xf32>, vector<8x8xf32> -> vector<8x8xf32>
    %cst_257 = arith.constant 0.176776692 : f32
    %289 = vector.broadcast %cst_257 : f32 to vector<8x8xf32>
    %290 = arith.mulf %288, %289 : vector<8x8xf32>
    %cst_258 = arith.constant -1.000000e+30 : f32
    %291 = vector.broadcast %cst_258 : f32 to vector<8x8xf32>
    %292 = arith.select %4, %290, %291 : vector<8x8xi1>, vector<8x8xf32>
    %cst_259 = arith.constant dense<0xFF800000> : vector<8xf32>
    %293 = vector.multi_reduction <maximumf>, %292, %cst_259 [1] : vector<8x8xf32> to vector<8xf32>
    %294 = vector.shape_cast %293 : vector<8xf32> to vector<8x1xf32>
    %295 = vector.broadcast %294 : vector<8x1xf32> to vector<8x8xf32>
    %296 = arith.subf %292, %295 : vector<8x8xf32>
    %297 = math.exp %296 : vector<8x8xf32>
    %cst_260 = arith.constant dense<0.000000e+00> : vector<8xf32>
    %298 = vector.multi_reduction <add>, %297, %cst_260 [1] : vector<8x8xf32> to vector<8xf32>
    %299 = vector.shape_cast %298 : vector<8xf32> to vector<8x1xf32>
    %300 = tpu.reciprocal %299 {approx = true} : vector<8x1xf32> -> vector<8x1xf32>
    %301 = vector.broadcast %300 : vector<8x1xf32> to vector<8x8xf32>
    %302 = arith.mulf %297, %301 : vector<8x8xf32>
    %cst_261 = arith.constant dense<0.000000e+00> : vector<8x8xf32>
    %303 = tpu.matmul %302, %287, %cst_261 {dimension_numbers = #tpu.dot_dimension_numbers<[1], [0], [0], [1], [0, 0, 1, 1], [], []>} : vector<8x8xf32>, vector<8x8xf32>, vector<8x8xf32> -> vector<8x8xf32>
    %c4_262 = arith.constant 4 : index
    %c1_263 = arith.constant 1 : index
    %c0_264 = arith.constant 0 : index
    %c0_265 = arith.constant 0 : index
    %304 = vector.load %arg5[%c4_262, %c1_263, %c0_264, %c0_265] : memref<7x4x8x32xf32, #tpu.memory_space<vmem>>, vector<1x1x8x32xf32>
    %305 = vector.shape_cast %304 : vector<1x1x8x32xf32> to vector<8x32xf32>
    %cst_266 = arith.constant dense<0.000000e+00> : vector<8x32xf32>
    %306 = tpu.matmul %303, %305, %cst_266 {dimension_numbers = #tpu.dot_dimension_numbers<[1], [0], [0], [1], [0, 0, 1, 1], [], []>} : vector<8x8xf32>, vector<8x32xf32>, vector<8x32xf32> -> vector<8x32xf32>
    %307 = arith.addf %278, %306 : vector<8x32xf32>
    %c4_267 = arith.constant 4 : index
    %c2_268 = arith.constant 2 : index
    %c0_269 = arith.constant 0 : index
    %c0_270 = arith.constant 0 : index
    %308 = vector.load %arg2[%c4_267, %c2_268, %c0_269, %c0_270] : memref<7x4x32x8xf32, #tpu.memory_space<vmem>>, vector<1x1x32x8xf32>
    %309 = vector.shape_cast %308 : vector<1x1x32x8xf32> to vector<32x8xf32>
    %cst_271 = arith.constant dense<0.000000e+00> : vector<8x8xf32>
    %310 = tpu.matmul %127, %309, %cst_271 {dimension_numbers = #tpu.dot_dimension_numbers<[1], [0], [0], [1], [0, 0, 1, 1], [], []>} : vector<8x32xf32>, vector<32x8xf32>, vector<8x8xf32> -> vector<8x8xf32>
    %c4_272 = arith.constant 4 : index
    %c2_273 = arith.constant 2 : index
    %c0_274 = arith.constant 0 : index
    %c0_275 = arith.constant 0 : index
    %311 = vector.load %arg3[%c4_272, %c2_273, %c0_274, %c0_275] : memref<7x4x32x8xf32, #tpu.memory_space<vmem>>, vector<1x1x32x8xf32>
    %312 = vector.shape_cast %311 : vector<1x1x32x8xf32> to vector<32x8xf32>
    %cst_276 = arith.constant dense<0.000000e+00> : vector<8x8xf32>
    %313 = tpu.matmul %127, %312, %cst_276 {dimension_numbers = #tpu.dot_dimension_numbers<[1], [0], [0], [1], [0, 0, 1, 1], [], []>} : vector<8x32xf32>, vector<32x8xf32>, vector<8x8xf32> -> vector<8x8xf32>
    %c4_277 = arith.constant 4 : index
    %c2_278 = arith.constant 2 : index
    %c0_279 = arith.constant 0 : index
    %c0_280 = arith.constant 0 : index
    %314 = vector.load %arg4[%c4_277, %c2_278, %c0_279, %c0_280] : memref<7x4x32x8xf32, #tpu.memory_space<vmem>>, vector<1x1x32x8xf32>
    %315 = vector.shape_cast %314 : vector<1x1x32x8xf32> to vector<32x8xf32>
    %cst_281 = arith.constant dense<0.000000e+00> : vector<8x8xf32>
    %316 = tpu.matmul %127, %315, %cst_281 {dimension_numbers = #tpu.dot_dimension_numbers<[1], [0], [0], [1], [0, 0, 1, 1], [], []>} : vector<8x32xf32>, vector<32x8xf32>, vector<8x8xf32> -> vector<8x8xf32>
    %cst_282 = arith.constant dense<0.000000e+00> : vector<8x8xf32>
    %317 = tpu.matmul %310, %313, %cst_282 {dimension_numbers = #tpu.dot_dimension_numbers<[1], [1], [0], [0], [0, 0, 1, 0], [], []>} : vector<8x8xf32>, vector<8x8xf32>, vector<8x8xf32> -> vector<8x8xf32>
    %cst_283 = arith.constant 0.176776692 : f32
    %318 = vector.broadcast %cst_283 : f32 to vector<8x8xf32>
    %319 = arith.mulf %317, %318 : vector<8x8xf32>
    %cst_284 = arith.constant -1.000000e+30 : f32
    %320 = vector.broadcast %cst_284 : f32 to vector<8x8xf32>
    %321 = arith.select %4, %319, %320 : vector<8x8xi1>, vector<8x8xf32>
    %cst_285 = arith.constant dense<0xFF800000> : vector<8xf32>
    %322 = vector.multi_reduction <maximumf>, %321, %cst_285 [1] : vector<8x8xf32> to vector<8xf32>
    %323 = vector.shape_cast %322 : vector<8xf32> to vector<8x1xf32>
    %324 = vector.broadcast %323 : vector<8x1xf32> to vector<8x8xf32>
    %325 = arith.subf %321, %324 : vector<8x8xf32>
    %326 = math.exp %325 : vector<8x8xf32>
    %cst_286 = arith.constant dense<0.000000e+00> : vector<8xf32>
    %327 = vector.multi_reduction <add>, %326, %cst_286 [1] : vector<8x8xf32> to vector<8xf32>
    %328 = vector.shape_cast %327 : vector<8xf32> to vector<8x1xf32>
    %329 = tpu.reciprocal %328 {approx = true} : vector<8x1xf32> -> vector<8x1xf32>
    %330 = vector.broadcast %329 : vector<8x1xf32> to vector<8x8xf32>
    %331 = arith.mulf %326, %330 : vector<8x8xf32>
    %cst_287 = arith.constant dense<0.000000e+00> : vector<8x8xf32>
    %332 = tpu.matmul %331, %316, %cst_287 {dimension_numbers = #tpu.dot_dimension_numbers<[1], [0], [0], [1], [0, 0, 1, 1], [], []>} : vector<8x8xf32>, vector<8x8xf32>, vector<8x8xf32> -> vector<8x8xf32>
    %c4_288 = arith.constant 4 : index
    %c2_289 = arith.constant 2 : index
    %c0_290 = arith.constant 0 : index
    %c0_291 = arith.constant 0 : index
    %333 = vector.load %arg5[%c4_288, %c2_289, %c0_290, %c0_291] : memref<7x4x8x32xf32, #tpu.memory_space<vmem>>, vector<1x1x8x32xf32>
    %334 = vector.shape_cast %333 : vector<1x1x8x32xf32> to vector<8x32xf32>
    %cst_292 = arith.constant dense<0.000000e+00> : vector<8x32xf32>
    %335 = tpu.matmul %332, %334, %cst_292 {dimension_numbers = #tpu.dot_dimension_numbers<[1], [0], [0], [1], [0, 0, 1, 1], [], []>} : vector<8x8xf32>, vector<8x32xf32>, vector<8x32xf32> -> vector<8x32xf32>
    %336 = arith.addf %307, %335 : vector<8x32xf32>
    %c4_293 = arith.constant 4 : index
    %c3_294 = arith.constant 3 : index
    %c0_295 = arith.constant 0 : index
    %c0_296 = arith.constant 0 : index
    %337 = vector.load %arg2[%c4_293, %c3_294, %c0_295, %c0_296] : memref<7x4x32x8xf32, #tpu.memory_space<vmem>>, vector<1x1x32x8xf32>
    %338 = vector.shape_cast %337 : vector<1x1x32x8xf32> to vector<32x8xf32>
    %cst_297 = arith.constant dense<0.000000e+00> : vector<8x8xf32>
    %339 = tpu.matmul %127, %338, %cst_297 {dimension_numbers = #tpu.dot_dimension_numbers<[1], [0], [0], [1], [0, 0, 1, 1], [], []>} : vector<8x32xf32>, vector<32x8xf32>, vector<8x8xf32> -> vector<8x8xf32>
    %c4_298 = arith.constant 4 : index
    %c3_299 = arith.constant 3 : index
    %c0_300 = arith.constant 0 : index
    %c0_301 = arith.constant 0 : index
    %340 = vector.load %arg3[%c4_298, %c3_299, %c0_300, %c0_301] : memref<7x4x32x8xf32, #tpu.memory_space<vmem>>, vector<1x1x32x8xf32>
    %341 = vector.shape_cast %340 : vector<1x1x32x8xf32> to vector<32x8xf32>
    %cst_302 = arith.constant dense<0.000000e+00> : vector<8x8xf32>
    %342 = tpu.matmul %127, %341, %cst_302 {dimension_numbers = #tpu.dot_dimension_numbers<[1], [0], [0], [1], [0, 0, 1, 1], [], []>} : vector<8x32xf32>, vector<32x8xf32>, vector<8x8xf32> -> vector<8x8xf32>
    %c4_303 = arith.constant 4 : index
    %c3_304 = arith.constant 3 : index
    %c0_305 = arith.constant 0 : index
    %c0_306 = arith.constant 0 : index
    %343 = vector.load %arg4[%c4_303, %c3_304, %c0_305, %c0_306] : memref<7x4x32x8xf32, #tpu.memory_space<vmem>>, vector<1x1x32x8xf32>
    %344 = vector.shape_cast %343 : vector<1x1x32x8xf32> to vector<32x8xf32>
    %cst_307 = arith.constant dense<0.000000e+00> : vector<8x8xf32>
    %345 = tpu.matmul %127, %344, %cst_307 {dimension_numbers = #tpu.dot_dimension_numbers<[1], [0], [0], [1], [0, 0, 1, 1], [], []>} : vector<8x32xf32>, vector<32x8xf32>, vector<8x8xf32> -> vector<8x8xf32>
    %cst_308 = arith.constant dense<0.000000e+00> : vector<8x8xf32>
    %346 = tpu.matmul %339, %342, %cst_308 {dimension_numbers = #tpu.dot_dimension_numbers<[1], [1], [0], [0], [0, 0, 1, 0], [], []>} : vector<8x8xf32>, vector<8x8xf32>, vector<8x8xf32> -> vector<8x8xf32>
    %cst_309 = arith.constant 0.176776692 : f32
    %347 = vector.broadcast %cst_309 : f32 to vector<8x8xf32>
    %348 = arith.mulf %346, %347 : vector<8x8xf32>
    %cst_310 = arith.constant -1.000000e+30 : f32
    %349 = vector.broadcast %cst_310 : f32 to vector<8x8xf32>
    %350 = arith.select %4, %348, %349 : vector<8x8xi1>, vector<8x8xf32>
    %cst_311 = arith.constant dense<0xFF800000> : vector<8xf32>
    %351 = vector.multi_reduction <maximumf>, %350, %cst_311 [1] : vector<8x8xf32> to vector<8xf32>
    %352 = vector.shape_cast %351 : vector<8xf32> to vector<8x1xf32>
    %353 = vector.broadcast %352 : vector<8x1xf32> to vector<8x8xf32>
    %354 = arith.subf %350, %353 : vector<8x8xf32>
    %355 = math.exp %354 : vector<8x8xf32>
    %cst_312 = arith.constant dense<0.000000e+00> : vector<8xf32>
    %356 = vector.multi_reduction <add>, %355, %cst_312 [1] : vector<8x8xf32> to vector<8xf32>
    %357 = vector.shape_cast %356 : vector<8xf32> to vector<8x1xf32>
    %358 = tpu.reciprocal %357 {approx = true} : vector<8x1xf32> -> vector<8x1xf32>
    %359 = vector.broadcast %358 : vector<8x1xf32> to vector<8x8xf32>
    %360 = arith.mulf %355, %359 : vector<8x8xf32>
    %cst_313 = arith.constant dense<0.000000e+00> : vector<8x8xf32>
    %361 = tpu.matmul %360, %345, %cst_313 {dimension_numbers = #tpu.dot_dimension_numbers<[1], [0], [0], [1], [0, 0, 1, 1], [], []>} : vector<8x8xf32>, vector<8x8xf32>, vector<8x8xf32> -> vector<8x8xf32>
    %c4_314 = arith.constant 4 : index
    %c3_315 = arith.constant 3 : index
    %c0_316 = arith.constant 0 : index
    %c0_317 = arith.constant 0 : index
    %362 = vector.load %arg5[%c4_314, %c3_315, %c0_316, %c0_317] : memref<7x4x8x32xf32, #tpu.memory_space<vmem>>, vector<1x1x8x32xf32>
    %363 = vector.shape_cast %362 : vector<1x1x8x32xf32> to vector<8x32xf32>
    %cst_318 = arith.constant dense<0.000000e+00> : vector<8x32xf32>
    %364 = tpu.matmul %361, %363, %cst_318 {dimension_numbers = #tpu.dot_dimension_numbers<[1], [0], [0], [1], [0, 0, 1, 1], [], []>} : vector<8x8xf32>, vector<8x32xf32>, vector<8x32xf32> -> vector<8x32xf32>
    %365 = arith.addf %336, %364 : vector<8x32xf32>
    %c4_319 = arith.constant 4 : index
    %c0_320 = arith.constant 0 : index
    %c0_321 = arith.constant 0 : index
    %366 = vector.load %arg6[%c4_319, %c0_320, %c0_321] : memref<7x1x32xf32, #tpu.memory_space<vmem>>, vector<1x1x32xf32>
    %367 = vector.shape_cast %366 : vector<1x1x32xf32> to vector<1x32xf32>
    %368 = vector.broadcast %367 : vector<1x32xf32> to vector<8x32xf32>
    %369 = arith.addf %365, %368 : vector<8x32xf32>
    %370 = arith.addf %248, %369 : vector<8x32xf32>
    %cst_322 = arith.constant 5.000000e-01 : f32
    %371 = vector.broadcast %cst_322 : f32 to vector<8x32xf32>
    %372 = arith.mulf %370, %371 : vector<8x32xf32>
    %cst_323 = arith.constant 0.000000e+00 : f32
    %373 = vector.broadcast %cst_323 : f32 to vector<8x32xf32>
    %c5 = arith.constant 5 : index
    %c0_324 = arith.constant 0 : index
    %c0_325 = arith.constant 0 : index
    %c0_326 = arith.constant 0 : index
    %374 = vector.load %arg2[%c5, %c0_324, %c0_325, %c0_326] : memref<7x4x32x8xf32, #tpu.memory_space<vmem>>, vector<1x1x32x8xf32>
    %375 = vector.shape_cast %374 : vector<1x1x32x8xf32> to vector<32x8xf32>
    %cst_327 = arith.constant dense<0.000000e+00> : vector<8x8xf32>
    %376 = tpu.matmul %372, %375, %cst_327 {dimension_numbers = #tpu.dot_dimension_numbers<[1], [0], [0], [1], [0, 0, 1, 1], [], []>} : vector<8x32xf32>, vector<32x8xf32>, vector<8x8xf32> -> vector<8x8xf32>
    %c5_328 = arith.constant 5 : index
    %c0_329 = arith.constant 0 : index
    %c0_330 = arith.constant 0 : index
    %c0_331 = arith.constant 0 : index
    %377 = vector.load %arg3[%c5_328, %c0_329, %c0_330, %c0_331] : memref<7x4x32x8xf32, #tpu.memory_space<vmem>>, vector<1x1x32x8xf32>
    %378 = vector.shape_cast %377 : vector<1x1x32x8xf32> to vector<32x8xf32>
    %cst_332 = arith.constant dense<0.000000e+00> : vector<8x8xf32>
    %379 = tpu.matmul %372, %378, %cst_332 {dimension_numbers = #tpu.dot_dimension_numbers<[1], [0], [0], [1], [0, 0, 1, 1], [], []>} : vector<8x32xf32>, vector<32x8xf32>, vector<8x8xf32> -> vector<8x8xf32>
    %c5_333 = arith.constant 5 : index
    %c0_334 = arith.constant 0 : index
    %c0_335 = arith.constant 0 : index
    %c0_336 = arith.constant 0 : index
    %380 = vector.load %arg4[%c5_333, %c0_334, %c0_335, %c0_336] : memref<7x4x32x8xf32, #tpu.memory_space<vmem>>, vector<1x1x32x8xf32>
    %381 = vector.shape_cast %380 : vector<1x1x32x8xf32> to vector<32x8xf32>
    %cst_337 = arith.constant dense<0.000000e+00> : vector<8x8xf32>
    %382 = tpu.matmul %372, %381, %cst_337 {dimension_numbers = #tpu.dot_dimension_numbers<[1], [0], [0], [1], [0, 0, 1, 1], [], []>} : vector<8x32xf32>, vector<32x8xf32>, vector<8x8xf32> -> vector<8x8xf32>
    %cst_338 = arith.constant dense<0.000000e+00> : vector<8x8xf32>
    %383 = tpu.matmul %376, %379, %cst_338 {dimension_numbers = #tpu.dot_dimension_numbers<[1], [1], [0], [0], [0, 0, 1, 0], [], []>} : vector<8x8xf32>, vector<8x8xf32>, vector<8x8xf32> -> vector<8x8xf32>
    %cst_339 = arith.constant 0.176776692 : f32
    %384 = vector.broadcast %cst_339 : f32 to vector<8x8xf32>
    %385 = arith.mulf %383, %384 : vector<8x8xf32>
    %cst_340 = arith.constant -1.000000e+30 : f32
    %386 = vector.broadcast %cst_340 : f32 to vector<8x8xf32>
    %387 = arith.select %4, %385, %386 : vector<8x8xi1>, vector<8x8xf32>
    %cst_341 = arith.constant dense<0xFF800000> : vector<8xf32>
    %388 = vector.multi_reduction <maximumf>, %387, %cst_341 [1] : vector<8x8xf32> to vector<8xf32>
    %389 = vector.shape_cast %388 : vector<8xf32> to vector<8x1xf32>
    %390 = vector.broadcast %389 : vector<8x1xf32> to vector<8x8xf32>
    %391 = arith.subf %387, %390 : vector<8x8xf32>
    %392 = math.exp %391 : vector<8x8xf32>
    %cst_342 = arith.constant dense<0.000000e+00> : vector<8xf32>
    %393 = vector.multi_reduction <add>, %392, %cst_342 [1] : vector<8x8xf32> to vector<8xf32>
    %394 = vector.shape_cast %393 : vector<8xf32> to vector<8x1xf32>
    %395 = tpu.reciprocal %394 {approx = true} : vector<8x1xf32> -> vector<8x1xf32>
    %396 = vector.broadcast %395 : vector<8x1xf32> to vector<8x8xf32>
    %397 = arith.mulf %392, %396 : vector<8x8xf32>
    %cst_343 = arith.constant dense<0.000000e+00> : vector<8x8xf32>
    %398 = tpu.matmul %397, %382, %cst_343 {dimension_numbers = #tpu.dot_dimension_numbers<[1], [0], [0], [1], [0, 0, 1, 1], [], []>} : vector<8x8xf32>, vector<8x8xf32>, vector<8x8xf32> -> vector<8x8xf32>
    %c5_344 = arith.constant 5 : index
    %c0_345 = arith.constant 0 : index
    %c0_346 = arith.constant 0 : index
    %c0_347 = arith.constant 0 : index
    %399 = vector.load %arg5[%c5_344, %c0_345, %c0_346, %c0_347] : memref<7x4x8x32xf32, #tpu.memory_space<vmem>>, vector<1x1x8x32xf32>
    %400 = vector.shape_cast %399 : vector<1x1x8x32xf32> to vector<8x32xf32>
    %cst_348 = arith.constant dense<0.000000e+00> : vector<8x32xf32>
    %401 = tpu.matmul %398, %400, %cst_348 {dimension_numbers = #tpu.dot_dimension_numbers<[1], [0], [0], [1], [0, 0, 1, 1], [], []>} : vector<8x8xf32>, vector<8x32xf32>, vector<8x32xf32> -> vector<8x32xf32>
    %402 = arith.addf %373, %401 : vector<8x32xf32>
    %c5_349 = arith.constant 5 : index
    %c1_350 = arith.constant 1 : index
    %c0_351 = arith.constant 0 : index
    %c0_352 = arith.constant 0 : index
    %403 = vector.load %arg2[%c5_349, %c1_350, %c0_351, %c0_352] : memref<7x4x32x8xf32, #tpu.memory_space<vmem>>, vector<1x1x32x8xf32>
    %404 = vector.shape_cast %403 : vector<1x1x32x8xf32> to vector<32x8xf32>
    %cst_353 = arith.constant dense<0.000000e+00> : vector<8x8xf32>
    %405 = tpu.matmul %372, %404, %cst_353 {dimension_numbers = #tpu.dot_dimension_numbers<[1], [0], [0], [1], [0, 0, 1, 1], [], []>} : vector<8x32xf32>, vector<32x8xf32>, vector<8x8xf32> -> vector<8x8xf32>
    %c5_354 = arith.constant 5 : index
    %c1_355 = arith.constant 1 : index
    %c0_356 = arith.constant 0 : index
    %c0_357 = arith.constant 0 : index
    %406 = vector.load %arg3[%c5_354, %c1_355, %c0_356, %c0_357] : memref<7x4x32x8xf32, #tpu.memory_space<vmem>>, vector<1x1x32x8xf32>
    %407 = vector.shape_cast %406 : vector<1x1x32x8xf32> to vector<32x8xf32>
    %cst_358 = arith.constant dense<0.000000e+00> : vector<8x8xf32>
    %408 = tpu.matmul %372, %407, %cst_358 {dimension_numbers = #tpu.dot_dimension_numbers<[1], [0], [0], [1], [0, 0, 1, 1], [], []>} : vector<8x32xf32>, vector<32x8xf32>, vector<8x8xf32> -> vector<8x8xf32>
    %c5_359 = arith.constant 5 : index
    %c1_360 = arith.constant 1 : index
    %c0_361 = arith.constant 0 : index
    %c0_362 = arith.constant 0 : index
    %409 = vector.load %arg4[%c5_359, %c1_360, %c0_361, %c0_362] : memref<7x4x32x8xf32, #tpu.memory_space<vmem>>, vector<1x1x32x8xf32>
    %410 = vector.shape_cast %409 : vector<1x1x32x8xf32> to vector<32x8xf32>
    %cst_363 = arith.constant dense<0.000000e+00> : vector<8x8xf32>
    %411 = tpu.matmul %372, %410, %cst_363 {dimension_numbers = #tpu.dot_dimension_numbers<[1], [0], [0], [1], [0, 0, 1, 1], [], []>} : vector<8x32xf32>, vector<32x8xf32>, vector<8x8xf32> -> vector<8x8xf32>
    %cst_364 = arith.constant dense<0.000000e+00> : vector<8x8xf32>
    %412 = tpu.matmul %405, %408, %cst_364 {dimension_numbers = #tpu.dot_dimension_numbers<[1], [1], [0], [0], [0, 0, 1, 0], [], []>} : vector<8x8xf32>, vector<8x8xf32>, vector<8x8xf32> -> vector<8x8xf32>
    %cst_365 = arith.constant 0.176776692 : f32
    %413 = vector.broadcast %cst_365 : f32 to vector<8x8xf32>
    %414 = arith.mulf %412, %413 : vector<8x8xf32>
    %cst_366 = arith.constant -1.000000e+30 : f32
    %415 = vector.broadcast %cst_366 : f32 to vector<8x8xf32>
    %416 = arith.select %4, %414, %415 : vector<8x8xi1>, vector<8x8xf32>
    %cst_367 = arith.constant dense<0xFF800000> : vector<8xf32>
    %417 = vector.multi_reduction <maximumf>, %416, %cst_367 [1] : vector<8x8xf32> to vector<8xf32>
    %418 = vector.shape_cast %417 : vector<8xf32> to vector<8x1xf32>
    %419 = vector.broadcast %418 : vector<8x1xf32> to vector<8x8xf32>
    %420 = arith.subf %416, %419 : vector<8x8xf32>
    %421 = math.exp %420 : vector<8x8xf32>
    %cst_368 = arith.constant dense<0.000000e+00> : vector<8xf32>
    %422 = vector.multi_reduction <add>, %421, %cst_368 [1] : vector<8x8xf32> to vector<8xf32>
    %423 = vector.shape_cast %422 : vector<8xf32> to vector<8x1xf32>
    %424 = tpu.reciprocal %423 {approx = true} : vector<8x1xf32> -> vector<8x1xf32>
    %425 = vector.broadcast %424 : vector<8x1xf32> to vector<8x8xf32>
    %426 = arith.mulf %421, %425 : vector<8x8xf32>
    %cst_369 = arith.constant dense<0.000000e+00> : vector<8x8xf32>
    %427 = tpu.matmul %426, %411, %cst_369 {dimension_numbers = #tpu.dot_dimension_numbers<[1], [0], [0], [1], [0, 0, 1, 1], [], []>} : vector<8x8xf32>, vector<8x8xf32>, vector<8x8xf32> -> vector<8x8xf32>
    %c5_370 = arith.constant 5 : index
    %c1_371 = arith.constant 1 : index
    %c0_372 = arith.constant 0 : index
    %c0_373 = arith.constant 0 : index
    %428 = vector.load %arg5[%c5_370, %c1_371, %c0_372, %c0_373] : memref<7x4x8x32xf32, #tpu.memory_space<vmem>>, vector<1x1x8x32xf32>
    %429 = vector.shape_cast %428 : vector<1x1x8x32xf32> to vector<8x32xf32>
    %cst_374 = arith.constant dense<0.000000e+00> : vector<8x32xf32>
    %430 = tpu.matmul %427, %429, %cst_374 {dimension_numbers = #tpu.dot_dimension_numbers<[1], [0], [0], [1], [0, 0, 1, 1], [], []>} : vector<8x8xf32>, vector<8x32xf32>, vector<8x32xf32> -> vector<8x32xf32>
    %431 = arith.addf %402, %430 : vector<8x32xf32>
    %c5_375 = arith.constant 5 : index
    %c2_376 = arith.constant 2 : index
    %c0_377 = arith.constant 0 : index
    %c0_378 = arith.constant 0 : index
    %432 = vector.load %arg2[%c5_375, %c2_376, %c0_377, %c0_378] : memref<7x4x32x8xf32, #tpu.memory_space<vmem>>, vector<1x1x32x8xf32>
    %433 = vector.shape_cast %432 : vector<1x1x32x8xf32> to vector<32x8xf32>
    %cst_379 = arith.constant dense<0.000000e+00> : vector<8x8xf32>
    %434 = tpu.matmul %372, %433, %cst_379 {dimension_numbers = #tpu.dot_dimension_numbers<[1], [0], [0], [1], [0, 0, 1, 1], [], []>} : vector<8x32xf32>, vector<32x8xf32>, vector<8x8xf32> -> vector<8x8xf32>
    %c5_380 = arith.constant 5 : index
    %c2_381 = arith.constant 2 : index
    %c0_382 = arith.constant 0 : index
    %c0_383 = arith.constant 0 : index
    %435 = vector.load %arg3[%c5_380, %c2_381, %c0_382, %c0_383] : memref<7x4x32x8xf32, #tpu.memory_space<vmem>>, vector<1x1x32x8xf32>
    %436 = vector.shape_cast %435 : vector<1x1x32x8xf32> to vector<32x8xf32>
    %cst_384 = arith.constant dense<0.000000e+00> : vector<8x8xf32>
    %437 = tpu.matmul %372, %436, %cst_384 {dimension_numbers = #tpu.dot_dimension_numbers<[1], [0], [0], [1], [0, 0, 1, 1], [], []>} : vector<8x32xf32>, vector<32x8xf32>, vector<8x8xf32> -> vector<8x8xf32>
    %c5_385 = arith.constant 5 : index
    %c2_386 = arith.constant 2 : index
    %c0_387 = arith.constant 0 : index
    %c0_388 = arith.constant 0 : index
    %438 = vector.load %arg4[%c5_385, %c2_386, %c0_387, %c0_388] : memref<7x4x32x8xf32, #tpu.memory_space<vmem>>, vector<1x1x32x8xf32>
    %439 = vector.shape_cast %438 : vector<1x1x32x8xf32> to vector<32x8xf32>
    %cst_389 = arith.constant dense<0.000000e+00> : vector<8x8xf32>
    %440 = tpu.matmul %372, %439, %cst_389 {dimension_numbers = #tpu.dot_dimension_numbers<[1], [0], [0], [1], [0, 0, 1, 1], [], []>} : vector<8x32xf32>, vector<32x8xf32>, vector<8x8xf32> -> vector<8x8xf32>
    %cst_390 = arith.constant dense<0.000000e+00> : vector<8x8xf32>
    %441 = tpu.matmul %434, %437, %cst_390 {dimension_numbers = #tpu.dot_dimension_numbers<[1], [1], [0], [0], [0, 0, 1, 0], [], []>} : vector<8x8xf32>, vector<8x8xf32>, vector<8x8xf32> -> vector<8x8xf32>
    %cst_391 = arith.constant 0.176776692 : f32
    %442 = vector.broadcast %cst_391 : f32 to vector<8x8xf32>
    %443 = arith.mulf %441, %442 : vector<8x8xf32>
    %cst_392 = arith.constant -1.000000e+30 : f32
    %444 = vector.broadcast %cst_392 : f32 to vector<8x8xf32>
    %445 = arith.select %4, %443, %444 : vector<8x8xi1>, vector<8x8xf32>
    %cst_393 = arith.constant dense<0xFF800000> : vector<8xf32>
    %446 = vector.multi_reduction <maximumf>, %445, %cst_393 [1] : vector<8x8xf32> to vector<8xf32>
    %447 = vector.shape_cast %446 : vector<8xf32> to vector<8x1xf32>
    %448 = vector.broadcast %447 : vector<8x1xf32> to vector<8x8xf32>
    %449 = arith.subf %445, %448 : vector<8x8xf32>
    %450 = math.exp %449 : vector<8x8xf32>
    %cst_394 = arith.constant dense<0.000000e+00> : vector<8xf32>
    %451 = vector.multi_reduction <add>, %450, %cst_394 [1] : vector<8x8xf32> to vector<8xf32>
    %452 = vector.shape_cast %451 : vector<8xf32> to vector<8x1xf32>
    %453 = tpu.reciprocal %452 {approx = true} : vector<8x1xf32> -> vector<8x1xf32>
    %454 = vector.broadcast %453 : vector<8x1xf32> to vector<8x8xf32>
    %455 = arith.mulf %450, %454 : vector<8x8xf32>
    %cst_395 = arith.constant dense<0.000000e+00> : vector<8x8xf32>
    %456 = tpu.matmul %455, %440, %cst_395 {dimension_numbers = #tpu.dot_dimension_numbers<[1], [0], [0], [1], [0, 0, 1, 1], [], []>} : vector<8x8xf32>, vector<8x8xf32>, vector<8x8xf32> -> vector<8x8xf32>
    %c5_396 = arith.constant 5 : index
    %c2_397 = arith.constant 2 : index
    %c0_398 = arith.constant 0 : index
    %c0_399 = arith.constant 0 : index
    %457 = vector.load %arg5[%c5_396, %c2_397, %c0_398, %c0_399] : memref<7x4x8x32xf32, #tpu.memory_space<vmem>>, vector<1x1x8x32xf32>
    %458 = vector.shape_cast %457 : vector<1x1x8x32xf32> to vector<8x32xf32>
    %cst_400 = arith.constant dense<0.000000e+00> : vector<8x32xf32>
    %459 = tpu.matmul %456, %458, %cst_400 {dimension_numbers = #tpu.dot_dimension_numbers<[1], [0], [0], [1], [0, 0, 1, 1], [], []>} : vector<8x8xf32>, vector<8x32xf32>, vector<8x32xf32> -> vector<8x32xf32>
    %460 = arith.addf %431, %459 : vector<8x32xf32>
    %c5_401 = arith.constant 5 : index
    %c3_402 = arith.constant 3 : index
    %c0_403 = arith.constant 0 : index
    %c0_404 = arith.constant 0 : index
    %461 = vector.load %arg2[%c5_401, %c3_402, %c0_403, %c0_404] : memref<7x4x32x8xf32, #tpu.memory_space<vmem>>, vector<1x1x32x8xf32>
    %462 = vector.shape_cast %461 : vector<1x1x32x8xf32> to vector<32x8xf32>
    %cst_405 = arith.constant dense<0.000000e+00> : vector<8x8xf32>
    %463 = tpu.matmul %372, %462, %cst_405 {dimension_numbers = #tpu.dot_dimension_numbers<[1], [0], [0], [1], [0, 0, 1, 1], [], []>} : vector<8x32xf32>, vector<32x8xf32>, vector<8x8xf32> -> vector<8x8xf32>
    %c5_406 = arith.constant 5 : index
    %c3_407 = arith.constant 3 : index
    %c0_408 = arith.constant 0 : index
    %c0_409 = arith.constant 0 : index
    %464 = vector.load %arg3[%c5_406, %c3_407, %c0_408, %c0_409] : memref<7x4x32x8xf32, #tpu.memory_space<vmem>>, vector<1x1x32x8xf32>
    %465 = vector.shape_cast %464 : vector<1x1x32x8xf32> to vector<32x8xf32>
    %cst_410 = arith.constant dense<0.000000e+00> : vector<8x8xf32>
    %466 = tpu.matmul %372, %465, %cst_410 {dimension_numbers = #tpu.dot_dimension_numbers<[1], [0], [0], [1], [0, 0, 1, 1], [], []>} : vector<8x32xf32>, vector<32x8xf32>, vector<8x8xf32> -> vector<8x8xf32>
    %c5_411 = arith.constant 5 : index
    %c3_412 = arith.constant 3 : index
    %c0_413 = arith.constant 0 : index
    %c0_414 = arith.constant 0 : index
    %467 = vector.load %arg4[%c5_411, %c3_412, %c0_413, %c0_414] : memref<7x4x32x8xf32, #tpu.memory_space<vmem>>, vector<1x1x32x8xf32>
    %468 = vector.shape_cast %467 : vector<1x1x32x8xf32> to vector<32x8xf32>
    %cst_415 = arith.constant dense<0.000000e+00> : vector<8x8xf32>
    %469 = tpu.matmul %372, %468, %cst_415 {dimension_numbers = #tpu.dot_dimension_numbers<[1], [0], [0], [1], [0, 0, 1, 1], [], []>} : vector<8x32xf32>, vector<32x8xf32>, vector<8x8xf32> -> vector<8x8xf32>
    %cst_416 = arith.constant dense<0.000000e+00> : vector<8x8xf32>
    %470 = tpu.matmul %463, %466, %cst_416 {dimension_numbers = #tpu.dot_dimension_numbers<[1], [1], [0], [0], [0, 0, 1, 0], [], []>} : vector<8x8xf32>, vector<8x8xf32>, vector<8x8xf32> -> vector<8x8xf32>
    %cst_417 = arith.constant 0.176776692 : f32
    %471 = vector.broadcast %cst_417 : f32 to vector<8x8xf32>
    %472 = arith.mulf %470, %471 : vector<8x8xf32>
    %cst_418 = arith.constant -1.000000e+30 : f32
    %473 = vector.broadcast %cst_418 : f32 to vector<8x8xf32>
    %474 = arith.select %4, %472, %473 : vector<8x8xi1>, vector<8x8xf32>
    %cst_419 = arith.constant dense<0xFF800000> : vector<8xf32>
    %475 = vector.multi_reduction <maximumf>, %474, %cst_419 [1] : vector<8x8xf32> to vector<8xf32>
    %476 = vector.shape_cast %475 : vector<8xf32> to vector<8x1xf32>
    %477 = vector.broadcast %476 : vector<8x1xf32> to vector<8x8xf32>
    %478 = arith.subf %474, %477 : vector<8x8xf32>
    %479 = math.exp %478 : vector<8x8xf32>
    %cst_420 = arith.constant dense<0.000000e+00> : vector<8xf32>
    %480 = vector.multi_reduction <add>, %479, %cst_420 [1] : vector<8x8xf32> to vector<8xf32>
    %481 = vector.shape_cast %480 : vector<8xf32> to vector<8x1xf32>
    %482 = tpu.reciprocal %481 {approx = true} : vector<8x1xf32> -> vector<8x1xf32>
    %483 = vector.broadcast %482 : vector<8x1xf32> to vector<8x8xf32>
    %484 = arith.mulf %479, %483 : vector<8x8xf32>
    %cst_421 = arith.constant dense<0.000000e+00> : vector<8x8xf32>
    %485 = tpu.matmul %484, %469, %cst_421 {dimension_numbers = #tpu.dot_dimension_numbers<[1], [0], [0], [1], [0, 0, 1, 1], [], []>} : vector<8x8xf32>, vector<8x8xf32>, vector<8x8xf32> -> vector<8x8xf32>
    %c5_422 = arith.constant 5 : index
    %c3_423 = arith.constant 3 : index
    %c0_424 = arith.constant 0 : index
    %c0_425 = arith.constant 0 : index
    %486 = vector.load %arg5[%c5_422, %c3_423, %c0_424, %c0_425] : memref<7x4x8x32xf32, #tpu.memory_space<vmem>>, vector<1x1x8x32xf32>
    %487 = vector.shape_cast %486 : vector<1x1x8x32xf32> to vector<8x32xf32>
    %cst_426 = arith.constant dense<0.000000e+00> : vector<8x32xf32>
    %488 = tpu.matmul %485, %487, %cst_426 {dimension_numbers = #tpu.dot_dimension_numbers<[1], [0], [0], [1], [0, 0, 1, 1], [], []>} : vector<8x8xf32>, vector<8x32xf32>, vector<8x32xf32> -> vector<8x32xf32>
    %489 = arith.addf %460, %488 : vector<8x32xf32>
    %c5_427 = arith.constant 5 : index
    %c0_428 = arith.constant 0 : index
    %c0_429 = arith.constant 0 : index
    %490 = vector.load %arg6[%c5_427, %c0_428, %c0_429] : memref<7x1x32xf32, #tpu.memory_space<vmem>>, vector<1x1x32xf32>
    %491 = vector.shape_cast %490 : vector<1x1x32xf32> to vector<1x32xf32>
    %492 = vector.broadcast %491 : vector<1x32xf32> to vector<8x32xf32>
    %493 = arith.addf %489, %492 : vector<8x32xf32>
    %cst_430 = arith.constant 1.000000e+00 : f32
    %494 = vector.broadcast %cst_430 : f32 to vector<8x32xf32>
    %495 = arith.mulf %493, %494 : vector<8x32xf32>
    %cst_431 = arith.constant 0.000000e+00 : f32
    %496 = vector.broadcast %cst_431 : f32 to vector<8x32xf32>
    %c0_432 = arith.constant 0 : index
    %c0_433 = arith.constant 0 : index
    %c0_434 = arith.constant 0 : index
    %c0_435 = arith.constant 0 : index
    %497 = vector.load %arg2[%c0_432, %c0_433, %c0_434, %c0_435] : memref<7x4x32x8xf32, #tpu.memory_space<vmem>>, vector<1x1x32x8xf32>
    %498 = vector.shape_cast %497 : vector<1x1x32x8xf32> to vector<32x8xf32>
    %cst_436 = arith.constant dense<0.000000e+00> : vector<8x8xf32>
    %499 = tpu.matmul %1, %498, %cst_436 {dimension_numbers = #tpu.dot_dimension_numbers<[1], [0], [0], [1], [0, 0, 1, 1], [], []>} : vector<8x32xf32>, vector<32x8xf32>, vector<8x8xf32> -> vector<8x8xf32>
    %c0_437 = arith.constant 0 : index
    %c0_438 = arith.constant 0 : index
    %c0_439 = arith.constant 0 : index
    %c0_440 = arith.constant 0 : index
    %500 = vector.load %arg3[%c0_437, %c0_438, %c0_439, %c0_440] : memref<7x4x32x8xf32, #tpu.memory_space<vmem>>, vector<1x1x32x8xf32>
    %501 = vector.shape_cast %500 : vector<1x1x32x8xf32> to vector<32x8xf32>
    %cst_441 = arith.constant dense<0.000000e+00> : vector<8x8xf32>
    %502 = tpu.matmul %1, %501, %cst_441 {dimension_numbers = #tpu.dot_dimension_numbers<[1], [0], [0], [1], [0, 0, 1, 1], [], []>} : vector<8x32xf32>, vector<32x8xf32>, vector<8x8xf32> -> vector<8x8xf32>
    %c0_442 = arith.constant 0 : index
    %c0_443 = arith.constant 0 : index
    %c0_444 = arith.constant 0 : index
    %c0_445 = arith.constant 0 : index
    %503 = vector.load %arg4[%c0_442, %c0_443, %c0_444, %c0_445] : memref<7x4x32x8xf32, #tpu.memory_space<vmem>>, vector<1x1x32x8xf32>
    %504 = vector.shape_cast %503 : vector<1x1x32x8xf32> to vector<32x8xf32>
    %cst_446 = arith.constant dense<0.000000e+00> : vector<8x8xf32>
    %505 = tpu.matmul %1, %504, %cst_446 {dimension_numbers = #tpu.dot_dimension_numbers<[1], [0], [0], [1], [0, 0, 1, 1], [], []>} : vector<8x32xf32>, vector<32x8xf32>, vector<8x8xf32> -> vector<8x8xf32>
    %cst_447 = arith.constant dense<0.000000e+00> : vector<8x8xf32>
    %506 = tpu.matmul %499, %502, %cst_447 {dimension_numbers = #tpu.dot_dimension_numbers<[1], [1], [0], [0], [0, 0, 1, 0], [], []>} : vector<8x8xf32>, vector<8x8xf32>, vector<8x8xf32> -> vector<8x8xf32>
    %cst_448 = arith.constant 0.176776692 : f32
    %507 = vector.broadcast %cst_448 : f32 to vector<8x8xf32>
    %508 = arith.mulf %506, %507 : vector<8x8xf32>
    %cst_449 = arith.constant -1.000000e+30 : f32
    %509 = vector.broadcast %cst_449 : f32 to vector<8x8xf32>
    %510 = arith.select %4, %508, %509 : vector<8x8xi1>, vector<8x8xf32>
    %cst_450 = arith.constant dense<0xFF800000> : vector<8xf32>
    %511 = vector.multi_reduction <maximumf>, %510, %cst_450 [1] : vector<8x8xf32> to vector<8xf32>
    %512 = vector.shape_cast %511 : vector<8xf32> to vector<8x1xf32>
    %513 = vector.broadcast %512 : vector<8x1xf32> to vector<8x8xf32>
    %514 = arith.subf %510, %513 : vector<8x8xf32>
    %515 = math.exp %514 : vector<8x8xf32>
    %cst_451 = arith.constant dense<0.000000e+00> : vector<8xf32>
    %516 = vector.multi_reduction <add>, %515, %cst_451 [1] : vector<8x8xf32> to vector<8xf32>
    %517 = vector.shape_cast %516 : vector<8xf32> to vector<8x1xf32>
    %518 = tpu.reciprocal %517 {approx = true} : vector<8x1xf32> -> vector<8x1xf32>
    %519 = vector.broadcast %518 : vector<8x1xf32> to vector<8x8xf32>
    %520 = arith.mulf %515, %519 : vector<8x8xf32>
    %cst_452 = arith.constant dense<0.000000e+00> : vector<8x8xf32>
    %521 = tpu.matmul %520, %505, %cst_452 {dimension_numbers = #tpu.dot_dimension_numbers<[1], [0], [0], [1], [0, 0, 1, 1], [], []>} : vector<8x8xf32>, vector<8x8xf32>, vector<8x8xf32> -> vector<8x8xf32>
    %c0_453 = arith.constant 0 : index
    %c0_454 = arith.constant 0 : index
    %c0_455 = arith.constant 0 : index
    %c0_456 = arith.constant 0 : index
    %522 = vector.load %arg5[%c0_453, %c0_454, %c0_455, %c0_456] : memref<7x4x8x32xf32, #tpu.memory_space<vmem>>, vector<1x1x8x32xf32>
    %523 = vector.shape_cast %522 : vector<1x1x8x32xf32> to vector<8x32xf32>
    %cst_457 = arith.constant dense<0.000000e+00> : vector<8x32xf32>
    %524 = tpu.matmul %521, %523, %cst_457 {dimension_numbers = #tpu.dot_dimension_numbers<[1], [0], [0], [1], [0, 0, 1, 1], [], []>} : vector<8x8xf32>, vector<8x32xf32>, vector<8x32xf32> -> vector<8x32xf32>
    %525 = arith.addf %496, %524 : vector<8x32xf32>
    %c0_458 = arith.constant 0 : index
    %c1_459 = arith.constant 1 : index
    %c0_460 = arith.constant 0 : index
    %c0_461 = arith.constant 0 : index
    %526 = vector.load %arg2[%c0_458, %c1_459, %c0_460, %c0_461] : memref<7x4x32x8xf32, #tpu.memory_space<vmem>>, vector<1x1x32x8xf32>
    %527 = vector.shape_cast %526 : vector<1x1x32x8xf32> to vector<32x8xf32>
    %cst_462 = arith.constant dense<0.000000e+00> : vector<8x8xf32>
    %528 = tpu.matmul %1, %527, %cst_462 {dimension_numbers = #tpu.dot_dimension_numbers<[1], [0], [0], [1], [0, 0, 1, 1], [], []>} : vector<8x32xf32>, vector<32x8xf32>, vector<8x8xf32> -> vector<8x8xf32>
    %c0_463 = arith.constant 0 : index
    %c1_464 = arith.constant 1 : index
    %c0_465 = arith.constant 0 : index
    %c0_466 = arith.constant 0 : index
    %529 = vector.load %arg3[%c0_463, %c1_464, %c0_465, %c0_466] : memref<7x4x32x8xf32, #tpu.memory_space<vmem>>, vector<1x1x32x8xf32>
    %530 = vector.shape_cast %529 : vector<1x1x32x8xf32> to vector<32x8xf32>
    %cst_467 = arith.constant dense<0.000000e+00> : vector<8x8xf32>
    %531 = tpu.matmul %1, %530, %cst_467 {dimension_numbers = #tpu.dot_dimension_numbers<[1], [0], [0], [1], [0, 0, 1, 1], [], []>} : vector<8x32xf32>, vector<32x8xf32>, vector<8x8xf32> -> vector<8x8xf32>
    %c0_468 = arith.constant 0 : index
    %c1_469 = arith.constant 1 : index
    %c0_470 = arith.constant 0 : index
    %c0_471 = arith.constant 0 : index
    %532 = vector.load %arg4[%c0_468, %c1_469, %c0_470, %c0_471] : memref<7x4x32x8xf32, #tpu.memory_space<vmem>>, vector<1x1x32x8xf32>
    %533 = vector.shape_cast %532 : vector<1x1x32x8xf32> to vector<32x8xf32>
    %cst_472 = arith.constant dense<0.000000e+00> : vector<8x8xf32>
    %534 = tpu.matmul %1, %533, %cst_472 {dimension_numbers = #tpu.dot_dimension_numbers<[1], [0], [0], [1], [0, 0, 1, 1], [], []>} : vector<8x32xf32>, vector<32x8xf32>, vector<8x8xf32> -> vector<8x8xf32>
    %cst_473 = arith.constant dense<0.000000e+00> : vector<8x8xf32>
    %535 = tpu.matmul %528, %531, %cst_473 {dimension_numbers = #tpu.dot_dimension_numbers<[1], [1], [0], [0], [0, 0, 1, 0], [], []>} : vector<8x8xf32>, vector<8x8xf32>, vector<8x8xf32> -> vector<8x8xf32>
    %cst_474 = arith.constant 0.176776692 : f32
    %536 = vector.broadcast %cst_474 : f32 to vector<8x8xf32>
    %537 = arith.mulf %535, %536 : vector<8x8xf32>
    %cst_475 = arith.constant -1.000000e+30 : f32
    %538 = vector.broadcast %cst_475 : f32 to vector<8x8xf32>
    %539 = arith.select %4, %537, %538 : vector<8x8xi1>, vector<8x8xf32>
    %cst_476 = arith.constant dense<0xFF800000> : vector<8xf32>
    %540 = vector.multi_reduction <maximumf>, %539, %cst_476 [1] : vector<8x8xf32> to vector<8xf32>
    %541 = vector.shape_cast %540 : vector<8xf32> to vector<8x1xf32>
    %542 = vector.broadcast %541 : vector<8x1xf32> to vector<8x8xf32>
    %543 = arith.subf %539, %542 : vector<8x8xf32>
    %544 = math.exp %543 : vector<8x8xf32>
    %cst_477 = arith.constant dense<0.000000e+00> : vector<8xf32>
    %545 = vector.multi_reduction <add>, %544, %cst_477 [1] : vector<8x8xf32> to vector<8xf32>
    %546 = vector.shape_cast %545 : vector<8xf32> to vector<8x1xf32>
    %547 = tpu.reciprocal %546 {approx = true} : vector<8x1xf32> -> vector<8x1xf32>
    %548 = vector.broadcast %547 : vector<8x1xf32> to vector<8x8xf32>
    %549 = arith.mulf %544, %548 : vector<8x8xf32>
    %cst_478 = arith.constant dense<0.000000e+00> : vector<8x8xf32>
    %550 = tpu.matmul %549, %534, %cst_478 {dimension_numbers = #tpu.dot_dimension_numbers<[1], [0], [0], [1], [0, 0, 1, 1], [], []>} : vector<8x8xf32>, vector<8x8xf32>, vector<8x8xf32> -> vector<8x8xf32>
    %c0_479 = arith.constant 0 : index
    %c1_480 = arith.constant 1 : index
    %c0_481 = arith.constant 0 : index
    %c0_482 = arith.constant 0 : index
    %551 = vector.load %arg5[%c0_479, %c1_480, %c0_481, %c0_482] : memref<7x4x8x32xf32, #tpu.memory_space<vmem>>, vector<1x1x8x32xf32>
    %552 = vector.shape_cast %551 : vector<1x1x8x32xf32> to vector<8x32xf32>
    %cst_483 = arith.constant dense<0.000000e+00> : vector<8x32xf32>
    %553 = tpu.matmul %550, %552, %cst_483 {dimension_numbers = #tpu.dot_dimension_numbers<[1], [0], [0], [1], [0, 0, 1, 1], [], []>} : vector<8x8xf32>, vector<8x32xf32>, vector<8x32xf32> -> vector<8x32xf32>
    %554 = arith.addf %525, %553 : vector<8x32xf32>
    %c0_484 = arith.constant 0 : index
    %c2_485 = arith.constant 2 : index
    %c0_486 = arith.constant 0 : index
    %c0_487 = arith.constant 0 : index
    %555 = vector.load %arg2[%c0_484, %c2_485, %c0_486, %c0_487] : memref<7x4x32x8xf32, #tpu.memory_space<vmem>>, vector<1x1x32x8xf32>
    %556 = vector.shape_cast %555 : vector<1x1x32x8xf32> to vector<32x8xf32>
    %cst_488 = arith.constant dense<0.000000e+00> : vector<8x8xf32>
    %557 = tpu.matmul %1, %556, %cst_488 {dimension_numbers = #tpu.dot_dimension_numbers<[1], [0], [0], [1], [0, 0, 1, 1], [], []>} : vector<8x32xf32>, vector<32x8xf32>, vector<8x8xf32> -> vector<8x8xf32>
    %c0_489 = arith.constant 0 : index
    %c2_490 = arith.constant 2 : index
    %c0_491 = arith.constant 0 : index
    %c0_492 = arith.constant 0 : index
    %558 = vector.load %arg3[%c0_489, %c2_490, %c0_491, %c0_492] : memref<7x4x32x8xf32, #tpu.memory_space<vmem>>, vector<1x1x32x8xf32>
    %559 = vector.shape_cast %558 : vector<1x1x32x8xf32> to vector<32x8xf32>
    %cst_493 = arith.constant dense<0.000000e+00> : vector<8x8xf32>
    %560 = tpu.matmul %1, %559, %cst_493 {dimension_numbers = #tpu.dot_dimension_numbers<[1], [0], [0], [1], [0, 0, 1, 1], [], []>} : vector<8x32xf32>, vector<32x8xf32>, vector<8x8xf32> -> vector<8x8xf32>
    %c0_494 = arith.constant 0 : index
    %c2_495 = arith.constant 2 : index
    %c0_496 = arith.constant 0 : index
    %c0_497 = arith.constant 0 : index
    %561 = vector.load %arg4[%c0_494, %c2_495, %c0_496, %c0_497] : memref<7x4x32x8xf32, #tpu.memory_space<vmem>>, vector<1x1x32x8xf32>
    %562 = vector.shape_cast %561 : vector<1x1x32x8xf32> to vector<32x8xf32>
    %cst_498 = arith.constant dense<0.000000e+00> : vector<8x8xf32>
    %563 = tpu.matmul %1, %562, %cst_498 {dimension_numbers = #tpu.dot_dimension_numbers<[1], [0], [0], [1], [0, 0, 1, 1], [], []>} : vector<8x32xf32>, vector<32x8xf32>, vector<8x8xf32> -> vector<8x8xf32>
    %cst_499 = arith.constant dense<0.000000e+00> : vector<8x8xf32>
    %564 = tpu.matmul %557, %560, %cst_499 {dimension_numbers = #tpu.dot_dimension_numbers<[1], [1], [0], [0], [0, 0, 1, 0], [], []>} : vector<8x8xf32>, vector<8x8xf32>, vector<8x8xf32> -> vector<8x8xf32>
    %cst_500 = arith.constant 0.176776692 : f32
    %565 = vector.broadcast %cst_500 : f32 to vector<8x8xf32>
    %566 = arith.mulf %564, %565 : vector<8x8xf32>
    %cst_501 = arith.constant -1.000000e+30 : f32
    %567 = vector.broadcast %cst_501 : f32 to vector<8x8xf32>
    %568 = arith.select %4, %566, %567 : vector<8x8xi1>, vector<8x8xf32>
    %cst_502 = arith.constant dense<0xFF800000> : vector<8xf32>
    %569 = vector.multi_reduction <maximumf>, %568, %cst_502 [1] : vector<8x8xf32> to vector<8xf32>
    %570 = vector.shape_cast %569 : vector<8xf32> to vector<8x1xf32>
    %571 = vector.broadcast %570 : vector<8x1xf32> to vector<8x8xf32>
    %572 = arith.subf %568, %571 : vector<8x8xf32>
    %573 = math.exp %572 : vector<8x8xf32>
    %cst_503 = arith.constant dense<0.000000e+00> : vector<8xf32>
    %574 = vector.multi_reduction <add>, %573, %cst_503 [1] : vector<8x8xf32> to vector<8xf32>
    %575 = vector.shape_cast %574 : vector<8xf32> to vector<8x1xf32>
    %576 = tpu.reciprocal %575 {approx = true} : vector<8x1xf32> -> vector<8x1xf32>
    %577 = vector.broadcast %576 : vector<8x1xf32> to vector<8x8xf32>
    %578 = arith.mulf %573, %577 : vector<8x8xf32>
    %cst_504 = arith.constant dense<0.000000e+00> : vector<8x8xf32>
    %579 = tpu.matmul %578, %563, %cst_504 {dimension_numbers = #tpu.dot_dimension_numbers<[1], [0], [0], [1], [0, 0, 1, 1], [], []>} : vector<8x8xf32>, vector<8x8xf32>, vector<8x8xf32> -> vector<8x8xf32>
    %c0_505 = arith.constant 0 : index
    %c2_506 = arith.constant 2 : index
    %c0_507 = arith.constant 0 : index
    %c0_508 = arith.constant 0 : index
    %580 = vector.load %arg5[%c0_505, %c2_506, %c0_507, %c0_508] : memref<7x4x8x32xf32, #tpu.memory_space<vmem>>, vector<1x1x8x32xf32>
    %581 = vector.shape_cast %580 : vector<1x1x8x32xf32> to vector<8x32xf32>
    %cst_509 = arith.constant dense<0.000000e+00> : vector<8x32xf32>
    %582 = tpu.matmul %579, %581, %cst_509 {dimension_numbers = #tpu.dot_dimension_numbers<[1], [0], [0], [1], [0, 0, 1, 1], [], []>} : vector<8x8xf32>, vector<8x32xf32>, vector<8x32xf32> -> vector<8x32xf32>
    %583 = arith.addf %554, %582 : vector<8x32xf32>
    %c0_510 = arith.constant 0 : index
    %c3_511 = arith.constant 3 : index
    %c0_512 = arith.constant 0 : index
    %c0_513 = arith.constant 0 : index
    %584 = vector.load %arg2[%c0_510, %c3_511, %c0_512, %c0_513] : memref<7x4x32x8xf32, #tpu.memory_space<vmem>>, vector<1x1x32x8xf32>
    %585 = vector.shape_cast %584 : vector<1x1x32x8xf32> to vector<32x8xf32>
    %cst_514 = arith.constant dense<0.000000e+00> : vector<8x8xf32>
    %586 = tpu.matmul %1, %585, %cst_514 {dimension_numbers = #tpu.dot_dimension_numbers<[1], [0], [0], [1], [0, 0, 1, 1], [], []>} : vector<8x32xf32>, vector<32x8xf32>, vector<8x8xf32> -> vector<8x8xf32>
    %c0_515 = arith.constant 0 : index
    %c3_516 = arith.constant 3 : index
    %c0_517 = arith.constant 0 : index
    %c0_518 = arith.constant 0 : index
    %587 = vector.load %arg3[%c0_515, %c3_516, %c0_517, %c0_518] : memref<7x4x32x8xf32, #tpu.memory_space<vmem>>, vector<1x1x32x8xf32>
    %588 = vector.shape_cast %587 : vector<1x1x32x8xf32> to vector<32x8xf32>
    %cst_519 = arith.constant dense<0.000000e+00> : vector<8x8xf32>
    %589 = tpu.matmul %1, %588, %cst_519 {dimension_numbers = #tpu.dot_dimension_numbers<[1], [0], [0], [1], [0, 0, 1, 1], [], []>} : vector<8x32xf32>, vector<32x8xf32>, vector<8x8xf32> -> vector<8x8xf32>
    %c0_520 = arith.constant 0 : index
    %c3_521 = arith.constant 3 : index
    %c0_522 = arith.constant 0 : index
    %c0_523 = arith.constant 0 : index
    %590 = vector.load %arg4[%c0_520, %c3_521, %c0_522, %c0_523] : memref<7x4x32x8xf32, #tpu.memory_space<vmem>>, vector<1x1x32x8xf32>
    %591 = vector.shape_cast %590 : vector<1x1x32x8xf32> to vector<32x8xf32>
    %cst_524 = arith.constant dense<0.000000e+00> : vector<8x8xf32>
    %592 = tpu.matmul %1, %591, %cst_524 {dimension_numbers = #tpu.dot_dimension_numbers<[1], [0], [0], [1], [0, 0, 1, 1], [], []>} : vector<8x32xf32>, vector<32x8xf32>, vector<8x8xf32> -> vector<8x8xf32>
    %cst_525 = arith.constant dense<0.000000e+00> : vector<8x8xf32>
    %593 = tpu.matmul %586, %589, %cst_525 {dimension_numbers = #tpu.dot_dimension_numbers<[1], [1], [0], [0], [0, 0, 1, 0], [], []>} : vector<8x8xf32>, vector<8x8xf32>, vector<8x8xf32> -> vector<8x8xf32>
    %cst_526 = arith.constant 0.176776692 : f32
    %594 = vector.broadcast %cst_526 : f32 to vector<8x8xf32>
    %595 = arith.mulf %593, %594 : vector<8x8xf32>
    %cst_527 = arith.constant -1.000000e+30 : f32
    %596 = vector.broadcast %cst_527 : f32 to vector<8x8xf32>
    %597 = arith.select %4, %595, %596 : vector<8x8xi1>, vector<8x8xf32>
    %cst_528 = arith.constant dense<0xFF800000> : vector<8xf32>
    %598 = vector.multi_reduction <maximumf>, %597, %cst_528 [1] : vector<8x8xf32> to vector<8xf32>
    %599 = vector.shape_cast %598 : vector<8xf32> to vector<8x1xf32>
    %600 = vector.broadcast %599 : vector<8x1xf32> to vector<8x8xf32>
    %601 = arith.subf %597, %600 : vector<8x8xf32>
    %602 = math.exp %601 : vector<8x8xf32>
    %cst_529 = arith.constant dense<0.000000e+00> : vector<8xf32>
    %603 = vector.multi_reduction <add>, %602, %cst_529 [1] : vector<8x8xf32> to vector<8xf32>
    %604 = vector.shape_cast %603 : vector<8xf32> to vector<8x1xf32>
    %605 = tpu.reciprocal %604 {approx = true} : vector<8x1xf32> -> vector<8x1xf32>
    %606 = vector.broadcast %605 : vector<8x1xf32> to vector<8x8xf32>
    %607 = arith.mulf %602, %606 : vector<8x8xf32>
    %cst_530 = arith.constant dense<0.000000e+00> : vector<8x8xf32>
    %608 = tpu.matmul %607, %592, %cst_530 {dimension_numbers = #tpu.dot_dimension_numbers<[1], [0], [0], [1], [0, 0, 1, 1], [], []>} : vector<8x8xf32>, vector<8x8xf32>, vector<8x8xf32> -> vector<8x8xf32>
    %c0_531 = arith.constant 0 : index
    %c3_532 = arith.constant 3 : index
    %c0_533 = arith.constant 0 : index
    %c0_534 = arith.constant 0 : index
    %609 = vector.load %arg5[%c0_531, %c3_532, %c0_533, %c0_534] : memref<7x4x8x32xf32, #tpu.memory_space<vmem>>, vector<1x1x8x32xf32>
    %610 = vector.shape_cast %609 : vector<1x1x8x32xf32> to vector<8x32xf32>
    %cst_535 = arith.constant dense<0.000000e+00> : vector<8x32xf32>
    %611 = tpu.matmul %608, %610, %cst_535 {dimension_numbers = #tpu.dot_dimension_numbers<[1], [0], [0], [1], [0, 0, 1, 1], [], []>} : vector<8x8xf32>, vector<8x32xf32>, vector<8x32xf32> -> vector<8x32xf32>
    %612 = arith.addf %583, %611 : vector<8x32xf32>
    %c0_536 = arith.constant 0 : index
    %c0_537 = arith.constant 0 : index
    %c0_538 = arith.constant 0 : index
    %613 = vector.load %arg6[%c0_536, %c0_537, %c0_538] : memref<7x1x32xf32, #tpu.memory_space<vmem>>, vector<1x1x32xf32>
    %614 = vector.shape_cast %613 : vector<1x1x32xf32> to vector<1x32xf32>
    %615 = vector.broadcast %614 : vector<1x32xf32> to vector<8x32xf32>
    %616 = arith.addf %612, %615 : vector<8x32xf32>
    %cst_539 = arith.constant 0.000000e+00 : f32
    %617 = vector.broadcast %cst_539 : f32 to vector<8x32xf32>
    %c2_540 = arith.constant 2 : index
    %c0_541 = arith.constant 0 : index
    %c0_542 = arith.constant 0 : index
    %c0_543 = arith.constant 0 : index
    %618 = vector.load %arg2[%c2_540, %c0_541, %c0_542, %c0_543] : memref<7x4x32x8xf32, #tpu.memory_space<vmem>>, vector<1x1x32x8xf32>
    %619 = vector.shape_cast %618 : vector<1x1x32x8xf32> to vector<32x8xf32>
    %cst_544 = arith.constant dense<0.000000e+00> : vector<8x8xf32>
    %620 = tpu.matmul %372, %619, %cst_544 {dimension_numbers = #tpu.dot_dimension_numbers<[1], [0], [0], [1], [0, 0, 1, 1], [], []>} : vector<8x32xf32>, vector<32x8xf32>, vector<8x8xf32> -> vector<8x8xf32>
    %c2_545 = arith.constant 2 : index
    %c0_546 = arith.constant 0 : index
    %c0_547 = arith.constant 0 : index
    %c0_548 = arith.constant 0 : index
    %621 = vector.load %arg3[%c2_545, %c0_546, %c0_547, %c0_548] : memref<7x4x32x8xf32, #tpu.memory_space<vmem>>, vector<1x1x32x8xf32>
    %622 = vector.shape_cast %621 : vector<1x1x32x8xf32> to vector<32x8xf32>
    %cst_549 = arith.constant dense<0.000000e+00> : vector<8x8xf32>
    %623 = tpu.matmul %372, %622, %cst_549 {dimension_numbers = #tpu.dot_dimension_numbers<[1], [0], [0], [1], [0, 0, 1, 1], [], []>} : vector<8x32xf32>, vector<32x8xf32>, vector<8x8xf32> -> vector<8x8xf32>
    %c2_550 = arith.constant 2 : index
    %c0_551 = arith.constant 0 : index
    %c0_552 = arith.constant 0 : index
    %c0_553 = arith.constant 0 : index
    %624 = vector.load %arg4[%c2_550, %c0_551, %c0_552, %c0_553] : memref<7x4x32x8xf32, #tpu.memory_space<vmem>>, vector<1x1x32x8xf32>
    %625 = vector.shape_cast %624 : vector<1x1x32x8xf32> to vector<32x8xf32>
    %cst_554 = arith.constant dense<0.000000e+00> : vector<8x8xf32>
    %626 = tpu.matmul %372, %625, %cst_554 {dimension_numbers = #tpu.dot_dimension_numbers<[1], [0], [0], [1], [0, 0, 1, 1], [], []>} : vector<8x32xf32>, vector<32x8xf32>, vector<8x8xf32> -> vector<8x8xf32>
    %cst_555 = arith.constant dense<0.000000e+00> : vector<8x8xf32>
    %627 = tpu.matmul %620, %623, %cst_555 {dimension_numbers = #tpu.dot_dimension_numbers<[1], [1], [0], [0], [0, 0, 1, 0], [], []>} : vector<8x8xf32>, vector<8x8xf32>, vector<8x8xf32> -> vector<8x8xf32>
    %cst_556 = arith.constant 0.176776692 : f32
    %628 = vector.broadcast %cst_556 : f32 to vector<8x8xf32>
    %629 = arith.mulf %627, %628 : vector<8x8xf32>
    %cst_557 = arith.constant -1.000000e+30 : f32
    %630 = vector.broadcast %cst_557 : f32 to vector<8x8xf32>
    %631 = arith.select %4, %629, %630 : vector<8x8xi1>, vector<8x8xf32>
    %cst_558 = arith.constant dense<0xFF800000> : vector<8xf32>
    %632 = vector.multi_reduction <maximumf>, %631, %cst_558 [1] : vector<8x8xf32> to vector<8xf32>
    %633 = vector.shape_cast %632 : vector<8xf32> to vector<8x1xf32>
    %634 = vector.broadcast %633 : vector<8x1xf32> to vector<8x8xf32>
    %635 = arith.subf %631, %634 : vector<8x8xf32>
    %636 = math.exp %635 : vector<8x8xf32>
    %cst_559 = arith.constant dense<0.000000e+00> : vector<8xf32>
    %637 = vector.multi_reduction <add>, %636, %cst_559 [1] : vector<8x8xf32> to vector<8xf32>
    %638 = vector.shape_cast %637 : vector<8xf32> to vector<8x1xf32>
    %639 = tpu.reciprocal %638 {approx = true} : vector<8x1xf32> -> vector<8x1xf32>
    %640 = vector.broadcast %639 : vector<8x1xf32> to vector<8x8xf32>
    %641 = arith.mulf %636, %640 : vector<8x8xf32>
    %cst_560 = arith.constant dense<0.000000e+00> : vector<8x8xf32>
    %642 = tpu.matmul %641, %626, %cst_560 {dimension_numbers = #tpu.dot_dimension_numbers<[1], [0], [0], [1], [0, 0, 1, 1], [], []>} : vector<8x8xf32>, vector<8x8xf32>, vector<8x8xf32> -> vector<8x8xf32>
    %c2_561 = arith.constant 2 : index
    %c0_562 = arith.constant 0 : index
    %c0_563 = arith.constant 0 : index
    %c0_564 = arith.constant 0 : index
    %643 = vector.load %arg5[%c2_561, %c0_562, %c0_563, %c0_564] : memref<7x4x8x32xf32, #tpu.memory_space<vmem>>, vector<1x1x8x32xf32>
    %644 = vector.shape_cast %643 : vector<1x1x8x32xf32> to vector<8x32xf32>
    %cst_565 = arith.constant dense<0.000000e+00> : vector<8x32xf32>
    %645 = tpu.matmul %642, %644, %cst_565 {dimension_numbers = #tpu.dot_dimension_numbers<[1], [0], [0], [1], [0, 0, 1, 1], [], []>} : vector<8x8xf32>, vector<8x32xf32>, vector<8x32xf32> -> vector<8x32xf32>
    %646 = arith.addf %617, %645 : vector<8x32xf32>
    %c2_566 = arith.constant 2 : index
    %c1_567 = arith.constant 1 : index
    %c0_568 = arith.constant 0 : index
    %c0_569 = arith.constant 0 : index
    %647 = vector.load %arg2[%c2_566, %c1_567, %c0_568, %c0_569] : memref<7x4x32x8xf32, #tpu.memory_space<vmem>>, vector<1x1x32x8xf32>
    %648 = vector.shape_cast %647 : vector<1x1x32x8xf32> to vector<32x8xf32>
    %cst_570 = arith.constant dense<0.000000e+00> : vector<8x8xf32>
    %649 = tpu.matmul %372, %648, %cst_570 {dimension_numbers = #tpu.dot_dimension_numbers<[1], [0], [0], [1], [0, 0, 1, 1], [], []>} : vector<8x32xf32>, vector<32x8xf32>, vector<8x8xf32> -> vector<8x8xf32>
    %c2_571 = arith.constant 2 : index
    %c1_572 = arith.constant 1 : index
    %c0_573 = arith.constant 0 : index
    %c0_574 = arith.constant 0 : index
    %650 = vector.load %arg3[%c2_571, %c1_572, %c0_573, %c0_574] : memref<7x4x32x8xf32, #tpu.memory_space<vmem>>, vector<1x1x32x8xf32>
    %651 = vector.shape_cast %650 : vector<1x1x32x8xf32> to vector<32x8xf32>
    %cst_575 = arith.constant dense<0.000000e+00> : vector<8x8xf32>
    %652 = tpu.matmul %372, %651, %cst_575 {dimension_numbers = #tpu.dot_dimension_numbers<[1], [0], [0], [1], [0, 0, 1, 1], [], []>} : vector<8x32xf32>, vector<32x8xf32>, vector<8x8xf32> -> vector<8x8xf32>
    %c2_576 = arith.constant 2 : index
    %c1_577 = arith.constant 1 : index
    %c0_578 = arith.constant 0 : index
    %c0_579 = arith.constant 0 : index
    %653 = vector.load %arg4[%c2_576, %c1_577, %c0_578, %c0_579] : memref<7x4x32x8xf32, #tpu.memory_space<vmem>>, vector<1x1x32x8xf32>
    %654 = vector.shape_cast %653 : vector<1x1x32x8xf32> to vector<32x8xf32>
    %cst_580 = arith.constant dense<0.000000e+00> : vector<8x8xf32>
    %655 = tpu.matmul %372, %654, %cst_580 {dimension_numbers = #tpu.dot_dimension_numbers<[1], [0], [0], [1], [0, 0, 1, 1], [], []>} : vector<8x32xf32>, vector<32x8xf32>, vector<8x8xf32> -> vector<8x8xf32>
    %cst_581 = arith.constant dense<0.000000e+00> : vector<8x8xf32>
    %656 = tpu.matmul %649, %652, %cst_581 {dimension_numbers = #tpu.dot_dimension_numbers<[1], [1], [0], [0], [0, 0, 1, 0], [], []>} : vector<8x8xf32>, vector<8x8xf32>, vector<8x8xf32> -> vector<8x8xf32>
    %cst_582 = arith.constant 0.176776692 : f32
    %657 = vector.broadcast %cst_582 : f32 to vector<8x8xf32>
    %658 = arith.mulf %656, %657 : vector<8x8xf32>
    %cst_583 = arith.constant -1.000000e+30 : f32
    %659 = vector.broadcast %cst_583 : f32 to vector<8x8xf32>
    %660 = arith.select %4, %658, %659 : vector<8x8xi1>, vector<8x8xf32>
    %cst_584 = arith.constant dense<0xFF800000> : vector<8xf32>
    %661 = vector.multi_reduction <maximumf>, %660, %cst_584 [1] : vector<8x8xf32> to vector<8xf32>
    %662 = vector.shape_cast %661 : vector<8xf32> to vector<8x1xf32>
    %663 = vector.broadcast %662 : vector<8x1xf32> to vector<8x8xf32>
    %664 = arith.subf %660, %663 : vector<8x8xf32>
    %665 = math.exp %664 : vector<8x8xf32>
    %cst_585 = arith.constant dense<0.000000e+00> : vector<8xf32>
    %666 = vector.multi_reduction <add>, %665, %cst_585 [1] : vector<8x8xf32> to vector<8xf32>
    %667 = vector.shape_cast %666 : vector<8xf32> to vector<8x1xf32>
    %668 = tpu.reciprocal %667 {approx = true} : vector<8x1xf32> -> vector<8x1xf32>
    %669 = vector.broadcast %668 : vector<8x1xf32> to vector<8x8xf32>
    %670 = arith.mulf %665, %669 : vector<8x8xf32>
    %cst_586 = arith.constant dense<0.000000e+00> : vector<8x8xf32>
    %671 = tpu.matmul %670, %655, %cst_586 {dimension_numbers = #tpu.dot_dimension_numbers<[1], [0], [0], [1], [0, 0, 1, 1], [], []>} : vector<8x8xf32>, vector<8x8xf32>, vector<8x8xf32> -> vector<8x8xf32>
    %c2_587 = arith.constant 2 : index
    %c1_588 = arith.constant 1 : index
    %c0_589 = arith.constant 0 : index
    %c0_590 = arith.constant 0 : index
    %672 = vector.load %arg5[%c2_587, %c1_588, %c0_589, %c0_590] : memref<7x4x8x32xf32, #tpu.memory_space<vmem>>, vector<1x1x8x32xf32>
    %673 = vector.shape_cast %672 : vector<1x1x8x32xf32> to vector<8x32xf32>
    %cst_591 = arith.constant dense<0.000000e+00> : vector<8x32xf32>
    %674 = tpu.matmul %671, %673, %cst_591 {dimension_numbers = #tpu.dot_dimension_numbers<[1], [0], [0], [1], [0, 0, 1, 1], [], []>} : vector<8x8xf32>, vector<8x32xf32>, vector<8x32xf32> -> vector<8x32xf32>
    %675 = arith.addf %646, %674 : vector<8x32xf32>
    %c2_592 = arith.constant 2 : index
    %c2_593 = arith.constant 2 : index
    %c0_594 = arith.constant 0 : index
    %c0_595 = arith.constant 0 : index
    %676 = vector.load %arg2[%c2_592, %c2_593, %c0_594, %c0_595] : memref<7x4x32x8xf32, #tpu.memory_space<vmem>>, vector<1x1x32x8xf32>
    %677 = vector.shape_cast %676 : vector<1x1x32x8xf32> to vector<32x8xf32>
    %cst_596 = arith.constant dense<0.000000e+00> : vector<8x8xf32>
    %678 = tpu.matmul %372, %677, %cst_596 {dimension_numbers = #tpu.dot_dimension_numbers<[1], [0], [0], [1], [0, 0, 1, 1], [], []>} : vector<8x32xf32>, vector<32x8xf32>, vector<8x8xf32> -> vector<8x8xf32>
    %c2_597 = arith.constant 2 : index
    %c2_598 = arith.constant 2 : index
    %c0_599 = arith.constant 0 : index
    %c0_600 = arith.constant 0 : index
    %679 = vector.load %arg3[%c2_597, %c2_598, %c0_599, %c0_600] : memref<7x4x32x8xf32, #tpu.memory_space<vmem>>, vector<1x1x32x8xf32>
    %680 = vector.shape_cast %679 : vector<1x1x32x8xf32> to vector<32x8xf32>
    %cst_601 = arith.constant dense<0.000000e+00> : vector<8x8xf32>
    %681 = tpu.matmul %372, %680, %cst_601 {dimension_numbers = #tpu.dot_dimension_numbers<[1], [0], [0], [1], [0, 0, 1, 1], [], []>} : vector<8x32xf32>, vector<32x8xf32>, vector<8x8xf32> -> vector<8x8xf32>
    %c2_602 = arith.constant 2 : index
    %c2_603 = arith.constant 2 : index
    %c0_604 = arith.constant 0 : index
    %c0_605 = arith.constant 0 : index
    %682 = vector.load %arg4[%c2_602, %c2_603, %c0_604, %c0_605] : memref<7x4x32x8xf32, #tpu.memory_space<vmem>>, vector<1x1x32x8xf32>
    %683 = vector.shape_cast %682 : vector<1x1x32x8xf32> to vector<32x8xf32>
    %cst_606 = arith.constant dense<0.000000e+00> : vector<8x8xf32>
    %684 = tpu.matmul %372, %683, %cst_606 {dimension_numbers = #tpu.dot_dimension_numbers<[1], [0], [0], [1], [0, 0, 1, 1], [], []>} : vector<8x32xf32>, vector<32x8xf32>, vector<8x8xf32> -> vector<8x8xf32>
    %cst_607 = arith.constant dense<0.000000e+00> : vector<8x8xf32>
    %685 = tpu.matmul %678, %681, %cst_607 {dimension_numbers = #tpu.dot_dimension_numbers<[1], [1], [0], [0], [0, 0, 1, 0], [], []>} : vector<8x8xf32>, vector<8x8xf32>, vector<8x8xf32> -> vector<8x8xf32>
    %cst_608 = arith.constant 0.176776692 : f32
    %686 = vector.broadcast %cst_608 : f32 to vector<8x8xf32>
    %687 = arith.mulf %685, %686 : vector<8x8xf32>
    %cst_609 = arith.constant -1.000000e+30 : f32
    %688 = vector.broadcast %cst_609 : f32 to vector<8x8xf32>
    %689 = arith.select %4, %687, %688 : vector<8x8xi1>, vector<8x8xf32>
    %cst_610 = arith.constant dense<0xFF800000> : vector<8xf32>
    %690 = vector.multi_reduction <maximumf>, %689, %cst_610 [1] : vector<8x8xf32> to vector<8xf32>
    %691 = vector.shape_cast %690 : vector<8xf32> to vector<8x1xf32>
    %692 = vector.broadcast %691 : vector<8x1xf32> to vector<8x8xf32>
    %693 = arith.subf %689, %692 : vector<8x8xf32>
    %694 = math.exp %693 : vector<8x8xf32>
    %cst_611 = arith.constant dense<0.000000e+00> : vector<8xf32>
    %695 = vector.multi_reduction <add>, %694, %cst_611 [1] : vector<8x8xf32> to vector<8xf32>
    %696 = vector.shape_cast %695 : vector<8xf32> to vector<8x1xf32>
    %697 = tpu.reciprocal %696 {approx = true} : vector<8x1xf32> -> vector<8x1xf32>
    %698 = vector.broadcast %697 : vector<8x1xf32> to vector<8x8xf32>
    %699 = arith.mulf %694, %698 : vector<8x8xf32>
    %cst_612 = arith.constant dense<0.000000e+00> : vector<8x8xf32>
    %700 = tpu.matmul %699, %684, %cst_612 {dimension_numbers = #tpu.dot_dimension_numbers<[1], [0], [0], [1], [0, 0, 1, 1], [], []>} : vector<8x8xf32>, vector<8x8xf32>, vector<8x8xf32> -> vector<8x8xf32>
    %c2_613 = arith.constant 2 : index
    %c2_614 = arith.constant 2 : index
    %c0_615 = arith.constant 0 : index
    %c0_616 = arith.constant 0 : index
    %701 = vector.load %arg5[%c2_613, %c2_614, %c0_615, %c0_616] : memref<7x4x8x32xf32, #tpu.memory_space<vmem>>, vector<1x1x8x32xf32>
    %702 = vector.shape_cast %701 : vector<1x1x8x32xf32> to vector<8x32xf32>
    %cst_617 = arith.constant dense<0.000000e+00> : vector<8x32xf32>
    %703 = tpu.matmul %700, %702, %cst_617 {dimension_numbers = #tpu.dot_dimension_numbers<[1], [0], [0], [1], [0, 0, 1, 1], [], []>} : vector<8x8xf32>, vector<8x32xf32>, vector<8x32xf32> -> vector<8x32xf32>
    %704 = arith.addf %675, %703 : vector<8x32xf32>
    %c2_618 = arith.constant 2 : index
    %c3_619 = arith.constant 3 : index
    %c0_620 = arith.constant 0 : index
    %c0_621 = arith.constant 0 : index
    %705 = vector.load %arg2[%c2_618, %c3_619, %c0_620, %c0_621] : memref<7x4x32x8xf32, #tpu.memory_space<vmem>>, vector<1x1x32x8xf32>
    %706 = vector.shape_cast %705 : vector<1x1x32x8xf32> to vector<32x8xf32>
    %cst_622 = arith.constant dense<0.000000e+00> : vector<8x8xf32>
    %707 = tpu.matmul %372, %706, %cst_622 {dimension_numbers = #tpu.dot_dimension_numbers<[1], [0], [0], [1], [0, 0, 1, 1], [], []>} : vector<8x32xf32>, vector<32x8xf32>, vector<8x8xf32> -> vector<8x8xf32>
    %c2_623 = arith.constant 2 : index
    %c3_624 = arith.constant 3 : index
    %c0_625 = arith.constant 0 : index
    %c0_626 = arith.constant 0 : index
    %708 = vector.load %arg3[%c2_623, %c3_624, %c0_625, %c0_626] : memref<7x4x32x8xf32, #tpu.memory_space<vmem>>, vector<1x1x32x8xf32>
    %709 = vector.shape_cast %708 : vector<1x1x32x8xf32> to vector<32x8xf32>
    %cst_627 = arith.constant dense<0.000000e+00> : vector<8x8xf32>
    %710 = tpu.matmul %372, %709, %cst_627 {dimension_numbers = #tpu.dot_dimension_numbers<[1], [0], [0], [1], [0, 0, 1, 1], [], []>} : vector<8x32xf32>, vector<32x8xf32>, vector<8x8xf32> -> vector<8x8xf32>
    %c2_628 = arith.constant 2 : index
    %c3_629 = arith.constant 3 : index
    %c0_630 = arith.constant 0 : index
    %c0_631 = arith.constant 0 : index
    %711 = vector.load %arg4[%c2_628, %c3_629, %c0_630, %c0_631] : memref<7x4x32x8xf32, #tpu.memory_space<vmem>>, vector<1x1x32x8xf32>
    %712 = vector.shape_cast %711 : vector<1x1x32x8xf32> to vector<32x8xf32>
    %cst_632 = arith.constant dense<0.000000e+00> : vector<8x8xf32>
    %713 = tpu.matmul %372, %712, %cst_632 {dimension_numbers = #tpu.dot_dimension_numbers<[1], [0], [0], [1], [0, 0, 1, 1], [], []>} : vector<8x32xf32>, vector<32x8xf32>, vector<8x8xf32> -> vector<8x8xf32>
    %cst_633 = arith.constant dense<0.000000e+00> : vector<8x8xf32>
    %714 = tpu.matmul %707, %710, %cst_633 {dimension_numbers = #tpu.dot_dimension_numbers<[1], [1], [0], [0], [0, 0, 1, 0], [], []>} : vector<8x8xf32>, vector<8x8xf32>, vector<8x8xf32> -> vector<8x8xf32>
    %cst_634 = arith.constant 0.176776692 : f32
    %715 = vector.broadcast %cst_634 : f32 to vector<8x8xf32>
    %716 = arith.mulf %714, %715 : vector<8x8xf32>
    %cst_635 = arith.constant -1.000000e+30 : f32
    %717 = vector.broadcast %cst_635 : f32 to vector<8x8xf32>
    %718 = arith.select %4, %716, %717 : vector<8x8xi1>, vector<8x8xf32>
    %cst_636 = arith.constant dense<0xFF800000> : vector<8xf32>
    %719 = vector.multi_reduction <maximumf>, %718, %cst_636 [1] : vector<8x8xf32> to vector<8xf32>
    %720 = vector.shape_cast %719 : vector<8xf32> to vector<8x1xf32>
    %721 = vector.broadcast %720 : vector<8x1xf32> to vector<8x8xf32>
    %722 = arith.subf %718, %721 : vector<8x8xf32>
    %723 = math.exp %722 : vector<8x8xf32>
    %cst_637 = arith.constant dense<0.000000e+00> : vector<8xf32>
    %724 = vector.multi_reduction <add>, %723, %cst_637 [1] : vector<8x8xf32> to vector<8xf32>
    %725 = vector.shape_cast %724 : vector<8xf32> to vector<8x1xf32>
    %726 = tpu.reciprocal %725 {approx = true} : vector<8x1xf32> -> vector<8x1xf32>
    %727 = vector.broadcast %726 : vector<8x1xf32> to vector<8x8xf32>
    %728 = arith.mulf %723, %727 : vector<8x8xf32>
    %cst_638 = arith.constant dense<0.000000e+00> : vector<8x8xf32>
    %729 = tpu.matmul %728, %713, %cst_638 {dimension_numbers = #tpu.dot_dimension_numbers<[1], [0], [0], [1], [0, 0, 1, 1], [], []>} : vector<8x8xf32>, vector<8x8xf32>, vector<8x8xf32> -> vector<8x8xf32>
    %c2_639 = arith.constant 2 : index
    %c3_640 = arith.constant 3 : index
    %c0_641 = arith.constant 0 : index
    %c0_642 = arith.constant 0 : index
    %730 = vector.load %arg5[%c2_639, %c3_640, %c0_641, %c0_642] : memref<7x4x8x32xf32, #tpu.memory_space<vmem>>, vector<1x1x8x32xf32>
    %731 = vector.shape_cast %730 : vector<1x1x8x32xf32> to vector<8x32xf32>
    %cst_643 = arith.constant dense<0.000000e+00> : vector<8x32xf32>
    %732 = tpu.matmul %729, %731, %cst_643 {dimension_numbers = #tpu.dot_dimension_numbers<[1], [0], [0], [1], [0, 0, 1, 1], [], []>} : vector<8x8xf32>, vector<8x32xf32>, vector<8x32xf32> -> vector<8x32xf32>
    %733 = arith.addf %704, %732 : vector<8x32xf32>
    %c2_644 = arith.constant 2 : index
    %c0_645 = arith.constant 0 : index
    %c0_646 = arith.constant 0 : index
    %734 = vector.load %arg6[%c2_644, %c0_645, %c0_646] : memref<7x1x32xf32, #tpu.memory_space<vmem>>, vector<1x1x32xf32>
    %735 = vector.shape_cast %734 : vector<1x1x32xf32> to vector<1x32xf32>
    %736 = vector.broadcast %735 : vector<1x32xf32> to vector<8x32xf32>
    %737 = arith.addf %733, %736 : vector<8x32xf32>
    %cst_647 = arith.constant 0.000000e+00 : f32
    %738 = vector.broadcast %cst_647 : f32 to vector<8x32xf32>
    %c6 = arith.constant 6 : index
    %c0_648 = arith.constant 0 : index
    %c0_649 = arith.constant 0 : index
    %c0_650 = arith.constant 0 : index
    %739 = vector.load %arg2[%c6, %c0_648, %c0_649, %c0_650] : memref<7x4x32x8xf32, #tpu.memory_space<vmem>>, vector<1x1x32x8xf32>
    %740 = vector.shape_cast %739 : vector<1x1x32x8xf32> to vector<32x8xf32>
    %cst_651 = arith.constant dense<0.000000e+00> : vector<8x8xf32>
    %741 = tpu.matmul %495, %740, %cst_651 {dimension_numbers = #tpu.dot_dimension_numbers<[1], [0], [0], [1], [0, 0, 1, 1], [], []>} : vector<8x32xf32>, vector<32x8xf32>, vector<8x8xf32> -> vector<8x8xf32>
    %c6_652 = arith.constant 6 : index
    %c0_653 = arith.constant 0 : index
    %c0_654 = arith.constant 0 : index
    %c0_655 = arith.constant 0 : index
    %742 = vector.load %arg3[%c6_652, %c0_653, %c0_654, %c0_655] : memref<7x4x32x8xf32, #tpu.memory_space<vmem>>, vector<1x1x32x8xf32>
    %743 = vector.shape_cast %742 : vector<1x1x32x8xf32> to vector<32x8xf32>
    %cst_656 = arith.constant dense<0.000000e+00> : vector<8x8xf32>
    %744 = tpu.matmul %495, %743, %cst_656 {dimension_numbers = #tpu.dot_dimension_numbers<[1], [0], [0], [1], [0, 0, 1, 1], [], []>} : vector<8x32xf32>, vector<32x8xf32>, vector<8x8xf32> -> vector<8x8xf32>
    %c6_657 = arith.constant 6 : index
    %c0_658 = arith.constant 0 : index
    %c0_659 = arith.constant 0 : index
    %c0_660 = arith.constant 0 : index
    %745 = vector.load %arg4[%c6_657, %c0_658, %c0_659, %c0_660] : memref<7x4x32x8xf32, #tpu.memory_space<vmem>>, vector<1x1x32x8xf32>
    %746 = vector.shape_cast %745 : vector<1x1x32x8xf32> to vector<32x8xf32>
    %cst_661 = arith.constant dense<0.000000e+00> : vector<8x8xf32>
    %747 = tpu.matmul %495, %746, %cst_661 {dimension_numbers = #tpu.dot_dimension_numbers<[1], [0], [0], [1], [0, 0, 1, 1], [], []>} : vector<8x32xf32>, vector<32x8xf32>, vector<8x8xf32> -> vector<8x8xf32>
    %cst_662 = arith.constant dense<0.000000e+00> : vector<8x8xf32>
    %748 = tpu.matmul %741, %744, %cst_662 {dimension_numbers = #tpu.dot_dimension_numbers<[1], [1], [0], [0], [0, 0, 1, 0], [], []>} : vector<8x8xf32>, vector<8x8xf32>, vector<8x8xf32> -> vector<8x8xf32>
    %cst_663 = arith.constant 0.176776692 : f32
    %749 = vector.broadcast %cst_663 : f32 to vector<8x8xf32>
    %750 = arith.mulf %748, %749 : vector<8x8xf32>
    %cst_664 = arith.constant -1.000000e+30 : f32
    %751 = vector.broadcast %cst_664 : f32 to vector<8x8xf32>
    %752 = arith.select %4, %750, %751 : vector<8x8xi1>, vector<8x8xf32>
    %cst_665 = arith.constant dense<0xFF800000> : vector<8xf32>
    %753 = vector.multi_reduction <maximumf>, %752, %cst_665 [1] : vector<8x8xf32> to vector<8xf32>
    %754 = vector.shape_cast %753 : vector<8xf32> to vector<8x1xf32>
    %755 = vector.broadcast %754 : vector<8x1xf32> to vector<8x8xf32>
    %756 = arith.subf %752, %755 : vector<8x8xf32>
    %757 = math.exp %756 : vector<8x8xf32>
    %cst_666 = arith.constant dense<0.000000e+00> : vector<8xf32>
    %758 = vector.multi_reduction <add>, %757, %cst_666 [1] : vector<8x8xf32> to vector<8xf32>
    %759 = vector.shape_cast %758 : vector<8xf32> to vector<8x1xf32>
    %760 = tpu.reciprocal %759 {approx = true} : vector<8x1xf32> -> vector<8x1xf32>
    %761 = vector.broadcast %760 : vector<8x1xf32> to vector<8x8xf32>
    %762 = arith.mulf %757, %761 : vector<8x8xf32>
    %cst_667 = arith.constant dense<0.000000e+00> : vector<8x8xf32>
    %763 = tpu.matmul %762, %747, %cst_667 {dimension_numbers = #tpu.dot_dimension_numbers<[1], [0], [0], [1], [0, 0, 1, 1], [], []>} : vector<8x8xf32>, vector<8x8xf32>, vector<8x8xf32> -> vector<8x8xf32>
    %c6_668 = arith.constant 6 : index
    %c0_669 = arith.constant 0 : index
    %c0_670 = arith.constant 0 : index
    %c0_671 = arith.constant 0 : index
    %764 = vector.load %arg5[%c6_668, %c0_669, %c0_670, %c0_671] : memref<7x4x8x32xf32, #tpu.memory_space<vmem>>, vector<1x1x8x32xf32>
    %765 = vector.shape_cast %764 : vector<1x1x8x32xf32> to vector<8x32xf32>
    %cst_672 = arith.constant dense<0.000000e+00> : vector<8x32xf32>
    %766 = tpu.matmul %763, %765, %cst_672 {dimension_numbers = #tpu.dot_dimension_numbers<[1], [0], [0], [1], [0, 0, 1, 1], [], []>} : vector<8x8xf32>, vector<8x32xf32>, vector<8x32xf32> -> vector<8x32xf32>
    %767 = arith.addf %738, %766 : vector<8x32xf32>
    %c6_673 = arith.constant 6 : index
    %c1_674 = arith.constant 1 : index
    %c0_675 = arith.constant 0 : index
    %c0_676 = arith.constant 0 : index
    %768 = vector.load %arg2[%c6_673, %c1_674, %c0_675, %c0_676] : memref<7x4x32x8xf32, #tpu.memory_space<vmem>>, vector<1x1x32x8xf32>
    %769 = vector.shape_cast %768 : vector<1x1x32x8xf32> to vector<32x8xf32>
    %cst_677 = arith.constant dense<0.000000e+00> : vector<8x8xf32>
    %770 = tpu.matmul %495, %769, %cst_677 {dimension_numbers = #tpu.dot_dimension_numbers<[1], [0], [0], [1], [0, 0, 1, 1], [], []>} : vector<8x32xf32>, vector<32x8xf32>, vector<8x8xf32> -> vector<8x8xf32>
    %c6_678 = arith.constant 6 : index
    %c1_679 = arith.constant 1 : index
    %c0_680 = arith.constant 0 : index
    %c0_681 = arith.constant 0 : index
    %771 = vector.load %arg3[%c6_678, %c1_679, %c0_680, %c0_681] : memref<7x4x32x8xf32, #tpu.memory_space<vmem>>, vector<1x1x32x8xf32>
    %772 = vector.shape_cast %771 : vector<1x1x32x8xf32> to vector<32x8xf32>
    %cst_682 = arith.constant dense<0.000000e+00> : vector<8x8xf32>
    %773 = tpu.matmul %495, %772, %cst_682 {dimension_numbers = #tpu.dot_dimension_numbers<[1], [0], [0], [1], [0, 0, 1, 1], [], []>} : vector<8x32xf32>, vector<32x8xf32>, vector<8x8xf32> -> vector<8x8xf32>
    %c6_683 = arith.constant 6 : index
    %c1_684 = arith.constant 1 : index
    %c0_685 = arith.constant 0 : index
    %c0_686 = arith.constant 0 : index
    %774 = vector.load %arg4[%c6_683, %c1_684, %c0_685, %c0_686] : memref<7x4x32x8xf32, #tpu.memory_space<vmem>>, vector<1x1x32x8xf32>
    %775 = vector.shape_cast %774 : vector<1x1x32x8xf32> to vector<32x8xf32>
    %cst_687 = arith.constant dense<0.000000e+00> : vector<8x8xf32>
    %776 = tpu.matmul %495, %775, %cst_687 {dimension_numbers = #tpu.dot_dimension_numbers<[1], [0], [0], [1], [0, 0, 1, 1], [], []>} : vector<8x32xf32>, vector<32x8xf32>, vector<8x8xf32> -> vector<8x8xf32>
    %cst_688 = arith.constant dense<0.000000e+00> : vector<8x8xf32>
    %777 = tpu.matmul %770, %773, %cst_688 {dimension_numbers = #tpu.dot_dimension_numbers<[1], [1], [0], [0], [0, 0, 1, 0], [], []>} : vector<8x8xf32>, vector<8x8xf32>, vector<8x8xf32> -> vector<8x8xf32>
    %cst_689 = arith.constant 0.176776692 : f32
    %778 = vector.broadcast %cst_689 : f32 to vector<8x8xf32>
    %779 = arith.mulf %777, %778 : vector<8x8xf32>
    %cst_690 = arith.constant -1.000000e+30 : f32
    %780 = vector.broadcast %cst_690 : f32 to vector<8x8xf32>
    %781 = arith.select %4, %779, %780 : vector<8x8xi1>, vector<8x8xf32>
    %cst_691 = arith.constant dense<0xFF800000> : vector<8xf32>
    %782 = vector.multi_reduction <maximumf>, %781, %cst_691 [1] : vector<8x8xf32> to vector<8xf32>
    %783 = vector.shape_cast %782 : vector<8xf32> to vector<8x1xf32>
    %784 = vector.broadcast %783 : vector<8x1xf32> to vector<8x8xf32>
    %785 = arith.subf %781, %784 : vector<8x8xf32>
    %786 = math.exp %785 : vector<8x8xf32>
    %cst_692 = arith.constant dense<0.000000e+00> : vector<8xf32>
    %787 = vector.multi_reduction <add>, %786, %cst_692 [1] : vector<8x8xf32> to vector<8xf32>
    %788 = vector.shape_cast %787 : vector<8xf32> to vector<8x1xf32>
    %789 = tpu.reciprocal %788 {approx = true} : vector<8x1xf32> -> vector<8x1xf32>
    %790 = vector.broadcast %789 : vector<8x1xf32> to vector<8x8xf32>
    %791 = arith.mulf %786, %790 : vector<8x8xf32>
    %cst_693 = arith.constant dense<0.000000e+00> : vector<8x8xf32>
    %792 = tpu.matmul %791, %776, %cst_693 {dimension_numbers = #tpu.dot_dimension_numbers<[1], [0], [0], [1], [0, 0, 1, 1], [], []>} : vector<8x8xf32>, vector<8x8xf32>, vector<8x8xf32> -> vector<8x8xf32>
    %c6_694 = arith.constant 6 : index
    %c1_695 = arith.constant 1 : index
    %c0_696 = arith.constant 0 : index
    %c0_697 = arith.constant 0 : index
    %793 = vector.load %arg5[%c6_694, %c1_695, %c0_696, %c0_697] : memref<7x4x8x32xf32, #tpu.memory_space<vmem>>, vector<1x1x8x32xf32>
    %794 = vector.shape_cast %793 : vector<1x1x8x32xf32> to vector<8x32xf32>
    %cst_698 = arith.constant dense<0.000000e+00> : vector<8x32xf32>
    %795 = tpu.matmul %792, %794, %cst_698 {dimension_numbers = #tpu.dot_dimension_numbers<[1], [0], [0], [1], [0, 0, 1, 1], [], []>} : vector<8x8xf32>, vector<8x32xf32>, vector<8x32xf32> -> vector<8x32xf32>
    %796 = arith.addf %767, %795 : vector<8x32xf32>
    %c6_699 = arith.constant 6 : index
    %c2_700 = arith.constant 2 : index
    %c0_701 = arith.constant 0 : index
    %c0_702 = arith.constant 0 : index
    %797 = vector.load %arg2[%c6_699, %c2_700, %c0_701, %c0_702] : memref<7x4x32x8xf32, #tpu.memory_space<vmem>>, vector<1x1x32x8xf32>
    %798 = vector.shape_cast %797 : vector<1x1x32x8xf32> to vector<32x8xf32>
    %cst_703 = arith.constant dense<0.000000e+00> : vector<8x8xf32>
    %799 = tpu.matmul %495, %798, %cst_703 {dimension_numbers = #tpu.dot_dimension_numbers<[1], [0], [0], [1], [0, 0, 1, 1], [], []>} : vector<8x32xf32>, vector<32x8xf32>, vector<8x8xf32> -> vector<8x8xf32>
    %c6_704 = arith.constant 6 : index
    %c2_705 = arith.constant 2 : index
    %c0_706 = arith.constant 0 : index
    %c0_707 = arith.constant 0 : index
    %800 = vector.load %arg3[%c6_704, %c2_705, %c0_706, %c0_707] : memref<7x4x32x8xf32, #tpu.memory_space<vmem>>, vector<1x1x32x8xf32>
    %801 = vector.shape_cast %800 : vector<1x1x32x8xf32> to vector<32x8xf32>
    %cst_708 = arith.constant dense<0.000000e+00> : vector<8x8xf32>
    %802 = tpu.matmul %495, %801, %cst_708 {dimension_numbers = #tpu.dot_dimension_numbers<[1], [0], [0], [1], [0, 0, 1, 1], [], []>} : vector<8x32xf32>, vector<32x8xf32>, vector<8x8xf32> -> vector<8x8xf32>
    %c6_709 = arith.constant 6 : index
    %c2_710 = arith.constant 2 : index
    %c0_711 = arith.constant 0 : index
    %c0_712 = arith.constant 0 : index
    %803 = vector.load %arg4[%c6_709, %c2_710, %c0_711, %c0_712] : memref<7x4x32x8xf32, #tpu.memory_space<vmem>>, vector<1x1x32x8xf32>
    %804 = vector.shape_cast %803 : vector<1x1x32x8xf32> to vector<32x8xf32>
    %cst_713 = arith.constant dense<0.000000e+00> : vector<8x8xf32>
    %805 = tpu.matmul %495, %804, %cst_713 {dimension_numbers = #tpu.dot_dimension_numbers<[1], [0], [0], [1], [0, 0, 1, 1], [], []>} : vector<8x32xf32>, vector<32x8xf32>, vector<8x8xf32> -> vector<8x8xf32>
    %cst_714 = arith.constant dense<0.000000e+00> : vector<8x8xf32>
    %806 = tpu.matmul %799, %802, %cst_714 {dimension_numbers = #tpu.dot_dimension_numbers<[1], [1], [0], [0], [0, 0, 1, 0], [], []>} : vector<8x8xf32>, vector<8x8xf32>, vector<8x8xf32> -> vector<8x8xf32>
    %cst_715 = arith.constant 0.176776692 : f32
    %807 = vector.broadcast %cst_715 : f32 to vector<8x8xf32>
    %808 = arith.mulf %806, %807 : vector<8x8xf32>
    %cst_716 = arith.constant -1.000000e+30 : f32
    %809 = vector.broadcast %cst_716 : f32 to vector<8x8xf32>
    %810 = arith.select %4, %808, %809 : vector<8x8xi1>, vector<8x8xf32>
    %cst_717 = arith.constant dense<0xFF800000> : vector<8xf32>
    %811 = vector.multi_reduction <maximumf>, %810, %cst_717 [1] : vector<8x8xf32> to vector<8xf32>
    %812 = vector.shape_cast %811 : vector<8xf32> to vector<8x1xf32>
    %813 = vector.broadcast %812 : vector<8x1xf32> to vector<8x8xf32>
    %814 = arith.subf %810, %813 : vector<8x8xf32>
    %815 = math.exp %814 : vector<8x8xf32>
    %cst_718 = arith.constant dense<0.000000e+00> : vector<8xf32>
    %816 = vector.multi_reduction <add>, %815, %cst_718 [1] : vector<8x8xf32> to vector<8xf32>
    %817 = vector.shape_cast %816 : vector<8xf32> to vector<8x1xf32>
    %818 = tpu.reciprocal %817 {approx = true} : vector<8x1xf32> -> vector<8x1xf32>
    %819 = vector.broadcast %818 : vector<8x1xf32> to vector<8x8xf32>
    %820 = arith.mulf %815, %819 : vector<8x8xf32>
    %cst_719 = arith.constant dense<0.000000e+00> : vector<8x8xf32>
    %821 = tpu.matmul %820, %805, %cst_719 {dimension_numbers = #tpu.dot_dimension_numbers<[1], [0], [0], [1], [0, 0, 1, 1], [], []>} : vector<8x8xf32>, vector<8x8xf32>, vector<8x8xf32> -> vector<8x8xf32>
    %c6_720 = arith.constant 6 : index
    %c2_721 = arith.constant 2 : index
    %c0_722 = arith.constant 0 : index
    %c0_723 = arith.constant 0 : index
    %822 = vector.load %arg5[%c6_720, %c2_721, %c0_722, %c0_723] : memref<7x4x8x32xf32, #tpu.memory_space<vmem>>, vector<1x1x8x32xf32>
    %823 = vector.shape_cast %822 : vector<1x1x8x32xf32> to vector<8x32xf32>
    %cst_724 = arith.constant dense<0.000000e+00> : vector<8x32xf32>
    %824 = tpu.matmul %821, %823, %cst_724 {dimension_numbers = #tpu.dot_dimension_numbers<[1], [0], [0], [1], [0, 0, 1, 1], [], []>} : vector<8x8xf32>, vector<8x32xf32>, vector<8x32xf32> -> vector<8x32xf32>
    %825 = arith.addf %796, %824 : vector<8x32xf32>
    %c6_725 = arith.constant 6 : index
    %c3_726 = arith.constant 3 : index
    %c0_727 = arith.constant 0 : index
    %c0_728 = arith.constant 0 : index
    %826 = vector.load %arg2[%c6_725, %c3_726, %c0_727, %c0_728] : memref<7x4x32x8xf32, #tpu.memory_space<vmem>>, vector<1x1x32x8xf32>
    %827 = vector.shape_cast %826 : vector<1x1x32x8xf32> to vector<32x8xf32>
    %cst_729 = arith.constant dense<0.000000e+00> : vector<8x8xf32>
    %828 = tpu.matmul %495, %827, %cst_729 {dimension_numbers = #tpu.dot_dimension_numbers<[1], [0], [0], [1], [0, 0, 1, 1], [], []>} : vector<8x32xf32>, vector<32x8xf32>, vector<8x8xf32> -> vector<8x8xf32>
    %c6_730 = arith.constant 6 : index
    %c3_731 = arith.constant 3 : index
    %c0_732 = arith.constant 0 : index
    %c0_733 = arith.constant 0 : index
    %829 = vector.load %arg3[%c6_730, %c3_731, %c0_732, %c0_733] : memref<7x4x32x8xf32, #tpu.memory_space<vmem>>, vector<1x1x32x8xf32>
    %830 = vector.shape_cast %829 : vector<1x1x32x8xf32> to vector<32x8xf32>
    %cst_734 = arith.constant dense<0.000000e+00> : vector<8x8xf32>
    %831 = tpu.matmul %495, %830, %cst_734 {dimension_numbers = #tpu.dot_dimension_numbers<[1], [0], [0], [1], [0, 0, 1, 1], [], []>} : vector<8x32xf32>, vector<32x8xf32>, vector<8x8xf32> -> vector<8x8xf32>
    %c6_735 = arith.constant 6 : index
    %c3_736 = arith.constant 3 : index
    %c0_737 = arith.constant 0 : index
    %c0_738 = arith.constant 0 : index
    %832 = vector.load %arg4[%c6_735, %c3_736, %c0_737, %c0_738] : memref<7x4x32x8xf32, #tpu.memory_space<vmem>>, vector<1x1x32x8xf32>
    %833 = vector.shape_cast %832 : vector<1x1x32x8xf32> to vector<32x8xf32>
    %cst_739 = arith.constant dense<0.000000e+00> : vector<8x8xf32>
    %834 = tpu.matmul %495, %833, %cst_739 {dimension_numbers = #tpu.dot_dimension_numbers<[1], [0], [0], [1], [0, 0, 1, 1], [], []>} : vector<8x32xf32>, vector<32x8xf32>, vector<8x8xf32> -> vector<8x8xf32>
    %cst_740 = arith.constant dense<0.000000e+00> : vector<8x8xf32>
    %835 = tpu.matmul %828, %831, %cst_740 {dimension_numbers = #tpu.dot_dimension_numbers<[1], [1], [0], [0], [0, 0, 1, 0], [], []>} : vector<8x8xf32>, vector<8x8xf32>, vector<8x8xf32> -> vector<8x8xf32>
    %cst_741 = arith.constant 0.176776692 : f32
    %836 = vector.broadcast %cst_741 : f32 to vector<8x8xf32>
    %837 = arith.mulf %835, %836 : vector<8x8xf32>
    %cst_742 = arith.constant -1.000000e+30 : f32
    %838 = vector.broadcast %cst_742 : f32 to vector<8x8xf32>
    %839 = arith.select %4, %837, %838 : vector<8x8xi1>, vector<8x8xf32>
    %cst_743 = arith.constant dense<0xFF800000> : vector<8xf32>
    %840 = vector.multi_reduction <maximumf>, %839, %cst_743 [1] : vector<8x8xf32> to vector<8xf32>
    %841 = vector.shape_cast %840 : vector<8xf32> to vector<8x1xf32>
    %842 = vector.broadcast %841 : vector<8x1xf32> to vector<8x8xf32>
    %843 = arith.subf %839, %842 : vector<8x8xf32>
    %844 = math.exp %843 : vector<8x8xf32>
    %cst_744 = arith.constant dense<0.000000e+00> : vector<8xf32>
    %845 = vector.multi_reduction <add>, %844, %cst_744 [1] : vector<8x8xf32> to vector<8xf32>
    %846 = vector.shape_cast %845 : vector<8xf32> to vector<8x1xf32>
    %847 = tpu.reciprocal %846 {approx = true} : vector<8x1xf32> -> vector<8x1xf32>
    %848 = vector.broadcast %847 : vector<8x1xf32> to vector<8x8xf32>
    %849 = arith.mulf %844, %848 : vector<8x8xf32>
    %cst_745 = arith.constant dense<0.000000e+00> : vector<8x8xf32>
    %850 = tpu.matmul %849, %834, %cst_745 {dimension_numbers = #tpu.dot_dimension_numbers<[1], [0], [0], [1], [0, 0, 1, 1], [], []>} : vector<8x8xf32>, vector<8x8xf32>, vector<8x8xf32> -> vector<8x8xf32>
    %c6_746 = arith.constant 6 : index
    %c3_747 = arith.constant 3 : index
    %c0_748 = arith.constant 0 : index
    %c0_749 = arith.constant 0 : index
    %851 = vector.load %arg5[%c6_746, %c3_747, %c0_748, %c0_749] : memref<7x4x8x32xf32, #tpu.memory_space<vmem>>, vector<1x1x8x32xf32>
    %852 = vector.shape_cast %851 : vector<1x1x8x32xf32> to vector<8x32xf32>
    %cst_750 = arith.constant dense<0.000000e+00> : vector<8x32xf32>
    %853 = tpu.matmul %850, %852, %cst_750 {dimension_numbers = #tpu.dot_dimension_numbers<[1], [0], [0], [1], [0, 0, 1, 1], [], []>} : vector<8x8xf32>, vector<8x32xf32>, vector<8x32xf32> -> vector<8x32xf32>
    %854 = arith.addf %825, %853 : vector<8x32xf32>
    %c6_751 = arith.constant 6 : index
    %c0_752 = arith.constant 0 : index
    %c0_753 = arith.constant 0 : index
    %855 = vector.load %arg6[%c6_751, %c0_752, %c0_753] : memref<7x1x32xf32, #tpu.memory_space<vmem>>, vector<1x1x32xf32>
    %856 = vector.shape_cast %855 : vector<1x1x32xf32> to vector<1x32xf32>
    %857 = vector.broadcast %856 : vector<1x32xf32> to vector<8x32xf32>
    %858 = arith.addf %854, %857 : vector<8x32xf32>
    %859 = arith.addf %616, %737 : vector<8x32xf32>
    %860 = arith.addf %859, %858 : vector<8x32xf32>
    %cst_754 = arith.constant 0.333333343 : f32
    %861 = vector.broadcast %cst_754 : f32 to vector<8x32xf32>
    %862 = arith.mulf %860, %861 : vector<8x32xf32>
    %c0_755 = arith.constant 0 : index
    %c0_756 = arith.constant 0 : index
    %c0_757 = arith.constant 0 : index
    %863 = vector.load %arg7[%c0_755, %c0_756, %c0_757] : memref<1x8x32xf32, #tpu.memory_space<vmem>>, vector<1x8x32xf32>
    %864 = vector.shape_cast %863 : vector<1x8x32xf32> to vector<8x32xf32>
    %865 = vector.shape_cast %862 : vector<8x32xf32> to vector<1x8x32xf32>
    tpu.vector_store %arg7[%c0_755, %c0_756, %c0_757], %865 {strides = array<i32>} : memref<1x8x32xf32, #tpu.memory_space<vmem>>, vector<1x8x32xf32>,
    return
  }
  func.func @transform_0(%arg0: i32) -> (i32, i32, i32) {
    %c0_i32 = arith.constant 0 : i32
    %c0_i32_0 = arith.constant 0 : i32
    %c0_i32_1 = arith.constant 0 : i32
    return %arg0, %c0_i32, %c0_i32_0 : i32, i32, i32
  }
  func.func @transform_1(%arg0: i32) -> (i32, i32, i32, i32) {
    %c0_i32 = arith.constant 0 : i32
    %c0_i32_0 = arith.constant 0 : i32
    %c0_i32_1 = arith.constant 0 : i32
    %c0_i32_2 = arith.constant 0 : i32
    %c0_i32_3 = arith.constant 0 : i32
    return %c0_i32, %c0_i32_0, %c0_i32_1, %c0_i32_2 : i32, i32, i32, i32
  }
  func.func @transform_2(%arg0: i32) -> (i32, i32, i32, i32) {
    %c0_i32 = arith.constant 0 : i32
    %c0_i32_0 = arith.constant 0 : i32
    %c0_i32_1 = arith.constant 0 : i32
    %c0_i32_2 = arith.constant 0 : i32
    %c0_i32_3 = arith.constant 0 : i32
    return %c0_i32, %c0_i32_0, %c0_i32_1, %c0_i32_2 : i32, i32, i32, i32
  }
  func.func @transform_3(%arg0: i32) -> (i32, i32, i32, i32) {
    %c0_i32 = arith.constant 0 : i32
    %c0_i32_0 = arith.constant 0 : i32
    %c0_i32_1 = arith.constant 0 : i32
    %c0_i32_2 = arith.constant 0 : i32
    %c0_i32_3 = arith.constant 0 : i32
    return %c0_i32, %c0_i32_0, %c0_i32_1, %c0_i32_2 : i32, i32, i32, i32
  }
  func.func @transform_4(%arg0: i32) -> (i32, i32, i32, i32) {
    %c0_i32 = arith.constant 0 : i32
    %c0_i32_0 = arith.constant 0 : i32
    %c0_i32_1 = arith.constant 0 : i32
    %c0_i32_2 = arith.constant 0 : i32
    %c0_i32_3 = arith.constant 0 : i32
    return %c0_i32, %c0_i32_0, %c0_i32_1, %c0_i32_2 : i32, i32, i32, i32
  }
  func.func @transform_5(%arg0: i32) -> (i32, i32, i32) {
    %c0_i32 = arith.constant 0 : i32
    %c0_i32_0 = arith.constant 0 : i32
    %c0_i32_1 = arith.constant 0 : i32
    %c0_i32_2 = arith.constant 0 : i32
    return %c0_i32, %c0_i32_0, %c0_i32_1 : i32, i32, i32
  }
  func.func @transform_6(%arg0: i32) -> (i32, i32, i32) {
    %c0_i32 = arith.constant 0 : i32
    %c0_i32_0 = arith.constant 0 : i32
    %c0_i32_1 = arith.constant 0 : i32
    return %arg0, %c0_i32, %c0_i32_0 : i32, i32, i32
  }
}

</mosaic_0001>

<bundles_post_ra>
// kernel: tpu_custom_call.1
= control target key start
LH: loop header
LB: loop body
LE: loop exit
PB: predicated region body
PF: predicated region fallthrough
CT: control target
= control target key end

     0   :  { %11 = vsyncpa [#allocation3], 0  ;;  %s7416_s0 = inlined_call_operand.vmem [shape: f32[2,8,32], index: 0, kind: input, shape index: {}]   ;;  %s7417_s1 = inlined_call_operand.vmem [shape: f32[7,4,32,8], index: 1, kind: input, shape index: {}]   ;;  %s7418_s2 = inlined_call_operand.vmem [shape: f32[7,4,32,8], index: 2, kind: input, shape index: {}]   ;;  %s7419_s3 = inlined_call_operand.vmem [shape: f32[7,4,32,8], index: 3, kind: input, shape index: {}]   ;;  %s7420_s4 = inlined_call_operand.vmem [shape: f32[7,4,8,32], index: 4, kind: input, shape index: {}]   ;;  %s7421_s5 = inlined_call_operand.vmem [shape: f32[7,1,32], index: 5, kind: input, shape index: {}]   ;;  %s7422_s6 = inlined_call_operand.hbm [shape: f32[2,8,32], index: 6, kind: output, shape index: {}]  }
   0x1   :  { %13 = vsyncpa [#allocation3 + $0x1], 0  ;;  %s5756_s21 = smov 0   ;;  %s5758_s22 = smov 0  }
   0x2   :  { %s5760_s23 = smov 0   ;;  %s5762_s24 = smov 0  }
   0x3 LB: > { %s5777_s25 = sadd.s32 4294967295, %s5719_s24   ;;  %s4935_s26 = sadd.s32 4294967294, %s5719_s24   ;;  %s5719_s24 = sphi %s5762_s24, %s7430_s24   ;;  %s5715_s23 = sphi %s5760_s23, %s7429_s23   ;;  %s5711_s22 = sphi %s5758_s22, %s7428_s22   ;;  %s5707_s21 = sphi %s5756_s21, %s7427_s21  }
   0x4   : > { %s5781_s27 = sadd.s32 1, %s5719_s24   ;;  %s157_s28 = sadd.s32 1, %s5715_s23 }
   0x5   : > { %s154_s29 = ssub.s32 %s5719_s24, %s5781_s27  ;;  %p167_p0 = scmp.ne.s32.totalorder %s5715_s23, %s5711_s22 }
   0x6   : > { %p155_p1 = scmp.eq.s32.totalorder %s154_s29, 0  ;;  %p168_p2 = scmp.eq.s32.totalorder %s5777_s25, 1 }
   0x7   : > { %p173_p3 = scmp.ne.s32.totalorder %s5711_s22, %s5707_s21  ;;  %p174_p4 = scmp.eq.s32.totalorder %s4935_s26, 1 }
   0x8   : > { %s5792_s30 = scalar_select %p155_p1, %s5715_s23, %s157_s28  }
   0x9   : > { %p5794_p5 = por %p168_p2, %p167_p0  ;;  %p5798_p6 = por %p174_p4, %p173_p3 }
   0xa   : > { %p4938_p7 = scmp.ge.s32.totalorder %s5719_s24, 1  ;;  %p214_p8 = scmp.lt.s32.totalorder %s5719_s24, 3 }
   0xc   : > { %p215_p9 = pnand %p4938_p7, %p214_p8 }
   0xd   : > { %p243_p10 = scmp.lt.s32.totalorder (!%p215_p9), %s5777_s25, 1  ;;  %s240_s18 = sand.u32 (!%p215_p9), 1, %s5711_s22  }
   0xe   : > { %218 = sbr.rel (%p215_p9) target bundleno = 14339 (0x3803), region = 44  ;;  %s4939_s19 = sshll.u32 (!%p215_p9), %s240_s18, 3 }
   0xf   : > { %s5495_s20 = sshll.u32 (!%p215_p9), %s5777_s25, 3  ;;  %s242_s11 = scalar_lea.vmem (!%p215_p9), [#allocation2], %s4939_s19 }
  0x10   : > { %s4871_s10 = scalar_lea.hbm (!%p215_p9), %s7422_s6, %s5495_s20  ;;  %s4873_s12 = sshll.u32 (!%p215_p9), %s242_s11, 4  ;;  %s4874_s12 = int_to_ptr.vmem [resolvable:$true] %s4873_s12 }
  0x11   : > { %s4875_s13 = sshll.u32 (!%p215_p9), %s4871_s10, 4  ;;  %s5677_s19 = scalar_lea.hbm (!%p215_p9), %s7422_s6, 16  ;;  %s4876_s13 = int_to_ptr.hbm [resolvable:$true] %s4875_s13 }
  0x12   : > { %s5671_s15 = sshra.s32 (!%p215_p9), %s4876_s13, 4  ;;  %s5672_s15 = int_to_ptr.hbm [resolvable:$true] %s5671_s15 }
  0x13   : > { %v4949_v0 = vld [vmem:[%s7418_s2 + $0x198] sm:$0xff]  ;;  %v4948_v1 = vld [vmem:[%s7418_s2 + $0x190] sm:$0xff]  ;;  %v4947_v3 = vld [vmem:[%s7418_s2 + $0x188] sm:$0xff]  ;;  %s244_s29 = scalar_select %p243_p10, %s5777_s25, 1  ;;  %vm258_vm0 = vcmask 261120   ;;  %vm332_vm1 = vcmask 64512   ;;  %v248_v14 = vlaneseq }
  0x14   : > { %v4944_v2 = vld [vmem:[%s7417_s1 + $0x198] sm:$0xff]  ;;  %299 = vmatpush.msra.mxu1 %v4949_v0  ;;  %v4943_v4 = vld [vmem:[%s7417_s1 + $0x190] sm:$0xff]  ;;  %v4946_v5 = vld [vmem:[%s7418_s2 + $0x180] sm:$0xff]  ;;  %s4861_s25 = scalar_lea.sflag [#allocation3], %s240_s18  ;;  %s5673_s16 = scalar_lea.hbm %s5672_s15, 8 }
  0x15   : > { %274 = vmatpush.msra.mxu0 %v4944_v2  ;;  %v4942_v6 = vld [vmem:[%s7417_s1 + $0x188] sm:$0xff]  ;;  %s4940_s9 = sshll.u32 %s244_s29, 3  ;;  %v4941_v7 = vld [vmem:[%s7417_s1 + $0x180] sm:$0xff]  ;;  %v4954_v11 = vld [vmem:[%s7419_s3 + $0x198] sm:$0xff]  ;;  %v249_v15 = vshrl.u32 %v248_v14, 7  ;;  %v251_v16 = vand.u32 127, %v248_v14  ;;  %p5674_p11 = scmp.ne.s32.totalorder %s5672_s15, %s5673_s16 }
  0x16   : > { %300 = vmatpush.msra.mxu1 %v4948_v1  ;;  %s5833_s14 = scalar_lea.vmem %s7416_s0, %s4940_s9  ;;  %v4953_v12 = vld [vmem:[%s7419_s3 + $0x190] sm:$0xff]  ;;  %324 = vmatpush.msra.mxu2 %v4954_v11  ;;  %v4952_v13 = vld [vmem:[%s7419_s3 + $0x188] sm:$0xff]  ;;  %v4951_v22 = vld [vmem:[%s7419_s3 + $0x180] sm:$0xff]  ;;  %p5678_p0 = scmp.lt.s32.totalorder %s5672_s15, %s7422_s6 }
  0x17   : > { %275 = vmatpush.msra.mxu0 %v4943_v4  ;;  %v5836_v8 = vld [vmem:[%s5833_s14] sm:$0xff]  ;;  %vm5853_vm2 = vcmp.ge.s32.totalorder %v249_v15, %v251_v16  ;;  %v4968_v23 = vld [vmem:[%s7418_s2 + $0x1b8] sm:$0xff]  ;;  %v4967_v24 = vld [vmem:[%s7418_s2 + $0x1b0] sm:$0xff]  ;;  %p5675_p12 = pnand %p5674_p11, %p5794_p5  ;;  %p5679_p1 = scmp.lt.s32.totalorder %s5677_s19, %s5673_s16 }
  0x18   : > { %301 = vmatpush.msra.mxu1 %v4947_v3  ;;  %325 = vmatpush.msra.mxu2 %v4953_v12  ;;  %v4963_v25 = vld [vmem:[%s7417_s1 + $0x1b8] sm:$0xff]  ;;  %v4966_v26 = vld [vmem:[%s7418_s2 + $0x1a8] sm:$0xff]  ;;  %v4962_v27 = vld [vmem:[%s7417_s1 + $0x1b0] sm:$0xff] }
  0x19   : > { %276 = vmatpush.msra.mxu0 %v4942_v6  ;;  %v4965_v28 = vld [vmem:[%s7418_s2 + $0x1a0] sm:$0xff]  ;;  %v4961_v29 = vld [vmem:[%s7417_s1 + $0x1a8] sm:$0xff]  ;;  %v4973_v38 = vld [vmem:[%s7419_s3 + $0x1b8] sm:$0xff]  ;;  %p5676_p13 = pneg %p5675_p12  ;;  %p5680_p2 = por %p5679_p1, %p5678_p0 }
  0x1a   : > { %302 = vmatpush.msra.mxu1 %v4946_v5  ;;  %326 = vmatpush.msra.mxu2 %v4952_v13  ;;  %v4960_v30 = vld [vmem:[%s7417_s1 + $0x1a0] sm:$0xff]  ;;  %v4972_v39 = vld [vmem:[%s7419_s3 + $0x1b0] sm:$0xff]  ;;  %v4971_v40 = vld [vmem:[%s7419_s3 + $0x1a8] sm:$0xff] }
  0x1b   : > { %277 = vmatpush.msra.mxu0 %v4941_v7  ;;  %4950 = vmatmul.msk.f32.vlgmr.msra.gmra.mxu1 %vm258_vm0, %v5836_v8  ;;  %v4970_v41 = vld [vmem:[%s7419_s3 + $0x1a0] sm:$0xff]  ;;  %v4984_v58 = vld [vmem:[%s7417_s1 + $0x1d8] sm:$0xff]  ;;  %v4983_v59 = vld [vmem:[%s7417_s1 + $0x1d0] sm:$0xff]  ;;  %p5681_p3 = pnand %p5680_p2, %p5676_p13 }
  0x1c   : > { %4945 = vmatmul.msk.f32.vlgmr.msra.gmra.mxu0 %vm258_vm0, %v5836_v8  ;;  %327 = vmatpush.msra.mxu2 %v4951_v22  ;;  %v4959_v46 = vld [vmem:[%s7420_s4 + $0x60] sm:$0xff]  ;;  %v4989_v60 = vld [vmem:[%s7418_s2 + $0x1d8] sm:$0xff]  ;;  %v4982_v61 = vld [vmem:[%s7417_s1 + $0x1c8] sm:$0xff] }
  0x1d   : > { %4955 = vmatmul.msk.f32.vlgmr.msra.gmra.mxu2 %vm258_vm0, %v5836_v8  ;;  %439 = vmatpush.msrb.mxu1 %v4968_v23  ;;  %v4988_v62 = vld [vmem:[%s7418_s2 + $0x1d0] sm:$0xff]  ;;  %v4981_v63 = vld [vmem:[%s7417_s1 + $0x1c0] sm:$0xff]  ;;  %v4987_v0 = vld [vmem:[%s7418_s2 + $0x1c8] sm:$0xff] }
  0x1e   : > { %414 = vmatpush.msrb.mxu0 %v4963_v25  ;;  %464 = vmatpush.msrb.mxu2 %v4973_v38  ;;  %v4986_v1 = vld [vmem:[%s7418_s2 + $0x1c0] sm:$0xff]  ;;  %v4978_v5 = vld [vmem:[%s7420_s4 + $0x68] sm:$0xff]  ;;  %v4994_v15 = vld [vmem:[%s7419_s3 + $0x1d8] sm:$0xff] }
  0x1f   : > { %440 = vmatpush.msrb.mxu1 %v4967_v24  ;;  %v4993_v16 = vld [vmem:[%s7419_s3 + $0x1d0] sm:$0xff] }
  0x20   : > { %415 = vmatpush.msrb.mxu0 %v4962_v27  ;;  %465 = vmatpush.msrb.mxu2 %v4972_v39 }
  0x21   : > { %441 = vmatpush.msrb.mxu1 %v4966_v26  ;;  %v5009_v26 = vld [vmem:[%s7418_s2 + $0x1f8] sm:$0xff] }
  0x22   : > { %416 = vmatpush.msrb.mxu0 %v4961_v29  ;;  %466 = vmatpush.msrb.mxu2 %v4971_v40  ;;  %v5007_v29 = vld [vmem:[%s7418_s2 + $0x1e8] sm:$0xff] }
  0x23   : > { %442 = vmatpush.msrb.mxu1 %v4965_v28  ;;  %v5008_v28 = vld [vmem:[%s7418_s2 + $0x1f0] sm:$0xff] }
  0x24   : > { %4969 = vmatmul.msk.f32.vlgmr.msrb.gmra.mxu1 %vm258_vm0, %v5836_v8  ;;  %417 = vmatpush.msrb.mxu0 %v4960_v30  ;;  %v5004_v30 = vld [vmem:[%s7417_s1 + $0x1f8] sm:$0xff] }
  0x25   : > { %4964 = vmatmul.msk.f32.vlgmr.msrb.gmra.mxu0 %vm258_vm0, %v5836_v8  ;;  %467 = vmatpush.msrb.mxu2 %v4970_v41 }
  0x26   : > { %4974 = vmatmul.msk.f32.vlgmr.msrb.gmra.mxu2 %vm258_vm0, %v5836_v8  ;;  %554 = vmatpush.msra.mxu1 %v4978_v5 }
  0x27   : > { %577 = vmatpush.msra.mxu2 %v4959_v46 }
  0x28   : > { %649 = vmatpush.msrb.mxu1 %v4994_v15  ;;  %v5035_v15 = vld [vmem:[%s7419_s3 + $0x98] sm:$0xff] }
  0x2a   : > { %650 = vmatpush.msrb.mxu1 %v4993_v16  ;;  %v5034_v16 = vld [vmem:[%s7419_s3 + $0x90] sm:$0xff] }
  0x98   : > { %v304_v9 = vpop.f32.mrf.mxu1 }
  0x99   : > { %4956 = vmatpush.xpose.msk.msra.mxu3 %vm332_vm1, %v304_v9  ;;  %v279_v10 = vpop.f32.mrf.mxu0 }
  0x9c   : > { %4957 = vmatmul.msk.f32.vlgmr.msra.gmra.mxu3 %vm332_vm1, %v279_v10 }
  0xa0   : > { %v329_v36 = vpop.f32.mrf.mxu2 }
  0xa1   : > { %390 = vmatpush.msrb.mxu3 %v329_v36  ;;  %v444_v37 = vpop.f32.mrf.mxu1 }
  0xa2   : > { %v419_v45 = vpop.f32.mrf.mxu0 }
  0xa3   : > { %4975 = vmatpush.xpose.msk.msra.mxu3 %vm332_vm1, %v444_v37 }
  0xa9   : > { %v469_v47 = vpop.f32.mrf.mxu2 }
  0xaa   : > { %529 = vmatpush.msra.mxu0 %v469_v47 }
  0xac   : > { %624 = vmatpush.msrb.mxu0 %v4989_v60  ;;  %v5023_v60 = vld [vmem:[%s7417_s1 + $0x88] sm:$0xff] }
  0xae   : > { %625 = vmatpush.msrb.mxu0 %v4988_v62  ;;  %v5022_v62 = vld [vmem:[%s7417_s1 + $0x80] sm:$0xff] }
  0xb0   : > { %626 = vmatpush.msrb.mxu0 %v4987_v0  ;;  %v5027_v0 = vld [vmem:[%s7418_s2 + $0x80] sm:$0xff] }
  0xb2   : > { %627 = vmatpush.msrb.mxu0 %v4986_v1  ;;  %v5019_v1 = vld [vmem:[%s7420_s4 + $0x78] sm:$0xff] }
 0x11f   : > { %v356_v17 = vpop.f32.mrf.mxu3 }
 0x120   : > { %v359_v19 = vmul.f32 0.17677669, %v356_v17  ;;  %v4992_v17 = vld [vmem:[%s7419_s3 + $0x1c8] sm:$0xff] }
 0x121   : > { %651 = vmatpush.msrb.mxu1 %v4992_v17  ;;  %v5033_v17 = vld [vmem:[%s7419_s3 + $0x88] sm:$0xff] }
 0x122   : > { %v360_v20 = vsel %vm5853_vm2, %v359_v19, -1e+30  ;;  %v4991_v19 = vld [vmem:[%s7419_s3 + $0x1c0] sm:$0xff] }
 0x123   : > { %v361_v21 = vsel %vm332_vm1, %v360_v20, -inf  ;;  %652 = vmatpush.msrb.mxu1 %v4991_v19  ;;  %v5032_v19 = vld [vmem:[%s7419_s3 + $0x80] sm:$0xff] }
 0x124   : > { %362 = vmax.xlane.f32.xlu0 %v361_v21 }
 0x197   : > { %v363_v31 = vpop.xlane.xlu0 %362 }
 0x198   : > { %v364_v32 = vsub.f32 %v360_v20, %v363_v31  ;;  %v5006_v31 = vld [vmem:[%s7418_s2 + $0x1e0] sm:$0xff] }
 0x19a   : > { %v365_v33 = vmul.f32 1.442695, %v364_v32  ;;  %v5003_v32 = vld [vmem:[%s7417_s1 + $0x1f0] sm:$0xff] }
 0x19c   : > { %5544 = vpow2.f32 %v365_v33  ;;  %v5002_v33 = vld [vmem:[%s7417_s1 + $0x1e8] sm:$0xff] }
 0x1a2   : > { %v5545_v34 = vpop.eup %5544 }
 0x1a3   : > { %v367_v35 = vsel %vm332_vm1, %v5545_v34, 0.0 }
 0x1a4   : > { %368 = vadd.xlane.f32.xlu0 %v367_v35  ;;  %v5001_v35 = vld [vmem:[%s7417_s1 + $0x1e0] sm:$0xff] }
 0x217   : > { %v369_v42 = vpop.xlane.xlu0 %368 }
 0x218   : > { %5546 = vrcp.f32 %v369_v42  ;;  %v5014_v42 = vld [vmem:[%s7419_s3 + $0x1f8] sm:$0xff] }
 0x21e   : > { %v5547_v43 = vpop.eup %5546 }
 0x21f   : > { %v371_v44 = vmul.f32 %v5547_v43, %v5545_v34  ;;  %v4999_v34 = vld [vmem:[%s7420_s4 + $0x70] sm:$0xff] }
 0x220   : > { %v5013_v43 = vld [vmem:[%s7419_s3 + $0x1f0] sm:$0xff] }
 0x221   : > { %4958 = vmatmul.msk.f32.vlgmr.msrb.gmra.mxu3 %vm332_vm1, %v371_v44  ;;  %v5012_v44 = vld [vmem:[%s7419_s3 + $0x1e8] sm:$0xff] }
 0x222   : > { %599 = vmatpush.msrb.mxu3 %v4984_v58  ;;  %v5030_v58 = vld [vmem:[%s7418_s2 + $0x98] sm:$0xff] }
 0x224   : > { %600 = vmatpush.msrb.mxu3 %v4983_v59 }
 0x226   : > { %601 = vmatpush.msrb.mxu3 %v4982_v61  ;;  %v5029_v61 = vld [vmem:[%s7418_s2 + $0x90] sm:$0xff] }
 0x228   : > { %602 = vmatpush.msrb.mxu3 %v4981_v63  ;;  %v5028_v63 = vld [vmem:[%s7418_s2 + $0x88] sm:$0xff] }
 0x229   : > { %4976 = vmatmul.msk.f32.vlgmr.msra.gmra.mxu3 %vm332_vm1, %v419_v45 }
 0x231   : > { %4985 = vmatmul.msk.f32.vlgmr.msrb.gmra.mxu3 %vm258_vm0, %v5836_v8 }
 0x2a4   : > { %v392_v48 = vpop.f32.mrf.mxu3 }
 0x2a5   : > { %4980 = vmatmul.msk.f32.vlgmr.msra.gmra.mxu2 %vm332_vm1, %v392_v48 }
 0x2ac   : > { %v495_v49 = vpop.f32.mrf.mxu3 }
 0x2ad   : > { %v498_v50 = vmul.f32 0.17677669, %v495_v49 }
 0x2af   : > { %v499_v51 = vsel %vm5853_vm2, %v498_v50, -1e+30  ;;  %v5011_v50 = vld [vmem:[%s7419_s3 + $0x1e0] sm:$0xff] }
 0x2b0   : > { %v500_v52 = vsel %vm332_vm1, %v499_v51, -inf }
 0x2b1   : > { %501 = vmax.xlane.f32.xlu1 %v500_v52 }
 0x2b4   : > { %v604_v9 = vpop.f32.mrf.mxu3 }
 0x324   : > { %v502_v53 = vpop.xlane.xlu1 %501 }
 0x325   : > { %v503_v54 = vsub.f32 %v499_v51, %v502_v53 }
 0x327   : > { %v504_v55 = vmul.f32 1.442695, %v503_v54 }
 0x328   : > { %v5954_v10 = vpop.f32.mrf.mxu2 }
 0x329   : > { %5548 = vpow2.f32 %v504_v55 }
 0x32f   : > { %v5549_v56 = vpop.eup %5548 }
 0x330   : > { %v506_v57 = vsel %vm332_vm1, %v5549_v56, 0.0 }
 0x331   : > { %507 = vadd.xlane.f32.xlu1 %v506_v57  ;;  %v5024_v57 = vld [vmem:[%s7417_s1 + $0x90] sm:$0xff] }
 0x3a4   : > { %v508_v2 = vpop.xlane.xlu1 %507 }
 0x3a5   : > { %5550 = vrcp.f32 %v508_v2 }
 0x3ab   : > { %v5551_v3 = vpop.eup %5550 }
 0x3ac   : > { %v510_v4 = vmul.f32 %v5551_v3, %v5549_v56  ;;  %v5025_v56 = vld [vmem:[%s7417_s1 + $0x98] sm:$0xff] }
 0x3ae   : > { %4977 = vmatmul.msk.f32.vlgmr.msra.gmra.mxu0 %vm332_vm1, %v510_v4 }
 0x3af   : > { %739 = vmatpush.msra.mxu0 %v4999_v34 }
 0x3b6   : > { %4990 = vmatmul.msk.f32.vlgmr.msrb.gmra.mxu0 %vm258_vm0, %v5836_v8 }
 0x42b   : > { %v531_v6 = vpop.f32.mrf.mxu0 }
 0x42c   : > { %4979 = vmatmul.msk.f32.vlgmr.msra.gmra.mxu1 %vm332_vm1, %v531_v6 }
 0x42d   : > { %762 = vmatpush.msra.mxu1 %v5004_v30 }
 0x42f   : > { %763 = vmatpush.msra.mxu1 %v5003_v32 }
 0x431   : > { %764 = vmatpush.msra.mxu1 %v5002_v33 }
 0x433   : > { %v629_v7 = vpop.f32.mrf.mxu0  ;;  %765 = vmatpush.msra.mxu1 %v5001_v35 }
 0x434   : > { %4996 = vmatpush.xpose.msk.msrb.mxu2 %vm332_vm1, %v629_v7  ;;  %4995 = vmatmul.msk.f32.vlgmr.msrb.gmra.mxu1 %vm258_vm0, %v5836_v8 }
 0x437   : > { %4997 = vmatmul.msk.f32.vlgmr.msrb.gmra.mxu2 %vm332_vm1, %v604_v9 }
 0x438   : > { %787 = vmatpush.msra.mxu2 %v5009_v26  ;;  %v5046_v26 = vld [vmem:[%s7418_s2 + $0xa0] sm:$0xff] }
 0x43a   : > { %788 = vmatpush.msra.mxu2 %v5008_v28  ;;  %v5041_v28 = vld [vmem:[%s7417_s1 + $0xa0] sm:$0xff] }
 0x43c   : > { %789 = vmatpush.msra.mxu2 %v5007_v29  ;;  %5005 = vmatmul.msk.f32.vlgmr.msra.gmra.mxu1 %vm258_vm0, %v5836_v8 }
 0x43e   : > { %790 = vmatpush.msra.mxu2 %v5006_v31 }
 0x43f   : > { %5010 = vmatmul.msk.f32.vlgmr.msra.gmra.mxu2 %vm258_vm0, %v5836_v8 }
 0x440   : > { %902 = vmatpush.msrb.mxu2 %v5019_v1 }
 0x4a9   : > { %v5974_v25 = vpop.f32.mrf.mxu1 }
 0x4b1   : > { %v654_v27 = vpop.f32.mrf.mxu1 }
 0x4b2   : > { %714 = vmatpush.msra.mxu3 %v654_v27  ;;  %v5042_v27 = vld [vmem:[%s7417_s1 + $0xa8] sm:$0xff] }
 0x4b4   : > { %812 = vmatpush.msrb.mxu3 %v5014_v42 }
 0x4b6   : > { %813 = vmatpush.msrb.mxu3 %v5013_v43 }
 0x4b8   : > { %814 = vmatpush.msrb.mxu3 %v5012_v44  ;;  %v5040_v44 = vld [vmem:[%s7420_s4 + $0x20] sm:$0xff] }
 0x4b9   : > { %v767_v41 = vpop.f32.mrf.mxu1 }
 0x4ba   : > { %v680_v11 = vpop.f32.mrf.mxu2  ;;  %815 = vmatpush.msrb.mxu3 %v5011_v50 }
 0x4bb   : > { %v683_v12 = vmul.f32 0.17677669, %v680_v11 }
 0x4bd   : > { %v684_v13 = vsel %vm5853_vm2, %v683_v12, -1e+30 }
 0x4be   : > { %v685_v14 = vsel %vm332_vm1, %v684_v13, -inf }
 0x4bf   : > { %686 = vmax.xlane.f32.xlu2 %v685_v14 }
 0x4c2   : > { %v792_v39 = vpop.f32.mrf.mxu2 }
 0x4c3   : > { %5016 = vmatpush.xpose.msk.msrb.mxu0 %vm332_vm1, %v792_v39  ;;  %v5051_v39 = vld [vmem:[%s7419_s3 + $0xa0] sm:$0xff] }
 0x532   : > { %v687_v20 = vpop.xlane.xlu2 %686 }
 0x533   : > { %v688_v21 = vsub.f32 %v684_v13, %v687_v20  ;;  %v5044_v20 = vld [vmem:[%s7417_s1 + $0xb8] sm:$0xff] }
 0x535   : > { %v689_v22 = vmul.f32 1.442695, %v688_v21  ;;  %v5049_v21 = vld [vmem:[%s7418_s2 + $0xb8] sm:$0xff] }
 0x537   : > { %5552 = vpow2.f32 %v689_v22  ;;  %v5048_v22 = vld [vmem:[%s7418_s2 + $0xb0] sm:$0xff] }
 0x53d   : > { %v5553_v23 = vpop.eup %5552 }
 0x53e   : > { %v691_v24 = vsel %vm332_vm1, %v5553_v23, 0.0 }
 0x53f   : > { %692 = vadd.xlane.f32.xlu2 %v691_v24  ;;  %v5043_v24 = vld [vmem:[%s7417_s1 + $0xb0] sm:$0xff] }
 0x5b2   : > { %v693_v36 = vpop.xlane.xlu2 %692 }
 0x5b3   : > { %5554 = vrcp.f32 %v693_v36  ;;  %v5054_v36 = vld [vmem:[%s7419_s3 + $0xb8] sm:$0xff] }
 0x5b9   : > { %v5555_v37 = vpop.eup %5554 }
 0x5ba   : > { %v695_v38 = vmul.f32 %v5555_v37, %v5553_v23  ;;  %v5047_v23 = vld [vmem:[%s7418_s2 + $0xa8] sm:$0xff]  ;;  %v5053_v37 = vld [vmem:[%s7419_s3 + $0xb0] sm:$0xff] }
 0x5bc   : > { %4998 = vmatmul.msk.f32.vlgmr.msra.gmra.mxu3 %vm332_vm1, %v695_v38  ;;  %v5052_v38 = vld [vmem:[%s7419_s3 + $0xa8] sm:$0xff] }
 0x5bd   : > { %931 = vmatpush.msra.mxu3 %v5025_v56 }
 0x5bf   : > { %932 = vmatpush.msra.mxu3 %v5024_v57  ;;  %v5065_v57 = vld [vmem:[%s7417_s1 + $0xd8] sm:$0xff] }
 0x5c1   : > { %933 = vmatpush.msra.mxu3 %v5023_v60  ;;  %v5063_v60 = vld [vmem:[%s7417_s1 + $0xc8] sm:$0xff] }
 0x5c3   : > { %934 = vmatpush.msra.mxu3 %v5022_v62  ;;  %v5062_v62 = vld [vmem:[%s7417_s1 + $0xc0] sm:$0xff] }
 0x5c4   : > { %5015 = vmatmul.msk.f32.vlgmr.msrb.gmra.mxu3 %vm258_vm0, %v5836_v8 }
 0x5cc   : > { %5026 = vmatmul.msk.f32.vlgmr.msra.gmra.mxu3 %vm258_vm0, %v5836_v8 }
 0x63f   : > { %v716_v40 = vpop.f32.mrf.mxu3 }
 0x640   : > { %5000 = vmatmul.msk.f32.vlgmr.msra.gmra.mxu0 %vm332_vm1, %v716_v40 }
 0x641   : > { %956 = vmatpush.msra.mxu0 %v5030_v58  ;;  %v5064_v58 = vld [vmem:[%s7417_s1 + $0xd0] sm:$0xff] }
 0x643   : > { %957 = vmatpush.msra.mxu0 %v5029_v61  ;;  %v5069_v61 = vld [vmem:[%s7418_s2 + $0xd0] sm:$0xff] }
 0x645   : > { %958 = vmatpush.msra.mxu0 %v5028_v63  ;;  %v5068_v63 = vld [vmem:[%s7418_s2 + $0xc8] sm:$0xff] }
 0x647   : > { %v817_v59 = vpop.f32.mrf.mxu3  ;;  %959 = vmatpush.msra.mxu0 %v5027_v0  ;;  %v5067_v0 = vld [vmem:[%s7418_s2 + $0xc0] sm:$0xff] }
 0x648   : > { %5017 = vmatmul.msk.f32.vlgmr.msrb.gmra.mxu0 %vm332_vm1, %v767_v41  ;;  %877 = vmatpush.msrb.mxu1 %v817_v59  ;;  %v5070_v59 = vld [vmem:[%s7418_s2 + $0xd8] sm:$0xff] }
 0x649   : > { %1070 = vmatpush.msrb.mxu0 %v5044_v20  ;;  %v5072_v20 = vld [vmem:[%s7419_s3 + $0xc0] sm:$0xff] }
 0x64a   : > { %981 = vmatpush.msra.mxu1 %v5035_v15 }
 0x64b   : > { %1071 = vmatpush.msrb.mxu0 %v5043_v24 }
 0x64c   : > { %982 = vmatpush.msra.mxu1 %v5034_v16  ;;  %v5075_v16 = vld [vmem:[%s7419_s3 + $0xd8] sm:$0xff] }
 0x64d   : > { %1072 = vmatpush.msrb.mxu0 %v5042_v27 }
 0x64e   : > { %983 = vmatpush.msra.mxu1 %v5033_v17  ;;  %v5074_v17 = vld [vmem:[%s7419_s3 + $0xd0] sm:$0xff] }
 0x64f   : > { %v936_v7 = vpop.f32.mrf.mxu3  ;;  %1073 = vmatpush.msrb.mxu0 %v5041_v28  ;;  %v5090_v28 = vld [vmem:[%s7418_s2 + $0xf8] sm:$0xff] }
 0x650   : > { %5031 = vmatmul.msk.f32.vlgmr.msra.gmra.mxu0 %vm258_vm0, %v5836_v8  ;;  %984 = vmatpush.msra.mxu1 %v5032_v19  ;;  %v5073_v19 = vld [vmem:[%s7419_s3 + $0xc8] sm:$0xff] }
 0x658   : > { %5045 = vmatmul.msk.f32.vlgmr.msrb.gmra.mxu0 %vm258_vm0, %v5836_v8 }
 0x6bd   : > { %v6020_v45 = vpop.f32.mrf.mxu0 }
 0x6c5   : > { %v843_v46 = vpop.f32.mrf.mxu0 }
 0x6c6   : > { %v846_v47 = vmul.f32 0.17677669, %v843_v46 }
 0x6c8   : > { %v847_v48 = vsel %vm5853_vm2, %v846_v47, -1e+30 }
 0x6c9   : > { %v848_v49 = vsel %vm332_vm1, %v847_v48, -inf }
 0x6ca   : > { %849 = vmax.xlane.f32.xlu0 %v848_v49 }
 0x6cd   : > { %v961_v5 = vpop.f32.mrf.mxu0 }
 0x6ce   : > { %5037 = vmatpush.xpose.msk.msra.mxu2 %vm332_vm1, %v961_v5 }
 0x6d5   : > { %v1075_v43 = vpop.f32.mrf.mxu0 }
 0x73d   : > { %v850_v51 = vpop.xlane.xlu0 %849 }
 0x73e   : > { %v851_v52 = vsub.f32 %v847_v48, %v850_v51 }
 0x740   : > { %v852_v53 = vmul.f32 1.442695, %v851_v52 }
 0x742   : > { %5556 = vpow2.f32 %v852_v53 }
 0x748   : > { %v5557_v54 = vpop.eup %5556 }
 0x749   : > { %v854_v55 = vsel %vm332_vm1, %v5557_v54, 0.0 }
 0x74a   : > { %855 = vadd.xlane.f32.xlu1 %v854_v55 }
 0x7bd   : > { %v856_v2 = vpop.xlane.xlu1 %855 }
 0x7be   : > { %5558 = vrcp.f32 %v856_v2 }
 0x7c4   : > { %v5559_v3 = vpop.eup %5558 }
 0x7c5   : > { %v858_v4 = vmul.f32 %v5559_v3, %v5557_v54 }
 0x7c7   : > { %5018 = vmatmul.msk.f32.vlgmr.msrb.gmra.mxu1 %vm332_vm1, %v858_v4  ;;  %v5059_v4 = vld [vmem:[%s7420_s4 + $0x28] sm:$0xff] }
 0x7c8   : > { %1095 = vmatpush.msrb.mxu1 %v5049_v21 }
 0x7ca   : > { %1096 = vmatpush.msrb.mxu1 %v5048_v22 }
 0x7cc   : > { %1097 = vmatpush.msrb.mxu1 %v5047_v23 }
 0x7ce   : > { %1098 = vmatpush.msrb.mxu1 %v5046_v26 }
 0x7cf   : > { %5036 = vmatmul.msk.f32.vlgmr.msra.gmra.mxu1 %vm258_vm0, %v5836_v8 }
 0x7d0   : > { %1210 = vmatpush.msra.mxu1 %v5059_v4 }
 0x7d7   : > { %5050 = vmatmul.msk.f32.vlgmr.msrb.gmra.mxu1 %vm258_vm0, %v5836_v8 }
 0x7d8   : > { %1305 = vmatpush.msrb.mxu1 %v5075_v16  ;;  %v5114_v16 = vld [vmem:[%s7419_s3 + $0x208] sm:$0xff] }
 0x7da   : > { %1306 = vmatpush.msrb.mxu1 %v5074_v17  ;;  %v5113_v17 = vld [vmem:[%s7419_s3 + $0x200] sm:$0xff] }
 0x7dc   : > { %1307 = vmatpush.msrb.mxu1 %v5073_v19 }
 0x7de   : > { %1308 = vmatpush.msrb.mxu1 %v5072_v20 }
 0x844   : > { %v879_v6 = vpop.f32.mrf.mxu1 }
 0x845   : > { %5020 = vmatmul.msk.f32.vlgmr.msrb.gmra.mxu2 %vm332_vm1, %v879_v6 }
 0x846   : > { %1120 = vmatpush.msrb.mxu2 %v5054_v36  ;;  %v5093_v36 = vld [vmem:[%s7419_s3 + $0xe8] sm:$0xff] }
 0x848   : > { %1121 = vmatpush.msrb.mxu2 %v5053_v37  ;;  %v5092_v37 = vld [vmem:[%s7419_s3 + $0xe0] sm:$0xff] }
 0x84a   : > { %1122 = vmatpush.msrb.mxu2 %v5052_v38  ;;  %v5084_v38 = vld [vmem:[%s7417_s1 + $0xf0] sm:$0xff] }
 0x84c   : > { %v986_v34 = vpop.f32.mrf.mxu1  ;;  %1123 = vmatpush.msrb.mxu2 %v5051_v39  ;;  %v5083_v39 = vld [vmem:[%s7417_s1 + $0xe8] sm:$0xff] }
 0x84d   : > { %5038 = vmatmul.msk.f32.vlgmr.msra.gmra.mxu2 %vm332_vm1, %v936_v7  ;;  %1046 = vmatpush.msrb.mxu3 %v986_v34  ;;  %v5087_v34 = vld [vmem:[%s7418_s2 + $0xe0] sm:$0xff] }
 0x84e   : > { %1233 = vmatpush.msra.mxu2 %v5040_v44 }
 0x854   : > { %v1100_v35 = vpop.f32.mrf.mxu1 }
 0x855   : > { %5056 = vmatpush.xpose.msk.msra.mxu3 %vm332_vm1, %v1100_v35  ;;  %5055 = vmatmul.msk.f32.vlgmr.msrb.gmra.mxu2 %vm258_vm0, %v5836_v8  ;;  %v5085_v35 = vld [vmem:[%s7417_s1 + $0xf8] sm:$0xff] }
 0x8c8   : > { %v6066_v9 = vpop.f32.mrf.mxu2 }
 0x8d0   : > { %v1012_v11 = vpop.f32.mrf.mxu2 }
 0x8d1   : > { %v1015_v12 = vmul.f32 0.17677669, %v1012_v11 }
 0x8d3   : > { %v1016_v13 = vsel %vm5853_vm2, %v1015_v12, -1e+30 }
 0x8d4   : > { %v1017_v14 = vsel %vm332_vm1, %v1016_v13, -inf }
 0x8d5   : > { %1018 = vmax.xlane.f32.xlu2 %v1017_v14 }
 0x8d8   : > { %v1125_v46 = vpop.f32.mrf.mxu2 }
 0x8d9   : > { %1185 = vmatpush.msra.mxu0 %v1125_v46  ;;  %v5106_v46 = vld [vmem:[%s7417_s1 + $0x218] sm:$0xff] }
 0x8db   : > { %1280 = vmatpush.msrb.mxu0 %v5070_v59  ;;  %v5124_v59 = vld [vmem:[%s7417_s1 + $0x230] sm:$0xff] }
 0x8dd   : > { %1281 = vmatpush.msrb.mxu0 %v5069_v61  ;;  %v5122_v61 = vld [vmem:[%s7417_s1 + $0x220] sm:$0xff] }
 0x8df   : > { %1282 = vmatpush.msrb.mxu0 %v5068_v63 }
 0x8e1   : > { %1283 = vmatpush.msrb.mxu0 %v5067_v0 }
 0x948   : > { %v1019_v29 = vpop.xlane.xlu2 %1018 }
 0x949   : > { %v1020_v30 = vsub.f32 %v1016_v13, %v1019_v29 }
 0x94b   : > { %v1021_v31 = vmul.f32 1.442695, %v1020_v30  ;;  %v5089_v30 = vld [vmem:[%s7418_s2 + $0xf0] sm:$0xff] }
 0x94d   : > { %5560 = vpow2.f32 %v1021_v31  ;;  %v5095_v31 = vld [vmem:[%s7419_s3 + $0xf8] sm:$0xff] }
 0x953   : > { %v5561_v32 = vpop.eup %5560 }
 0x954   : > { %v1023_v33 = vsel %vm332_vm1, %v5561_v32, 0.0 }
 0x955   : > { %1024 = vadd.xlane.f32.xlu0 %v1023_v33  ;;  %v5094_v33 = vld [vmem:[%s7419_s3 + $0xf0] sm:$0xff] }
 0x9c8   : > { %v1025_v40 = vpop.xlane.xlu0 %1024 }
 0x9c9   : > { %5562 = vrcp.f32 %v1025_v40  ;;  %v5082_v40 = vld [vmem:[%s7417_s1 + $0xe0] sm:$0xff] }
 0x9cf   : > { %v5563_v41 = vpop.eup %5562 }
 0x9d0   : > { %v1027_v42 = vmul.f32 %v5563_v41, %v5561_v32  ;;  %v5088_v32 = vld [vmem:[%s7418_s2 + $0xe8] sm:$0xff]  ;;  %v5080_v41 = vld [vmem:[%s7420_s4 + $0x30] sm:$0xff] }
 0x9d2   : > { %5039 = vmatmul.msk.f32.vlgmr.msrb.gmra.mxu3 %vm332_vm1, %v1027_v42 }
 0x9d3   : > { %1255 = vmatpush.msrb.mxu3 %v5065_v57  ;;  %v5125_v57 = vld [vmem:[%s7417_s1 + $0x238] sm:$0xff] }
 0x9d5   : > { %1256 = vmatpush.msrb.mxu3 %v5064_v58 }
 0x9d7   : > { %1257 = vmatpush.msrb.mxu3 %v5063_v60  ;;  %v5123_v60 = vld [vmem:[%s7417_s1 + $0x228] sm:$0xff] }
 0x9d9   : > { %1258 = vmatpush.msrb.mxu3 %v5062_v62  ;;  %v5100_v62 = vld [vmem:[%s7420_s4 + $0x38] sm:$0xff] }
 0x9da   : > { %5057 = vmatmul.msk.f32.vlgmr.msra.gmra.mxu3 %vm332_vm1, %v1075_v43 }
 0x9e2   : > { %5066 = vmatmul.msk.f32.vlgmr.msrb.gmra.mxu3 %vm258_vm0, %v5836_v8 }
 0xa55   : > { %v1048_v47 = vpop.f32.mrf.mxu3 }
 0xa56   : > { %5061 = vmatmul.msk.f32.vlgmr.msra.gmra.mxu2 %vm332_vm1, %v1048_v47  ;;  %v5105_v47 = vld [vmem:[%s7417_s1 + $0x210] sm:$0xff] }
 0xa5d   : > { %v1151_v48 = vpop.f32.mrf.mxu3 }
 0xa5e   : > { %v1154_v49 = vmul.f32 0.17677669, %v1151_v48  ;;  %v5104_v48 = vld [vmem:[%s7417_s1 + $0x208] sm:$0xff] }
 0xa60   : > { %v1155_v50 = vsel %vm5853_vm2, %v1154_v49, -1e+30  ;;  %v5103_v49 = vld [vmem:[%s7417_s1 + $0x200] sm:$0xff] }
 0xa61   : > { %v1156_v51 = vsel %vm332_vm1, %v1155_v50, -inf }
 0xa62   : > { %1157 = vmax.xlane.f32.xlu1 %v1156_v51 }
 0xa65   : > { %v1260_v7 = vpop.f32.mrf.mxu3 }
 0xad5   : > { %v1158_v52 = vpop.xlane.xlu1 %1157 }
 0xad6   : > { %v1159_v53 = vsub.f32 %v1155_v50, %v1158_v52  ;;  %v580_v50 = vadd.f32 %v5954_v10, %v5974_v25  ;;  %v5111_v10 = vld [vmem:[%s7418_s2 + $0x218] sm:$0xff] }
 0xad8   : > { %v1160_v54 = vmul.f32 1.442695, %v1159_v53  ;;  %v744_v51 = vadd.f32 %v6020_v45, %v580_v50  ;;  %v5537_v53 = vld [vmem:[%s7421_s5 + $0x3] ss:$0 sm:$0xff]  ;;  %v5109_v45 = vld [vmem:[%s7418_s2 + $0x208] sm:$0xff] }
 0xad9   : > { %v6174_v11 = vpop.f32.mrf.mxu2 }
 0xada   : > { %5564 = vpow2.f32 %v1160_v54  ;;  %v907_v52 = vadd.f32 %v6066_v9, %v744_v51  ;;  %v5108_v9 = vld [vmem:[%s7418_s2 + $0x200] sm:$0xff]  ;;  %v5146_v51 = vld [vmem:[%s7417_s1 + $0x258] sm:$0xff] }
 0xadc   : > { %v6261_v54 = vadd.f32 %v5537_v53, %v907_v52  ;;  %v5145_v52 = vld [vmem:[%s7417_s1 + $0x250] sm:$0xff]  ;;  %v5144_v53 = vld [vmem:[%s7417_s1 + $0x248] sm:$0xff] }
 0xae0   : > { %v5565_v55 = vpop.eup %5564 }
 0xae1   : > { %v1162_v56 = vsel %vm332_vm1, %v5565_v55, 0.0 }
 0xae2   : > { %1163 = vadd.xlane.f32.xlu2 %v1162_v56 }
 0xb55   : > { %v1164_v1 = vpop.xlane.xlu2 %1163 }
 0xb56   : > { %5566 = vrcp.f32 %v1164_v1 }
 0xb5c   : > { %v5567_v2 = vpop.eup %5566 }
 0xb5d   : > { %v1166_v3 = vmul.f32 %v5567_v2, %v5565_v55 }
 0xb5f   : > { %5058 = vmatmul.msk.f32.vlgmr.msra.gmra.mxu0 %vm332_vm1, %v1166_v3 }
 0xb60   : > { %1395 = vmatpush.msra.mxu0 %v5080_v41 }
 0xb67   : > { %5071 = vmatmul.msk.f32.vlgmr.msrb.gmra.mxu0 %vm258_vm0, %v5836_v8 }
 0xbdc   : > { %v1187_v5 = vpop.f32.mrf.mxu0 }
 0xbdd   : > { %5060 = vmatmul.msk.f32.vlgmr.msra.gmra.mxu1 %vm332_vm1, %v1187_v5 }
 0xbde   : > { %1418 = vmatpush.msra.mxu1 %v5085_v35 }
 0xbe0   : > { %1419 = vmatpush.msra.mxu1 %v5084_v38 }
 0xbe2   : > { %1420 = vmatpush.msra.mxu1 %v5083_v39 }
 0xbe4   : > { %v1285_v6 = vpop.f32.mrf.mxu0  ;;  %1421 = vmatpush.msra.mxu1 %v5082_v40 }
 0xbe5   : > { %5077 = vmatpush.xpose.msk.msrb.mxu2 %vm332_vm1, %v1285_v6  ;;  %5076 = vmatmul.msk.f32.vlgmr.msrb.gmra.mxu1 %vm258_vm0, %v5836_v8 }
 0xbe8   : > { %5078 = vmatmul.msk.f32.vlgmr.msrb.gmra.mxu2 %vm332_vm1, %v1260_v7 }
 0xbe9   : > { %1443 = vmatpush.msra.mxu2 %v5090_v28  ;;  %v5135_v28 = vld [vmem:[%s7419_s3 + $0x238] sm:$0xff] }
 0xbeb   : > { %1444 = vmatpush.msra.mxu2 %v5089_v30  ;;  %v5134_v30 = vld [vmem:[%s7419_s3 + $0x230] sm:$0xff] }
 0xbed   : > { %1445 = vmatpush.msra.mxu2 %v5088_v32  ;;  %5086 = vmatmul.msk.f32.vlgmr.msra.gmra.mxu1 %vm258_vm0, %v5836_v8  ;;  %v5132_v32 = vld [vmem:[%s7419_s3 + $0x220] sm:$0xff] }
 0xbef   : > { %1446 = vmatpush.msra.mxu2 %v5087_v34 }
 0xbf0   : > { %5091 = vmatmul.msk.f32.vlgmr.msra.gmra.mxu2 %vm258_vm0, %v5836_v8 }
 0xbf1   : > { %1558 = vmatpush.msrb.mxu2 %v5100_v62 }
 0xc5a   : > { %v6194_v27 = vpop.f32.mrf.mxu1 }
 0xc62   : > { %v1310_v29 = vpop.f32.mrf.mxu1 }
 0xc63   : > { %1370 = vmatpush.msra.mxu3 %v1310_v29 }
 0xc65   : > { %1468 = vmatpush.msrb.mxu3 %v5095_v31  ;;  %v5133_v31 = vld [vmem:[%s7419_s3 + $0x228] sm:$0xff] }
 0xc67   : > { %1469 = vmatpush.msrb.mxu3 %v5094_v33 }
 0xc69   : > { %1470 = vmatpush.msrb.mxu3 %v5093_v36 }
 0xc6a   : > { %v1423_v56 = vpop.f32.mrf.mxu1 }
 0xc6b   : > { %v1336_v12 = vpop.f32.mrf.mxu2  ;;  %1471 = vmatpush.msrb.mxu3 %v5092_v37 }
 0xc6c   : > { %v1339_v13 = vmul.f32 0.17677669, %v1336_v12 }
 0xc6e   : > { %v1340_v14 = vsel %vm5853_vm2, %v1339_v13, -1e+30 }
 0xc6f   : > { %v1341_v15 = vsel %vm332_vm1, %v1340_v14, -inf }
 0xc70   : > { %1342 = vmax.xlane.f32.xlu0 %v1341_v15  ;;  %v5115_v15 = vld [vmem:[%s7419_s3 + $0x210] sm:$0xff] }
 0xc73   : > { %v1448_v55 = vpop.f32.mrf.mxu2 }
 0xc74   : > { %5097 = vmatpush.xpose.msk.msrb.mxu0 %vm332_vm1, %v1448_v55  ;;  %v5143_v55 = vld [vmem:[%s7417_s1 + $0x240] sm:$0xff] }
 0xce3   : > { %v1343_v21 = vpop.xlane.xlu0 %1342 }
 0xce4   : > { %v1344_v22 = vsub.f32 %v1340_v14, %v1343_v21  ;;  %v5116_v14 = vld [vmem:[%s7419_s3 + $0x218] sm:$0xff] }
 0xce6   : > { %v1345_v23 = vmul.f32 1.442695, %v1344_v22  ;;  %v5130_v22 = vld [vmem:[%s7418_s2 + $0x238] sm:$0xff] }
 0xce8   : > { %5568 = vpow2.f32 %v1345_v23  ;;  %v5129_v23 = vld [vmem:[%s7418_s2 + $0x230] sm:$0xff] }
 0xcee   : > { %v5569_v24 = vpop.eup %5568 }
 0xcef   : > { %v1347_v26 = vsel %vm332_vm1, %v5569_v24, 0.0 }
 0xcf0   : > { %1348 = vadd.xlane.f32.xlu1 %v1347_v26  ;;  %v5127_v26 = vld [vmem:[%s7418_s2 + $0x220] sm:$0xff] }
 0xd63   : > { %v1349_v42 = vpop.xlane.xlu1 %1348 }
 0xd64   : > { %5570 = vrcp.f32 %v1349_v42 }
 0xd6a   : > { %v5571_v43 = vpop.eup %5570 }
 0xd6b   : > { %v1351_v44 = vmul.f32 %v5571_v43, %v5569_v24  ;;  %v5128_v24 = vld [vmem:[%s7418_s2 + $0x228] sm:$0xff] }
 0xd6d   : > { %5079 = vmatmul.msk.f32.vlgmr.msra.gmra.mxu3 %vm332_vm1, %v1351_v44 }
 0xd6e   : > { %1590 = vmatpush.msra.mxu3 %v5106_v46 }
 0xd70   : > { %1591 = vmatpush.msra.mxu3 %v5105_v47 }
 0xd72   : > { %1592 = vmatpush.msra.mxu3 %v5104_v48 }
 0xd74   : > { %1593 = vmatpush.msra.mxu3 %v5103_v49 }
 0xd75   : > { %5096 = vmatmul.msk.f32.vlgmr.msrb.gmra.mxu3 %vm258_vm0, %v5836_v8  ;;  %v5110_v8 = vld [vmem:[%s7418_s2 + $0x210] sm:$0xff] }
 0xd7d   : > { %5107 = vmatmul.msk.f32.vlgmr.msra.gmra.mxu3 %vm258_vm0, %v6261_v54 }
 0xdf0   : > { %v1372_v25 = vpop.f32.mrf.mxu3 }
 0xdf1   : > { %5081 = vmatmul.msk.f32.vlgmr.msra.gmra.mxu0 %vm332_vm1, %v1372_v25  ;;  %v5121_v25 = vld [vmem:[%s7420_s4 + $0x80] sm:$0xff] }
 0xdf2   : > { %1615 = vmatpush.msra.mxu0 %v5111_v10 }
 0xdf4   : > { %1616 = vmatpush.msra.mxu0 %v5110_v8 }
 0xdf6   : > { %1617 = vmatpush.msra.mxu0 %v5109_v45 }
 0xdf8   : > { %v1473_v58 = vpop.f32.mrf.mxu3  ;;  %1618 = vmatpush.msra.mxu0 %v5108_v9 }
 0xdf9   : > { %5098 = vmatmul.msk.f32.vlgmr.msrb.gmra.mxu0 %vm332_vm1, %v1423_v56  ;;  %1533 = vmatpush.msrb.mxu1 %v1473_v58 }
 0xdfa   : > { %1729 = vmatpush.msrb.mxu0 %v5125_v57 }
 0xdfb   : > { %1640 = vmatpush.msra.mxu1 %v5116_v14  ;;  %v5154_v14 = vld [vmem:[%s7419_s3 + $0x248] sm:$0xff] }
 0xdfc   : > { %1730 = vmatpush.msrb.mxu0 %v5124_v59 }
 0xdfd   : > { %1641 = vmatpush.msra.mxu1 %v5115_v15  ;;  %v5153_v15 = vld [vmem:[%s7419_s3 + $0x240] sm:$0xff] }
 0xdfe   : > { %1731 = vmatpush.msrb.mxu0 %v5123_v60 }
 0xdff   : > { %1642 = vmatpush.msra.mxu1 %v5114_v16  ;;  %v5166_v16 = vld [vmem:[%s7417_s1 + $0x278] sm:$0xff] }
 0xe00   : > { %1732 = vmatpush.msrb.mxu0 %v5122_v61  ;;  %v1595_v33 = vpop.f32.mrf.mxu3 }
 0xe01   : > { %5112 = vmatmul.msk.f32.vlgmr.msra.gmra.mxu0 %vm258_vm0, %v6261_v54  ;;  %1643 = vmatpush.msra.mxu1 %v5113_v17 }
 0xe09   : > { %5126 = vmatmul.msk.f32.vlgmr.msrb.gmra.mxu0 %vm258_vm0, %v6261_v54 }
 0xe6e   : > { %v6299_v63 = vpop.f32.mrf.mxu0 }
 0xe76   : > { %v1499_v0 = vpop.f32.mrf.mxu0 }
 0xe77   : > { %v1502_v1 = vmul.f32 0.17677669, %v1499_v0  ;;  %v5151_v0 = vld [vmem:[%s7418_s2 + $0x258] sm:$0xff] }
 0xe79   : > { %v1503_v2 = vsel %vm5853_vm2, %v1502_v1, -1e+30  ;;  %v5150_v1 = vld [vmem:[%s7418_s2 + $0x250] sm:$0xff] }
 0xe7a   : > { %v1504_v3 = vsel %vm332_vm1, %v1503_v2, -inf }
 0xe7b   : > { %1505 = vmax.xlane.f32.xlu2 %v1504_v3  ;;  %v5148_v3 = vld [vmem:[%s7418_s2 + $0x240] sm:$0xff] }
 0xe7e   : > { %v1620_v4 = vpop.f32.mrf.mxu0 }
 0xe7f   : > { %5118 = vmatpush.xpose.msk.msra.mxu2 %vm332_vm1, %v1620_v4 }
 0xe86   : > { %v1734_v10 = vpop.f32.mrf.mxu0 }
 0xeee   : > { %v1506_v5 = vpop.xlane.xlu2 %1505 }
 0xeef   : > { %v1507_v6 = vsub.f32 %v1503_v2, %v1506_v5  ;;  %v5149_v2 = vld [vmem:[%s7418_s2 + $0x248] sm:$0xff] }
 0xef1   : > { %v1508_v7 = vmul.f32 1.442695, %v1507_v6 }
 0xef3   : > { %5572 = vpow2.f32 %v1508_v7  ;;  %v5140_v7 = vld [vmem:[%s7420_s4 + $0x88] sm:$0xff] }
 0xef9   : > { %v5573_v12 = vpop.eup %5572 }
 0xefa   : > { %v1510_v13 = vsel %vm332_vm1, %v5573_v12, 0.0 }
 0xefb   : > { %1511 = vadd.xlane.f32.xlu0 %v1510_v13  ;;  %v5155_v13 = vld [vmem:[%s7419_s3 + $0x250] sm:$0xff] }
 0xf6e   : > { %v1512_v19 = vpop.xlane.xlu0 %1511 }
 0xf6f   : > { %5574 = vrcp.f32 %v1512_v19  ;;  %v5165_v19 = vld [vmem:[%s7417_s1 + $0x270] sm:$0xff] }
 0xf75   : > { %v5575_v20 = vpop.eup %5574 }
 0xf76   : > { %v1514_v21 = vmul.f32 %v5575_v20, %v5573_v12  ;;  %v5156_v12 = vld [vmem:[%s7419_s3 + $0x258] sm:$0xff]  ;;  %v5164_v20 = vld [vmem:[%s7417_s1 + $0x268] sm:$0xff] }
 0xf78   : > { %5099 = vmatmul.msk.f32.vlgmr.msrb.gmra.mxu1 %vm332_vm1, %v1514_v21  ;;  %v5163_v21 = vld [vmem:[%s7417_s1 + $0x260] sm:$0xff] }
 0xf79   : > { %1754 = vmatpush.msrb.mxu1 %v5130_v22  ;;  %v5171_v22 = vld [vmem:[%s7418_s2 + $0x278] sm:$0xff] }
 0xf7b   : > { %1755 = vmatpush.msrb.mxu1 %v5129_v23 }
 0xf7d   : > { %1756 = vmatpush.msrb.mxu1 %v5128_v24  ;;  %v5170_v24 = vld [vmem:[%s7418_s2 + $0x270] sm:$0xff] }
 0xf7f   : > { %1757 = vmatpush.msrb.mxu1 %v5127_v26 }
 0xf80   : > { %5117 = vmatmul.msk.f32.vlgmr.msra.gmra.mxu1 %vm258_vm0, %v6261_v54 }
 0xf81   : > { %1869 = vmatpush.msra.mxu1 %v5140_v7  ;;  %v5191_v7 = vld [vmem:[%s7418_s2 + $0x290] sm:$0xff] }
 0xf88   : > { %5131 = vmatmul.msk.f32.vlgmr.msrb.gmra.mxu1 %vm258_vm0, %v6261_v54 }
 0xf89   : > { %1964 = vmatpush.msrb.mxu1 %v5156_v12  ;;  %v5196_v12 = vld [vmem:[%s7419_s3 + $0x290] sm:$0xff] }
 0xf8b   : > { %1965 = vmatpush.msrb.mxu1 %v5155_v13  ;;  %v5185_v13 = vld [vmem:[%s7417_s1 + $0x288] sm:$0xff] }
 0xf8d   : > { %1966 = vmatpush.msrb.mxu1 %v5154_v14  ;;  %v5190_v14 = vld [vmem:[%s7418_s2 + $0x288] sm:$0xff] }
 0xf8f   : > { %1967 = vmatpush.msrb.mxu1 %v5153_v15  ;;  %v5195_v15 = vld [vmem:[%s7419_s3 + $0x288] sm:$0xff] }
 0xff5   : > { %v1535_v29 = vpop.f32.mrf.mxu1 }
 0xff6   : > { %5101 = vmatmul.msk.f32.vlgmr.msrb.gmra.mxu2 %vm332_vm1, %v1535_v29  ;;  %v5168_v29 = vld [vmem:[%s7418_s2 + $0x260] sm:$0xff] }
 0xff7   : > { %1779 = vmatpush.msrb.mxu2 %v5135_v28  ;;  %v5169_v28 = vld [vmem:[%s7418_s2 + $0x268] sm:$0xff] }
 0xff9   : > { %1780 = vmatpush.msrb.mxu2 %v5134_v30  ;;  %v5161_v30 = vld [vmem:[%s7420_s4 + $0x90] sm:$0xff] }
 0xffb   : > { %1781 = vmatpush.msrb.mxu2 %v5133_v31 }
 0xffd   : > { %v1645_v34 = vpop.f32.mrf.mxu1  ;;  %1782 = vmatpush.msrb.mxu2 %v5132_v32 }
 0xffe   : > { %5119 = vmatmul.msk.f32.vlgmr.msra.gmra.mxu2 %vm332_vm1, %v1595_v33  ;;  %1705 = vmatpush.msrb.mxu3 %v1645_v34 }
 0xfff   : > { %1892 = vmatpush.msra.mxu2 %v5121_v25 }
0x1005   : > { %v1759_v35 = vpop.f32.mrf.mxu1 }
0x1006   : > { %5136 = vmatmul.msk.f32.vlgmr.msrb.gmra.mxu2 %vm258_vm0, %v6261_v54  ;;  %5137 = vmatpush.xpose.msk.msra.mxu3 %vm332_vm1, %v1759_v35 }
0x1079   : > { %v6352_v36 = vpop.f32.mrf.mxu2 }
0x1081   : > { %v1671_v37 = vpop.f32.mrf.mxu2 }
0x1082   : > { %v1674_v38 = vmul.f32 0.17677669, %v1671_v37 }
0x1084   : > { %v1675_v39 = vsel %vm5853_vm2, %v1674_v38, -1e+30 }
0x1085   : > { %v1676_v40 = vsel %vm332_vm1, %v1675_v39, -inf }
0x1086   : > { %1677 = vmax.xlane.f32.xlu1 %v1676_v40 }
0x1089   : > { %v1784_v41 = vpop.f32.mrf.mxu2 }
0x108a   : > { %1844 = vmatpush.msra.mxu0 %v1784_v41 }
0x108c   : > { %1939 = vmatpush.msrb.mxu0 %v5151_v0 }
0x108e   : > { %1940 = vmatpush.msrb.mxu0 %v5150_v1 }
0x1090   : > { %1941 = vmatpush.msrb.mxu0 %v5149_v2 }
0x1092   : > { %1942 = vmatpush.msrb.mxu0 %v5148_v3  ;;  %v5187_v3 = vld [vmem:[%s7417_s1 + $0x298] sm:$0xff] }
0x10f9   : > { %v1678_v42 = vpop.xlane.xlu1 %1677 }
0x10fa   : > { %v1679_v43 = vsub.f32 %v1675_v39, %v1678_v42 }
0x10fc   : > { %v1680_v44 = vmul.f32 1.442695, %v1679_v43 }
0x10fe   : > { %5576 = vpow2.f32 %v1680_v44 }
0x1104   : > { %v5577_v46 = vpop.eup %5576 }
0x1105   : > { %v1682_v47 = vsel %vm332_vm1, %v5577_v46, 0.0 }
0x1106   : > { %1683 = vadd.xlane.f32.xlu2 %v1682_v47  ;;  %v5175_v47 = vld [vmem:[%s7419_s3 + $0x270] sm:$0xff] }
0x1179   : > { %v1684_v48 = vpop.xlane.xlu2 %1683 }
0x117a   : > { %5578 = vrcp.f32 %v1684_v48  ;;  %v5174_v48 = vld [vmem:[%s7419_s3 + $0x268] sm:$0xff] }
0x1180   : > { %v5579_v49 = vpop.eup %5578 }
0x1181   : > { %v1686_v50 = vmul.f32 %v5579_v49, %v5577_v46  ;;  %v5176_v46 = vld [vmem:[%s7419_s3 + $0x278] sm:$0xff]  ;;  %v5173_v49 = vld [vmem:[%s7419_s3 + $0x260] sm:$0xff] }
0x1183   : > { %5120 = vmatmul.msk.f32.vlgmr.msrb.gmra.mxu3 %vm332_vm1, %v1686_v50 }
0x1184   : > { %1914 = vmatpush.msrb.mxu3 %v5146_v51 }
0x1186   : > { %1915 = vmatpush.msrb.mxu3 %v5145_v52 }
0x1188   : > { %1916 = vmatpush.msrb.mxu3 %v5144_v53 }
0x118a   : > { %1917 = vmatpush.msrb.mxu3 %v5143_v55 }
0x118b   : > { %5138 = vmatmul.msk.f32.vlgmr.msra.gmra.mxu3 %vm332_vm1, %v1734_v10 }
0x1193   : > { %5147 = vmatmul.msk.f32.vlgmr.msrb.gmra.mxu3 %vm258_vm0, %v6261_v54 }
0x1206   : > { %v1707_v8 = vpop.f32.mrf.mxu3 }
0x1207   : > { %5142 = vmatmul.msk.f32.vlgmr.msra.gmra.mxu2 %vm332_vm1, %v1707_v8 }
0x120e   : > { %v1810_v45 = vpop.f32.mrf.mxu3 }
0x120f   : > { %v1813_v9 = vmul.f32 0.17677669, %v1810_v45 }
0x1211   : > { %v1814_v56 = vsel %vm5853_vm2, %v1813_v9, -1e+30 }
0x1212   : > { %v1815_v57 = vsel %vm332_vm1, %v1814_v56, -inf }
0x1213   : > { %1816 = vmax.xlane.f32.xlu0 %v1815_v57 }
0x1216   : > { %v1919_v26 = vpop.f32.mrf.mxu3 }
0x1286   : > { %v1817_v58 = vpop.xlane.xlu0 %1816 }
0x1287   : > { %v1818_v59 = vsub.f32 %v1814_v56, %v1817_v58 }
0x1289   : > { %v1819_v60 = vmul.f32 1.442695, %v1818_v59 }
0x128a   : > { %v6450_v33 = vpop.f32.mrf.mxu2 }
0x128b   : > { %5580 = vpow2.f32 %v1819_v60 }
0x1291   : > { %v5581_v61 = vpop.eup %5580 }
0x1292   : > { %v1821_v62 = vsel %vm332_vm1, %v5581_v61, 0.0 }
0x1293   : > { %1822 = vadd.xlane.f32.xlu1 %v1821_v62 }
0x1306   : > { %v1823_v4 = vpop.xlane.xlu1 %1822 }
0x1307   : > { %5582 = vrcp.f32 %v1823_v4  ;;  %v5192_v4 = vld [vmem:[%s7418_s2 + $0x298] sm:$0xff] }
0x130d   : > { %v5583_v5 = vpop.eup %5582 }
0x130e   : > { %v1825_v6 = vmul.f32 %v5583_v5, %v5581_v61  ;;  %v5181_v61 = vld [vmem:[%s7420_s4 + $0x98] sm:$0xff] }
0x130f   : > { %v5197_v5 = vld [vmem:[%s7419_s3 + $0x298] sm:$0xff] }
0x1310   : > { %5139 = vmatmul.msk.f32.vlgmr.msra.gmra.mxu0 %vm332_vm1, %v1825_v6  ;;  %v5186_v6 = vld [vmem:[%s7417_s1 + $0x290] sm:$0xff] }
0x1311   : > { %2054 = vmatpush.msra.mxu0 %v5161_v30  ;;  %v1236_v30 = vadd.f32 %v6174_v11, %v6194_v27 }
0x1318   : > { %5152 = vmatmul.msk.f32.vlgmr.msrb.gmra.mxu0 %vm258_vm0, %v6261_v54 }
0x138d   : > { %v1846_v17 = vpop.f32.mrf.mxu0 }
0x138e   : > { %5141 = vmatmul.msk.f32.vlgmr.msra.gmra.mxu1 %vm332_vm1, %v1846_v17  ;;  %v5189_v17 = vld [vmem:[%s7418_s2 + $0x280] sm:$0xff] }
0x138f   : > { %2077 = vmatpush.msra.mxu1 %v5166_v16  ;;  %v5184_v16 = vld [vmem:[%s7417_s1 + $0x280] sm:$0xff] }
0x1391   : > { %2078 = vmatpush.msra.mxu1 %v5165_v19  ;;  %v5194_v19 = vld [vmem:[%s7419_s3 + $0x280] sm:$0xff] }
0x1393   : > { %2079 = vmatpush.msra.mxu1 %v5164_v20  ;;  %v5206_v20 = vld [vmem:[%s7417_s1 + $0x2b8] sm:$0xff] }
0x1395   : > { %v1944_v23 = vpop.f32.mrf.mxu0  ;;  %2080 = vmatpush.msra.mxu1 %v5163_v21  ;;  %v5211_v21 = vld [vmem:[%s7418_s2 + $0x2b8] sm:$0xff] }
0x1396   : > { %5157 = vmatmul.msk.f32.vlgmr.msrb.gmra.mxu1 %vm258_vm0, %v6261_v54  ;;  %5158 = vmatpush.xpose.msk.msrb.mxu2 %vm332_vm1, %v1944_v23  ;;  %v5210_v23 = vld [vmem:[%s7418_s2 + $0x2b0] sm:$0xff] }
0x1399   : > { %5159 = vmatmul.msk.f32.vlgmr.msrb.gmra.mxu2 %vm332_vm1, %v1919_v26  ;;  %v5209_v26 = vld [vmem:[%s7418_s2 + $0x2a8] sm:$0xff] }
0x139a   : > { %2102 = vmatpush.msra.mxu2 %v5171_v22  ;;  %v5205_v22 = vld [vmem:[%s7417_s1 + $0x2b0] sm:$0xff] }
0x139c   : > { %2103 = vmatpush.msra.mxu2 %v5170_v24  ;;  %v5204_v24 = vld [vmem:[%s7417_s1 + $0x2a8] sm:$0xff] }
0x139e   : > { %2104 = vmatpush.msra.mxu2 %v5169_v28  ;;  %5167 = vmatmul.msk.f32.vlgmr.msra.gmra.mxu1 %vm258_vm0, %v6261_v54  ;;  %v5203_v28 = vld [vmem:[%s7417_s1 + $0x2a0] sm:$0xff] }
0x13a0   : > { %2105 = vmatpush.msra.mxu2 %v5168_v29  ;;  %v5208_v29 = vld [vmem:[%s7418_s2 + $0x2a0] sm:$0xff] }
0x13a1   : > { %5172 = vmatmul.msk.f32.vlgmr.msra.gmra.mxu2 %vm258_vm0, %v6261_v54 }
0x13a2   : > { %2217 = vmatpush.msrb.mxu2 %v5181_v61 }
0x140b   : > { %v6448_v31 = vpop.f32.mrf.mxu1 }
0x1413   : > { %v1969_v32 = vpop.f32.mrf.mxu1 }
0x1414   : > { %2029 = vmatpush.msra.mxu3 %v1969_v32  ;;  %v1400_v32 = vadd.f32 %v6299_v63, %v1236_v30 }
0x1416   : > { %2127 = vmatpush.msrb.mxu3 %v5176_v46  ;;  %v5213_v46 = vld [vmem:[%s7419_s3 + $0x2a0] sm:$0xff] }
0x1418   : > { %2128 = vmatpush.msrb.mxu3 %v5175_v47 }
0x141a   : > { %2129 = vmatpush.msrb.mxu3 %v5174_v48 }
0x141b   : > { %v2082_v55 = vpop.f32.mrf.mxu1 }
0x141c   : > { %v1995_v34 = vpop.f32.mrf.mxu2  ;;  %2130 = vmatpush.msrb.mxu3 %v5173_v49 }
0x141d   : > { %v1998_v35 = vmul.f32 0.17677669, %v1995_v34  ;;  %v1895_v34 = vadd.f32 %v6450_v33, %v6448_v31 }
0x141f   : > { %v1999_v37 = vsel %vm5853_vm2, %v1998_v35, -1e+30  ;;  %v1563_v35 = vadd.f32 %v6352_v36, %v1400_v32  ;;  %v5216_v36 = vld [vmem:[%s7419_s3 + $0x2b8] sm:$0xff]  ;;  %v5246_v32 = vld [vmem:[%s7417_s1 + $0x2f0] sm:$0xff] }
0x1420   : > { %v2000_v38 = vsel %vm332_vm1, %v1999_v37, -inf }
0x1421   : > { %2001 = vmax.xlane.f32.xlu2 %v2000_v38 }
0x1424   : > { %v2107_v39 = vpop.f32.mrf.mxu2 }
0x1425   : > { %5178 = vmatpush.xpose.msk.msrb.mxu0 %vm332_vm1, %v2107_v39  ;;  %v5539_v39 = vld [vmem:[%s7421_s5 + $0x4] ss:$0 sm:$0xff] }
0x1494   : > { %v2002_v40 = vpop.xlane.xlu2 %2001 }
0x1495   : > { %v2003_v41 = vsub.f32 %v1999_v37, %v2002_v40  ;;  %v5538_v37 = vld [vmem:[%s7421_s5 + $0x1] ss:$0 sm:$0xff] }
0x1496   : > { %v1569_v11 = vadd.f32 %v5538_v37, %v1563_v35  ;;  %v5244_v35 = vld [vmem:[%s7417_s1 + $0x2e0] sm:$0xff]  ;;  %v5252_v37 = vld [vmem:[%s7418_s2 + $0x2f8] sm:$0xff] }
0x1497   : > { %v2004_v42 = vmul.f32 1.442695, %v2003_v41 }
0x1499   : > { %5584 = vpow2.f32 %v2004_v42 }
0x149f   : > { %v5585_v43 = vpop.eup %5584 }
0x14a0   : > { %v2006_v44 = vsel %vm332_vm1, %v5585_v43, 0.0 }
0x14a1   : > { %2007 = vadd.xlane.f32.xlu0 %v2006_v44  ;;  %v5214_v44 = vld [vmem:[%s7419_s3 + $0x2a8] sm:$0xff] }
0x1514   : > { %v2008_v50 = vpop.xlane.xlu0 %2007 }
0x1515   : > { %5586 = vrcp.f32 %v2008_v50 }
0x151b   : > { %v5587_v51 = vpop.eup %5586 }
0x151c   : > { %v2010_v52 = vmul.f32 %v5587_v51, %v5585_v43  ;;  %v5215_v43 = vld [vmem:[%s7419_s3 + $0x2b0] sm:$0xff] }
0x151e   : > { %5160 = vmatmul.msk.f32.vlgmr.msra.gmra.mxu3 %vm332_vm1, %v2010_v52 }
0x151f   : > { %2251 = vmatpush.msra.mxu3 %v5187_v3 }
0x1521   : > { %2252 = vmatpush.msra.mxu3 %v5186_v6 }
0x1523   : > { %2253 = vmatpush.msra.mxu3 %v5185_v13 }
0x1525   : > { %2254 = vmatpush.msra.mxu3 %v5184_v16  ;;  %v5230_v16 = vld [vmem:[%s7418_s2 + $0x2c8] sm:$0xff] }
0x1526   : > { %5177 = vmatmul.msk.f32.vlgmr.msrb.gmra.mxu3 %vm258_vm0, %v6261_v54 }
0x15a1   : > { %v2031_v53 = vpop.f32.mrf.mxu3 }
0x15a2   : > { %5162 = vmatmul.msk.f32.vlgmr.msra.gmra.mxu0 %vm332_vm1, %v2031_v53 }
0x15a3   : > { %2276 = vmatpush.msra.mxu0 %v5192_v4 }
0x15a5   : > { %2277 = vmatpush.msra.mxu0 %v5191_v7 }
0x15a7   : > { %2278 = vmatpush.msra.mxu0 %v5190_v14  ;;  %v5232_v14 = vld [vmem:[%s7418_s2 + $0x2d8] sm:$0xff] }
0x15a9   : > { %v2132_v10 = vpop.f32.mrf.mxu3  ;;  %2279 = vmatpush.msra.mxu0 %v5189_v17  ;;  %v5229_v17 = vld [vmem:[%s7418_s2 + $0x2c0] sm:$0xff] }
0x15aa   : > { %5179 = vmatmul.msk.f32.vlgmr.msrb.gmra.mxu0 %vm332_vm1, %v2082_v55  ;;  %2192 = vmatpush.msrb.mxu1 %v2132_v10 }
0x15ab   : > { %2390 = vmatpush.msrb.mxu0 %v5206_v20 }
0x15ac   : > { %2301 = vmatpush.msra.mxu1 %v5197_v5 }
0x15ad   : > { %2391 = vmatpush.msrb.mxu0 %v5205_v22  ;;  %v5221_v22 = vld [vmem:[%s7420_s4 + $0xa8] sm:$0xff] }
0x15ae   : > { %2302 = vmatpush.msra.mxu1 %v5196_v12 }
0x15af   : > { %2392 = vmatpush.msrb.mxu0 %v5204_v24  ;;  %v5236_v24 = vld [vmem:[%s7419_s3 + $0x2d0] sm:$0xff] }
0x15b0   : > { %2303 = vmatpush.msra.mxu1 %v5195_v15  ;;  %v5231_v15 = vld [vmem:[%s7418_s2 + $0x2d0] sm:$0xff] }
0x15b1   : > { %2393 = vmatpush.msrb.mxu0 %v5203_v28  ;;  %v5234_v28 = vld [vmem:[%s7419_s3 + $0x2c0] sm:$0xff] }
0x15b2   : > { %2304 = vmatpush.msra.mxu1 %v5194_v19 }
0x161f   : > { %v6474_v25 = vpop.f32.mrf.mxu0 }
0x1620   : > { %v2059_v38 = vadd.f32 %v6474_v25, %v1895_v34  ;;  %v5245_v34 = vld [vmem:[%s7417_s1 + $0x2e8] sm:$0xff] }
0x1627   : > { %v2158_v8 = vpop.f32.mrf.mxu0 }
0x1628   : > { %v2161_v45 = vmul.f32 0.17677669, %v2158_v8 }
0x162a   : > { %v2162_v9 = vsel %vm5853_vm2, %v2161_v45, -1e+30 }
0x162b   : > { %v2163_v56 = vsel %vm332_vm1, %v2162_v9, -inf }
0x162c   : > { %2164 = vmax.xlane.f32.xlu1 %v2163_v56 }
0x169f   : > { %v2165_v57 = vpop.xlane.xlu1 %2164 }
0x16a0   : > { %v2166_v54 = vsub.f32 %v2162_v9, %v2165_v57 }
0x16a2   : > { %v2167_v58 = vmul.f32 1.442695, %v2166_v54  ;;  %v5227_v54 = vld [vmem:[%s7417_s1 + $0x2d8] sm:$0xff] }
0x16a4   : > { %5588 = vpow2.f32 %v2167_v58  ;;  %v5226_v58 = vld [vmem:[%s7417_s1 + $0x2d0] sm:$0xff] }
0x16aa   : > { %v5589_v59 = vpop.eup %5588 }
0x16ab   : > { %v2169_v60 = vsel %vm332_vm1, %v5589_v59, 0.0 }
0x16ac   : > { %2170 = vadd.xlane.f32.xlu2 %v2169_v60  ;;  %v5224_v60 = vld [vmem:[%s7417_s1 + $0x2c0] sm:$0xff] }
0x171f   : > { %v2171_v62 = vpop.xlane.xlu2 %2170 }
0x1720   : > { %5590 = vrcp.f32 %v2171_v62  ;;  %v5202_v62 = vld [vmem:[%s7420_s4 + $0xa0] sm:$0xff] }
0x1726   : > { %v5591_v0 = vpop.eup %5590 }
0x1727   : > { %v2173_v1 = vmul.f32 %v5591_v0, %v5589_v59  ;;  %v5225_v59 = vld [vmem:[%s7417_s1 + $0x2c8] sm:$0xff] }
0x1729   : > { %5180 = vmatmul.msk.f32.vlgmr.msrb.gmra.mxu1 %vm332_vm1, %v2173_v1 }
0x172a   : > { %2415 = vmatpush.msrb.mxu1 %v5211_v21 }
0x172c   : > { %2416 = vmatpush.msrb.mxu1 %v5210_v23  ;;  %v5237_v23 = vld [vmem:[%s7419_s3 + $0x2d8] sm:$0xff] }
0x172e   : > { %2417 = vmatpush.msrb.mxu1 %v5209_v26  ;;  %v5235_v26 = vld [vmem:[%s7419_s3 + $0x2c8] sm:$0xff] }
0x1730   : > { %2418 = vmatpush.msrb.mxu1 %v5208_v29  ;;  %v5247_v29 = vld [vmem:[%s7417_s1 + $0x2f8] sm:$0xff] }
0x17a6   : > { %v2194_v2 = vpop.f32.mrf.mxu1 }
0x17a7   : > { %5182 = vmatmul.msk.f32.vlgmr.msrb.gmra.mxu2 %vm332_vm1, %v2194_v2 }
0x182a   : > { %v2219_v40 = vpop.f32.mrf.mxu2 }
0x182b   : > { %v2222_v41 = vadd.f32 %v2219_v40, %v2059_v38 }
0x182d   : > { %v2228_v27 = vadd.f32 %v5539_v39, %v2222_v41  ;;  %v5251_v39 = vld [vmem:[%s7418_s2 + $0x2f0] sm:$0xff]  ;;  %v5250_v41 = vld [vmem:[%s7418_s2 + $0x2e8] sm:$0xff] }
0x182f   : > { %v2229_v63 = vadd.f32 %v2228_v27, %v1569_v11  ;;  %v5249_v11 = vld [vmem:[%s7418_s2 + $0x2e0] sm:$0xff]  ;;  %v5242_v27 = vld [vmem:[%s7420_s4 + $0xb0] sm:$0xff] }
0x1831   : > { %v6558_v42 = vmul.f32 0.5, %v2229_v63 }
0x1833   : > { %5188 = vmatmul.msk.f32.vlgmr.msra.gmra.mxu3 %vm258_vm0, %v6558_v42  ;;  %5193 = vmatmul.msk.f32.vlgmr.msra.gmra.mxu0 %vm258_vm0, %v6558_v42 }
0x1834   : > { %5198 = vmatmul.msk.f32.vlgmr.msra.gmra.mxu1 %vm258_vm0, %v6558_v42 }
0x1835   : > { %2530 = vmatpush.msra.mxu1 %v5221_v22 }
0x183b   : > { %5207 = vmatmul.msk.f32.vlgmr.msrb.gmra.mxu0 %vm258_vm0, %v6558_v42 }
0x183c   : > { %5212 = vmatmul.msk.f32.vlgmr.msrb.gmra.mxu1 %vm258_vm0, %v6558_v42 }
0x183d   : > { %2625 = vmatpush.msrb.mxu1 %v5237_v23 }
0x183f   : > { %2626 = vmatpush.msrb.mxu1 %v5236_v24 }
0x1841   : > { %2627 = vmatpush.msrb.mxu1 %v5235_v26 }
0x1843   : > { %2628 = vmatpush.msrb.mxu1 %v5234_v28 }
0x18b0   : > { %v2281_v31 = vpop.f32.mrf.mxu0 }
0x18b1   : > { %v2306_v33 = vpop.f32.mrf.mxu1  ;;  %5199 = vmatpush.xpose.msk.msra.mxu2 %vm332_vm1, %v2281_v31 }
0x18b2   : > { %2366 = vmatpush.msrb.mxu3 %v2306_v33 }
0x18b5   : > { %2440 = vmatpush.msrb.mxu2 %v5216_v36 }
0x18b6   : > { %v2256_v47 = vpop.f32.mrf.mxu3 }
0x18b7   : > { %2441 = vmatpush.msrb.mxu2 %v5215_v43 }
0x18b8   : > { %5200 = vmatmul.msk.f32.vlgmr.msra.gmra.mxu2 %vm332_vm1, %v2256_v47  ;;  %v2395_v61 = vpop.f32.mrf.mxu0 }
0x18b9   : > { %2442 = vmatpush.msrb.mxu2 %v5214_v44  ;;  %v2420_v48 = vpop.f32.mrf.mxu1 }
0x18ba   : > { %5218 = vmatpush.xpose.msk.msra.mxu3 %vm332_vm1, %v2420_v48 }
0x18bb   : > { %2443 = vmatpush.msrb.mxu2 %v5213_v46 }
0x18bd   : > { %2553 = vmatpush.msra.mxu2 %v5202_v62 }
0x18c0   : > { %5217 = vmatmul.msk.f32.vlgmr.msrb.gmra.mxu2 %vm258_vm0, %v6558_v42 }
0x193b   : > { %v2332_v49 = vpop.f32.mrf.mxu2 }
0x193c   : > { %v2335_v50 = vmul.f32 0.17677669, %v2332_v49 }
0x193e   : > { %v2336_v51 = vsel %vm5853_vm2, %v2335_v50, -1e+30 }
0x193f   : > { %v2337_v52 = vsel %vm332_vm1, %v2336_v51, -inf }
0x1940   : > { %2338 = vmax.xlane.f32.xlu0 %v2337_v52 }
0x1943   : > { %v2445_v53 = vpop.f32.mrf.mxu2 }
0x1944   : > { %2505 = vmatpush.msra.mxu0 %v2445_v53 }
0x1946   : > { %2600 = vmatpush.msrb.mxu0 %v5232_v14  ;;  %v2891_v14 = vld [vmem:[%s7417_s1 + $0x8] sm:$0xff] }
0x1948   : > { %2601 = vmatpush.msrb.mxu0 %v5231_v15  ;;  %v2916_v15 = vld [vmem:[%s7418_s2 + $0x10] sm:$0xff] }
0x194a   : > { %2602 = vmatpush.msrb.mxu0 %v5230_v16  ;;  %v2890_v16 = vld [vmem:[%s7417_s1] sm:$0xff] }
0x194c   : > { %2603 = vmatpush.msrb.mxu0 %v5229_v17  ;;  %v2915_v17 = vld [vmem:[%s7418_s2 + $0x8] sm:$0xff] }
0x19b3   : > { %v2339_v55 = vpop.xlane.xlu0 %2338 }
0x19b4   : > { %v2340_v10 = vsub.f32 %v2336_v51, %v2339_v55  ;;  %v5257_v55 = vld [vmem:[%s7419_s3 + $0x2f8] sm:$0xff] }
0x19b6   : > { %v2341_v25 = vmul.f32 1.442695, %v2340_v10  ;;  %v5256_v10 = vld [vmem:[%s7419_s3 + $0x2f0] sm:$0xff] }
0x19b8   : > { %5592 = vpow2.f32 %v2341_v25  ;;  %v5255_v25 = vld [vmem:[%s7419_s3 + $0x2e8] sm:$0xff] }
0x19be   : > { %v5593_v8 = vpop.eup %5592 }
0x19bf   : > { %v2343_v45 = vsel %vm332_vm1, %v5593_v8, 0.0 }
0x19c0   : > { %2344 = vadd.xlane.f32.xlu1 %v2343_v45 }
0x1a33   : > { %v2345_v9 = vpop.xlane.xlu1 %2344 }
0x1a34   : > { %5594 = vrcp.f32 %v2345_v9 }
0x1a3a   : > { %v5595_v56 = vpop.eup %5594 }
0x1a3b   : > { %v2347_v57 = vmul.f32 %v5595_v56, %v5593_v8  ;;  %v5254_v8 = vld [vmem:[%s7419_s3 + $0x2e0] sm:$0xff] }
0x1a3d   : > { %5201 = vmatmul.msk.f32.vlgmr.msrb.gmra.mxu3 %vm332_vm1, %v2347_v57 }
0x1a3e   : > { %2575 = vmatpush.msrb.mxu3 %v5227_v54 }
0x1a40   : > { %2576 = vmatpush.msrb.mxu3 %v5226_v58 }
0x1a42   : > { %2577 = vmatpush.msrb.mxu3 %v5225_v59 }
0x1a44   : > { %2578 = vmatpush.msrb.mxu3 %v5224_v60 }
0x1a45   : > { %5219 = vmatmul.msk.f32.vlgmr.msra.gmra.mxu3 %vm332_vm1, %v2395_v61 }
0x1a4d   : > { %5228 = vmatmul.msk.f32.vlgmr.msrb.gmra.mxu3 %vm258_vm0, %v6558_v42 }
0x1ac0   : > { %v2368_v0 = vpop.f32.mrf.mxu3 }
0x1ac1   : > { %5223 = vmatmul.msk.f32.vlgmr.msra.gmra.mxu2 %vm332_vm1, %v2368_v0 }
0x1ac8   : > { %v2471_v1 = vpop.f32.mrf.mxu3 }
0x1ac9   : > { %v2474_v2 = vmul.f32 0.17677669, %v2471_v1 }
0x1acb   : > { %v2475_v3 = vsel %vm5853_vm2, %v2474_v2, -1e+30 }
0x1acc   : > { %v2476_v4 = vsel %vm332_vm1, %v2475_v3, -inf }
0x1acd   : > { %2477 = vmax.xlane.f32.xlu2 %v2476_v4 }
0x1ad0   : > { %v2580_v40 = vpop.f32.mrf.mxu3 }
0x1b40   : > { %v2478_v5 = vpop.xlane.xlu2 %2477 }
0x1b41   : > { %v2479_v6 = vsub.f32 %v2475_v3, %v2478_v5 }
0x1b43   : > { %v2480_v7 = vmul.f32 1.442695, %v2479_v6 }
0x1b44   : > { %v2555_v63 = vpop.f32.mrf.mxu2 }
0x1b45   : > { %5596 = vpow2.f32 %v2480_v7  ;;  %v2893_v7 = vld [vmem:[%s7417_s1 + $0x18] sm:$0xff] }
0x1b4b   : > { %v5597_v12 = vpop.eup %5596 }
0x1b4c   : > { %v2482_v13 = vsel %vm332_vm1, %v5597_v12, 0.0 }
0x1b4d   : > { %2483 = vadd.xlane.f32.xlu0 %v2482_v13  ;;  %v2917_v13 = vld [vmem:[%s7418_s2 + $0x18] sm:$0xff] }
0x1bc0   : > { %v2484_v19 = vpop.xlane.xlu0 %2483 }
0x1bc1   : > { %5598 = vrcp.f32 %v2484_v19  ;;  %v5262_v19 = vld [vmem:[%s7420_s4 + $0xb8] sm:$0xff] }
0x1bc7   : > { %v5599_v20 = vpop.eup %5598 }
0x1bc8   : > { %v2486_v21 = vmul.f32 %v5599_v20, %v5597_v12  ;;  %v2892_v12 = vld [vmem:[%s7417_s1 + $0x10] sm:$0xff]  ;;  %v2914_v20 = vld [vmem:[%s7418_s2] sm:$0xff] }
0x1bca   : > { %5220 = vmatmul.msk.f32.vlgmr.msra.gmra.mxu0 %vm332_vm1, %v2486_v21  ;;  %v6735_v21 = vld [vmem:[%s5833_s14] sm:$0xff] }
0x1bcb   : > { %2715 = vmatpush.msra.mxu0 %v5242_v27  ;;  %v5274_v27 = vld [vmem:[%s7417_s1 + $0x38] sm:$0xff] }
0x1bd2   : > { %5233 = vmatmul.msk.f32.vlgmr.msrb.gmra.mxu0 %vm258_vm0, %v6558_v42 }
0x1c47   : > { %v2507_v30 = vpop.f32.mrf.mxu0 }
0x1c48   : > { %5222 = vmatmul.msk.f32.vlgmr.msra.gmra.mxu1 %vm332_vm1, %v2507_v30 }
0x1c49   : > { %2738 = vmatpush.msra.mxu1 %v5247_v29 }
0x1c4b   : > { %2739 = vmatpush.msra.mxu1 %v5246_v32 }
0x1c4d   : > { %2740 = vmatpush.msra.mxu1 %v5245_v34 }
0x1c4f   : > { %v2605_v38 = vpop.f32.mrf.mxu0  ;;  %2741 = vmatpush.msra.mxu1 %v5244_v35 }
0x1c50   : > { %5238 = vmatmul.msk.f32.vlgmr.msrb.gmra.mxu1 %vm258_vm0, %v6558_v42  ;;  %5239 = vmatpush.xpose.msk.msrb.mxu2 %vm332_vm1, %v2605_v38 }
0x1c53   : > { %5240 = vmatmul.msk.f32.vlgmr.msrb.gmra.mxu2 %vm332_vm1, %v2580_v40  ;;  %v2940_v40 = vld [vmem:[%s7419_s3 + $0x10] sm:$0xff] }
0x1c54   : > { %2763 = vmatpush.msra.mxu2 %v5252_v37 }
0x1c56   : > { %2764 = vmatpush.msra.mxu2 %v5251_v39  ;;  %v2941_v39 = vld [vmem:[%s7419_s3 + $0x18] sm:$0xff] }
0x1c58   : > { %2765 = vmatpush.msra.mxu2 %v5250_v41  ;;  %5248 = vmatmul.msk.f32.vlgmr.msra.gmra.mxu1 %vm258_vm0, %v6558_v42  ;;  %v2939_v41 = vld [vmem:[%s7419_s3 + $0x8] sm:$0xff] }
0x1c5a   : > { %2766 = vmatpush.msra.mxu2 %v5249_v11  ;;  %v2938_v11 = vld [vmem:[%s7419_s3] sm:$0xff] }
0x1c5b   : > { %5253 = vmatmul.msk.f32.vlgmr.msra.gmra.mxu2 %vm258_vm0, %v6558_v42 }
0x1c5c   : > { %2878 = vmatpush.msrb.mxu2 %v5262_v19 }
0x1cc5   : > { %v2532_v36 = vpop.f32.mrf.mxu1 }
0x1cc6   : > { %v2556_v31 = vadd.f32 %v2555_v63, %v2532_v36  ;;  %v5279_v63 = vld [vmem:[%s7418_s2 + $0x38] sm:$0xff]  ;;  %v5278_v36 = vld [vmem:[%s7418_s2 + $0x30] sm:$0xff] }
0x1ccd   : > { %v2630_v33 = vpop.f32.mrf.mxu1 }
0x1cce   : > { %2690 = vmatpush.msra.mxu3 %v2630_v33  ;;  %v5273_v33 = vld [vmem:[%s7417_s1 + $0x30] sm:$0xff] }
0x1cd0   : > { %2788 = vmatpush.msrb.mxu3 %v5257_v55  ;;  %v5284_v55 = vld [vmem:[%s7419_s3 + $0x38] sm:$0xff] }
0x1cd2   : > { %2789 = vmatpush.msrb.mxu3 %v5256_v10  ;;  %v5283_v10 = vld [vmem:[%s7419_s3 + $0x30] sm:$0xff] }
0x1cd4   : > { %2790 = vmatpush.msrb.mxu3 %v5255_v25  ;;  %v5282_v25 = vld [vmem:[%s7419_s3 + $0x28] sm:$0xff] }
0x1cd5   : > { %v2743_v54 = vpop.f32.mrf.mxu1 }
0x1cd6   : > { %v2656_v43 = vpop.f32.mrf.mxu2  ;;  %2791 = vmatpush.msrb.mxu3 %v5254_v8  ;;  %v5281_v8 = vld [vmem:[%s7419_s3 + $0x20] sm:$0xff] }
0x1cd7   : > { %v2659_v44 = vmul.f32 0.17677669, %v2656_v43  ;;  %v5276_v43 = vld [vmem:[%s7418_s2 + $0x20] sm:$0xff] }
0x1cd9   : > { %v2660_v46 = vsel %vm5853_vm2, %v2659_v44, -1e+30  ;;  %v5272_v44 = vld [vmem:[%s7417_s1 + $0x28] sm:$0xff] }
0x1cda   : > { %v2661_v47 = vsel %vm332_vm1, %v2660_v46, -inf }
0x1cdb   : > { %2662 = vmax.xlane.f32.xlu1 %v2661_v47 }
0x1cde   : > { %v2768_v48 = vpop.f32.mrf.mxu2 }
0x1cdf   : > { %5259 = vmatpush.xpose.msk.msrb.mxu0 %vm332_vm1, %v2768_v48 }
0x1d4e   : > { %v2663_v49 = vpop.xlane.xlu1 %2662 }
0x1d4f   : > { %v2664_v50 = vsub.f32 %v2660_v46, %v2663_v49  ;;  %v5271_v46 = vld [vmem:[%s7417_s1 + $0x20] sm:$0xff] }
0x1d51   : > { %v2665_v51 = vmul.f32 1.442695, %v2664_v50 }
0x1d53   : > { %5600 = vpow2.f32 %v2665_v51 }
0x1d59   : > { %v5601_v52 = vpop.eup %5600 }
0x1d5a   : > { %v2667_v53 = vsel %vm332_vm1, %v5601_v52, 0.0 }
0x1d5b   : > { %2668 = vadd.xlane.f32.xlu2 %v2667_v53 }
0x1dce   : > { %v2669_v45 = vpop.xlane.xlu2 %2668 }
0x1dcf   : > { %5602 = vrcp.f32 %v2669_v45 }
0x1dd5   : > { %v5603_v9 = vpop.eup %5602 }
0x1dd6   : > { %v2671_v56 = vmul.f32 %v5603_v9, %v5601_v52 }
0x1dd8   : > { %5241 = vmatmul.msk.f32.vlgmr.msra.gmra.mxu3 %vm332_vm1, %v2671_v56 }
0x1dd9   : > { %2906 = vmatpush.msra.mxu3 %v2893_v7  ;;  %v5294_v7 = vld [vmem:[%s7417_s1 + $0x50] sm:$0xff] }
0x1ddb   : > { %2907 = vmatpush.msra.mxu3 %v2892_v12  ;;  %v5300_v12 = vld [vmem:[%s7418_s2 + $0x58] sm:$0xff] }
0x1ddd   : > { %2908 = vmatpush.msra.mxu3 %v2891_v14  ;;  %v5299_v14 = vld [vmem:[%s7418_s2 + $0x50] sm:$0xff] }
0x1ddf   : > { %2909 = vmatpush.msra.mxu3 %v2890_v16  ;;  %v5298_v16 = vld [vmem:[%s7418_s2 + $0x48] sm:$0xff] }
0x1de0   : > { %5258 = vmatmul.msk.f32.vlgmr.msrb.gmra.mxu3 %vm258_vm0, %v6558_v42 }
0x1de8   : > { %5265 = vmatmul.msk.f32.vlgmr.msra.gmra.mxu3 %vm258_vm0, %v6735_v21 }
0x1e5b   : > { %v2692_v57 = vpop.f32.mrf.mxu3 }
0x1e5c   : > { %5243 = vmatmul.msk.f32.vlgmr.msra.gmra.mxu0 %vm332_vm1, %v2692_v57 }
0x1e5d   : > { %2930 = vmatpush.msra.mxu0 %v2917_v13  ;;  %v5293_v13 = vld [vmem:[%s7417_s1 + $0x48] sm:$0xff] }
0x1e5f   : > { %2931 = vmatpush.msra.mxu0 %v2916_v15  ;;  %v5292_v15 = vld [vmem:[%s7417_s1 + $0x40] sm:$0xff] }
0x1e61   : > { %2932 = vmatpush.msra.mxu0 %v2915_v17  ;;  %v5297_v17 = vld [vmem:[%s7418_s2 + $0x40] sm:$0xff] }
0x1e63   : > { %v2793_v58 = vpop.f32.mrf.mxu3  ;;  %2933 = vmatpush.msra.mxu0 %v2914_v20 }
0x1e64   : > { %5260 = vmatmul.msk.f32.vlgmr.msrb.gmra.mxu0 %vm332_vm1, %v2743_v54  ;;  %2853 = vmatpush.msrb.mxu1 %v2793_v58  ;;  %v3024_v54 = vld [vmem:[%s7420_s4] sm:$0xff] }
0x1e65   : > { %3042 = vmatpush.msrb.mxu0 %v5274_v27 }
0x1e66   : > { %2954 = vmatpush.msra.mxu1 %v2941_v39  ;;  %v5304_v39 = vld [vmem:[%s7419_s3 + $0x50] sm:$0xff] }
0x1e67   : > { %3043 = vmatpush.msrb.mxu0 %v5273_v33 }
0x1e68   : > { %2955 = vmatpush.msra.mxu1 %v2940_v40  ;;  %v5303_v40 = vld [vmem:[%s7419_s3 + $0x48] sm:$0xff] }
0x1e69   : > { %3044 = vmatpush.msrb.mxu0 %v5272_v44 }
0x1e6a   : > { %2956 = vmatpush.msra.mxu1 %v2939_v41  ;;  %v5302_v41 = vld [vmem:[%s7419_s3 + $0x40] sm:$0xff] }
0x1e6b   : > { %v2911_v29 = vpop.f32.mrf.mxu3  ;;  %3045 = vmatpush.msrb.mxu0 %v5271_v46  ;;  %v5319_v46 = vld [vmem:[%s7418_s2 + $0x70] sm:$0xff] }
0x1e6c   : > { %5266 = vmatmul.msk.f32.vlgmr.msra.gmra.mxu0 %vm258_vm0, %v6735_v21  ;;  %2957 = vmatpush.msra.mxu1 %v2938_v11 }
0x1e74   : > { %5275 = vmatmul.msk.f32.vlgmr.msrb.gmra.mxu0 %vm258_vm0, %v6735_v21 }
0x1ed9   : > { %v2717_v59 = vpop.f32.mrf.mxu0 }
0x1eda   : > { %v2720_v60 = vadd.f32 %v2717_v59, %v2556_v31  ;;  %v5277_v31 = vld [vmem:[%s7418_s2 + $0x28] sm:$0xff] }
0x1ee1   : > { %v2819_v61 = vpop.f32.mrf.mxu0 }
0x1ee2   : > { %v2822_v62 = vmul.f32 0.17677669, %v2819_v61 }
0x1ee4   : > { %v2823_v0 = vsel %vm5853_vm2, %v2822_v62, -1e+30 }
0x1ee5   : > { %v2824_v1 = vsel %vm332_vm1, %v2823_v0, -inf }
0x1ee6   : > { %2825 = vmax.xlane.f32.xlu0 %v2824_v1 }
0x1ee9   : > { %v2935_v26 = vpop.f32.mrf.mxu0 }
0x1eea   : > { %5268 = vmatpush.xpose.msk.msra.mxu2 %vm332_vm1, %v2935_v26 }
0x1ef1   : > { %v3047_v57 = vpop.f32.mrf.mxu0 }
0x1f59   : > { %v2826_v2 = vpop.xlane.xlu0 %2825 }
0x1f5a   : > { %v2827_v3 = vsub.f32 %v2823_v0, %v2826_v2 }
0x1f5c   : > { %v2828_v4 = vmul.f32 1.442695, %v2827_v3 }
0x1f5e   : > { %5604 = vpow2.f32 %v2828_v4 }
0x1f64   : > { %v5605_v5 = vpop.eup %5604 }
0x1f65   : > { %v2830_v6 = vsel %vm332_vm1, %v5605_v5, 0.0 }
0x1f66   : > { %2831 = vadd.xlane.f32.xlu1 %v2830_v6  ;;  %v5295_v6 = vld [vmem:[%s7417_s1 + $0x58] sm:$0xff] }
0x1fd9   : > { %v2832_v22 = vpop.xlane.xlu1 %2831 }
0x1fda   : > { %5606 = vrcp.f32 %v2832_v22 }
0x1fe0   : > { %v5607_v23 = vpop.eup %5606 }
0x1fe1   : > { %v2834_v24 = vmul.f32 %v5607_v23, %v5605_v5  ;;  %v5289_v23 = vld [vmem:[%s7420_s4 + $0x8] sm:$0xff] }
0x1fe3   : > { %5261 = vmatmul.msk.f32.vlgmr.msrb.gmra.mxu1 %vm332_vm1, %v2834_v24 }
0x1fe4   : > { %3067 = vmatpush.msrb.mxu1 %v5279_v63 }
0x1fe6   : > { %3068 = vmatpush.msrb.mxu1 %v5278_v36 }
0x1fe8   : > { %3069 = vmatpush.msrb.mxu1 %v5277_v31 }
0x1fea   : > { %3070 = vmatpush.msrb.mxu1 %v5276_v43  ;;  %v5320_v43 = vld [vmem:[%s7418_s2 + $0x78] sm:$0xff] }
0x1feb   : > { %5267 = vmatmul.msk.f32.vlgmr.msra.gmra.mxu1 %vm258_vm0, %v6735_v21 }
0x1fec   : > { %3182 = vmatpush.msra.mxu1 %v5289_v23 }
0x1ff3   : > { %5280 = vmatmul.msk.f32.vlgmr.msrb.gmra.mxu1 %vm258_vm0, %v6735_v21 }
0x2060   : > { %v2855_v28 = vpop.f32.mrf.mxu1 }
0x2061   : > { %5263 = vmatmul.msk.f32.vlgmr.msrb.gmra.mxu2 %vm332_vm1, %v2855_v28 }
0x2062   : > { %3092 = vmatpush.msrb.mxu2 %v5284_v55  ;;  %v5314_v55 = vld [vmem:[%s7417_s1 + $0x70] sm:$0xff] }
0x2064   : > { %3093 = vmatpush.msrb.mxu2 %v5283_v10  ;;  %v5313_v10 = vld [vmem:[%s7417_s1 + $0x68] sm:$0xff] }
0x2066   : > { %3094 = vmatpush.msrb.mxu2 %v5282_v25  ;;  %v5312_v25 = vld [vmem:[%s7417_s1 + $0x60] sm:$0xff] }
0x2068   : > { %v2959_v52 = vpop.f32.mrf.mxu1  ;;  %3095 = vmatpush.msrb.mxu2 %v5281_v8  ;;  %v5310_v8 = vld [vmem:[%s7420_s4 + $0x10] sm:$0xff] }
0x2069   : > { %5269 = vmatmul.msk.f32.vlgmr.msra.gmra.mxu2 %vm332_vm1, %v2911_v29  ;;  %3019 = vmatpush.msrb.mxu3 %v2959_v52  ;;  %v5315_v52 = vld [vmem:[%s7417_s1 + $0x78] sm:$0xff] }
0x206a   : > { %3205 = vmatpush.msra.mxu2 %v3024_v54  ;;  %v5334_v54 = vld [vmem:[%s7417_s1 + $0x110] sm:$0xff] }
0x2070   : > { %v3072_v53 = vpop.f32.mrf.mxu1 }
0x2071   : > { %5286 = vmatpush.xpose.msk.msra.mxu3 %vm332_vm1, %v3072_v53  ;;  %5285 = vmatmul.msk.f32.vlgmr.msrb.gmra.mxu2 %vm258_vm0, %v6735_v21  ;;  %v5322_v53 = vld [vmem:[%s7419_s3 + $0x60] sm:$0xff] }
0x20e4   : > { %v2880_v30 = vpop.f32.mrf.mxu2 }
0x20e5   : > { %v6745_v32 = vadd.f32 %v2880_v30, %v2720_v60 }
0x20ec   : > { %v2985_v34 = vpop.f32.mrf.mxu2 }
0x20ed   : > { %v2988_v35 = vmul.f32 0.17677669, %v2985_v34 }
0x20ef   : > { %v2989_v37 = vsel %vm5853_vm2, %v2988_v35, -1e+30 }
0x20f0   : > { %v2990_v38 = vsel %vm332_vm1, %v2989_v37, -inf }
0x20f1   : > { %2991 = vmax.xlane.f32.xlu2 %v2990_v38  ;;  %v5305_v38 = vld [vmem:[%s7419_s3 + $0x58] sm:$0xff] }
0x20f2   : > { %3277 = vmatpush.msrb.mxu1 %v5305_v38 }
0x20f4   : > { %v3097_v58 = vpop.f32.mrf.mxu2  ;;  %3278 = vmatpush.msrb.mxu1 %v5304_v39 }
0x20f5   : > { %3157 = vmatpush.msra.mxu0 %v3097_v58  ;;  %v5333_v58 = vld [vmem:[%s7417_s1 + $0x108] sm:$0xff] }
0x20f6   : > { %3279 = vmatpush.msrb.mxu1 %v5303_v40 }
0x20f7   : > { %3252 = vmatpush.msrb.mxu0 %v5300_v12  ;;  %v5330_v12 = vld [vmem:[%s7420_s4 + $0x18] sm:$0xff] }
0x20f8   : > { %3280 = vmatpush.msrb.mxu1 %v5302_v41  ;;  %v5359_v41 = vld [vmem:[%s7418_s2 + $0x138] sm:$0xff] }
0x20f9   : > { %3253 = vmatpush.msrb.mxu0 %v5299_v14 }
0x20fb   : > { %3254 = vmatpush.msrb.mxu0 %v5298_v16 }
0x20fd   : > { %3255 = vmatpush.msrb.mxu0 %v5297_v17 }
0x2164   : > { %v2992_v47 = vpop.xlane.xlu2 %2991 }
0x2165   : > { %v2993_v48 = vsub.f32 %v2989_v37, %v2992_v47  ;;  %v5325_v47 = vld [vmem:[%s7419_s3 + $0x78] sm:$0xff] }
0x2167   : > { %v2994_v49 = vmul.f32 1.442695, %v2993_v48  ;;  %v5318_v48 = vld [vmem:[%s7418_s2 + $0x68] sm:$0xff] }
0x2169   : > { %5608 = vpow2.f32 %v2994_v49  ;;  %v5324_v49 = vld [vmem:[%s7419_s3 + $0x70] sm:$0xff] }
0x216f   : > { %v5609_v50 = vpop.eup %5608 }
0x2170   : > { %v2996_v51 = vsel %vm332_vm1, %v5609_v50, 0.0 }
0x2171   : > { %2997 = vadd.xlane.f32.xlu0 %v2996_v51  ;;  %v5323_v51 = vld [vmem:[%s7419_s3 + $0x68] sm:$0xff] }
0x21e4   : > { %v2998_v45 = vpop.xlane.xlu0 %2997 }
0x21e5   : > { %5610 = vrcp.f32 %v2998_v45 }
0x21eb   : > { %v5611_v9 = vpop.eup %5610 }
0x21ec   : > { %v3000_v56 = vmul.f32 %v5611_v9, %v5609_v50  ;;  %v5317_v50 = vld [vmem:[%s7418_s2 + $0x60] sm:$0xff] }
0x21ee   : > { %5270 = vmatmul.msk.f32.vlgmr.msrb.gmra.mxu3 %vm332_vm1, %v3000_v56 }
0x21ef   : > { %3227 = vmatpush.msrb.mxu3 %v5295_v6  ;;  %v5352_v6 = vld [vmem:[%s7417_s1 + $0x128] sm:$0xff] }
0x21f1   : > { %3228 = vmatpush.msrb.mxu3 %v5294_v7  ;;  %v5351_v7 = vld [vmem:[%s7417_s1 + $0x120] sm:$0xff] }
0x21f3   : > { %3229 = vmatpush.msrb.mxu3 %v5293_v13 }
0x21f5   : > { %3230 = vmatpush.msrb.mxu3 %v5292_v15 }
0x21f6   : > { %5287 = vmatmul.msk.f32.vlgmr.msra.gmra.mxu3 %vm332_vm1, %v3047_v57  ;;  %v5335_v57 = vld [vmem:[%s7417_s1 + $0x118] sm:$0xff] }
0x21fe   : > { %5296 = vmatmul.msk.f32.vlgmr.msrb.gmra.mxu3 %vm258_vm0, %v6735_v21 }
0x2271   : > { %v3021_v59 = vpop.f32.mrf.mxu3 }
0x2272   : > { %5291 = vmatmul.msk.f32.vlgmr.msra.gmra.mxu2 %vm332_vm1, %v3021_v59  ;;  %v5332_v59 = vld [vmem:[%s7417_s1 + $0x100] sm:$0xff] }
0x2279   : > { %v3123_v60 = vpop.f32.mrf.mxu3 }
0x227a   : > { %v3126_v61 = vmul.f32 0.17677669, %v3123_v60 }
0x227c   : > { %v3127_v62 = vsel %vm5853_vm2, %v3126_v61, -1e+30  ;;  %v5340_v61 = vld [vmem:[%s7418_s2 + $0x118] sm:$0xff] }
0x227d   : > { %v3128_v0 = vsel %vm332_vm1, %v3127_v62, -inf }
0x227e   : > { %3129 = vmax.xlane.f32.xlu1 %v3128_v0  ;;  %v5339_v0 = vld [vmem:[%s7418_s2 + $0x110] sm:$0xff] }
0x2281   : > { %v3232_v28 = vpop.f32.mrf.mxu3 }
0x22f1   : > { %v3130_v1 = vpop.xlane.xlu1 %3129 }
0x22f2   : > { %v3131_v2 = vsub.f32 %v3127_v62, %v3130_v1  ;;  %v5337_v1 = vld [vmem:[%s7418_s2 + $0x100] sm:$0xff] }
0x22f4   : > { %v3132_v3 = vmul.f32 1.442695, %v3131_v2 }
0x22f5   : > { %v6853_v29 = vpop.f32.mrf.mxu2 }
0x22f6   : > { %5612 = vpow2.f32 %v3132_v3  ;;  %v5354_v3 = vld [vmem:[%s7417_s1 + $0x138] sm:$0xff] }
0x22fc   : > { %v5613_v4 = vpop.eup %5612 }
0x22fd   : > { %v3134_v5 = vsel %vm332_vm1, %v5613_v4, 0.0 }
0x22fe   : > { %3135 = vadd.xlane.f32.xlu2 %v3134_v5  ;;  %v5353_v5 = vld [vmem:[%s7417_s1 + $0x130] sm:$0xff] }
0x2371   : > { %v3136_v19 = vpop.xlane.xlu2 %3135 }
0x2372   : > { %5614 = vrcp.f32 %v3136_v19 }
0x2378   : > { %v5615_v20 = vpop.eup %5614 }
0x2379   : > { %v3138_v22 = vmul.f32 %v5615_v20, %v5613_v4 }
0x237b   : > { %5288 = vmatmul.msk.f32.vlgmr.msra.gmra.mxu0 %vm332_vm1, %v3138_v22 }
0x237c   : > { %3367 = vmatpush.msra.mxu0 %v5310_v8 }
0x2383   : > { %5301 = vmatmul.msk.f32.vlgmr.msrb.gmra.mxu0 %vm258_vm0, %v6735_v21 }
0x23f8   : > { %v3159_v24 = vpop.f32.mrf.mxu0 }
0x23f9   : > { %5290 = vmatmul.msk.f32.vlgmr.msra.gmra.mxu1 %vm332_vm1, %v3159_v24 }
0x23fa   : > { %3390 = vmatpush.msra.mxu1 %v5315_v52 }
0x23fc   : > { %3391 = vmatpush.msra.mxu1 %v5314_v55 }
0x23fe   : > { %3392 = vmatpush.msra.mxu1 %v5313_v10 }
0x2400   : > { %v3257_v26 = vpop.f32.mrf.mxu0  ;;  %3393 = vmatpush.msra.mxu1 %v5312_v25 }
0x2401   : > { %5307 = vmatpush.xpose.msk.msrb.mxu2 %vm332_vm1, %v3257_v26  ;;  %5306 = vmatmul.msk.f32.vlgmr.msrb.gmra.mxu1 %vm258_vm0, %v6735_v21 }
0x2404   : > { %5308 = vmatmul.msk.f32.vlgmr.msrb.gmra.mxu2 %vm332_vm1, %v3232_v28 }
0x2405   : > { %3415 = vmatpush.msra.mxu2 %v5320_v43  ;;  %v5362_v43 = vld [vmem:[%s7419_s3 + $0x128] sm:$0xff] }
0x2407   : > { %3416 = vmatpush.msra.mxu2 %v5319_v46 }
0x2409   : > { %3417 = vmatpush.msra.mxu2 %v5318_v48  ;;  %5316 = vmatmul.msk.f32.vlgmr.msra.gmra.mxu1 %vm258_vm0, %v6735_v21 }
0x240b   : > { %3418 = vmatpush.msra.mxu2 %v5317_v50 }
0x240c   : > { %5321 = vmatmul.msk.f32.vlgmr.msra.gmra.mxu2 %vm258_vm0, %v6735_v21 }
0x240d   : > { %3530 = vmatpush.msrb.mxu2 %v5330_v12 }
0x2476   : > { %v6873_v33 = vpop.f32.mrf.mxu1 }
0x2477   : > { %v3208_v13 = vadd.f32 %v6853_v29, %v6873_v33  ;;  %v5363_v33 = vld [vmem:[%s7419_s3 + $0x130] sm:$0xff] }
0x247e   : > { %v3282_v44 = vpop.f32.mrf.mxu1 }
0x247f   : > { %3342 = vmatpush.msra.mxu3 %v3282_v44  ;;  %v5361_v44 = vld [vmem:[%s7419_s3 + $0x120] sm:$0xff] }
0x2481   : > { %3440 = vmatpush.msrb.mxu3 %v5325_v47 }
0x2483   : > { %3441 = vmatpush.msrb.mxu3 %v5324_v49 }
0x2485   : > { %3442 = vmatpush.msrb.mxu3 %v5323_v51 }
0x2486   : > { %v3395_v2 = vpop.f32.mrf.mxu1 }
0x2487   : > { %v3308_v30 = vpop.f32.mrf.mxu2  ;;  %3443 = vmatpush.msrb.mxu3 %v5322_v53 }
0x2488   : > { %v3311_v34 = vmul.f32 0.17677669, %v3308_v30  ;;  %v5345_v30 = vld [vmem:[%s7419_s3 + $0x118] sm:$0xff] }
0x248a   : > { %v3312_v35 = vsel %vm5853_vm2, %v3311_v34, -1e+30  ;;  %v5344_v34 = vld [vmem:[%s7419_s3 + $0x110] sm:$0xff] }
0x248b   : > { %v3313_v37 = vsel %vm332_vm1, %v3312_v35, -inf }
0x248c   : > { %3314 = vmax.xlane.f32.xlu0 %v3313_v37  ;;  %v5342_v37 = vld [vmem:[%s7419_s3 + $0x100] sm:$0xff] }
0x248f   : > { %v3420_v60 = vpop.f32.mrf.mxu2 }
0x2490   : > { %5327 = vmatpush.xpose.msk.msrb.mxu0 %vm332_vm1, %v3420_v60  ;;  %v5374_v60 = vld [vmem:[%s7417_s1 + $0x150] sm:$0xff] }
0x24ff   : > { %v3315_v11 = vpop.xlane.xlu0 %3314 }
0x2500   : > { %v3316_v27 = vsub.f32 %v3312_v35, %v3315_v11  ;;  %v5343_v35 = vld [vmem:[%s7419_s3 + $0x108] sm:$0xff]  ;;  %v5358_v11 = vld [vmem:[%s7418_s2 + $0x130] sm:$0xff] }
0x2502   : > { %v3317_v63 = vmul.f32 1.442695, %v3316_v27  ;;  %v5357_v27 = vld [vmem:[%s7418_s2 + $0x128] sm:$0xff] }
0x2504   : > { %5616 = vpow2.f32 %v3317_v63  ;;  %v5356_v63 = vld [vmem:[%s7418_s2 + $0x120] sm:$0xff] }
0x250a   : > { %v5617_v36 = vpop.eup %5616 }
0x250b   : > { %v3319_v31 = vsel %vm332_vm1, %v5617_v36, 0.0 }
0x250c   : > { %3320 = vadd.xlane.f32.xlu1 %v3319_v31 }
0x257f   : > { %v3321_v45 = vpop.xlane.xlu1 %3320 }
0x2580   : > { %5618 = vrcp.f32 %v3321_v45 }
0x2586   : > { %v5619_v9 = vpop.eup %5618 }
0x2587   : > { %v3323_v56 = vmul.f32 %v5619_v9, %v5617_v36  ;;  %v5364_v36 = vld [vmem:[%s7419_s3 + $0x138] sm:$0xff] }
0x2589   : > { %5309 = vmatmul.msk.f32.vlgmr.msra.gmra.mxu3 %vm332_vm1, %v3323_v56 }
0x258a   : > { %3558 = vmatpush.msra.mxu3 %v5335_v57 }
0x258c   : > { %3559 = vmatpush.msra.mxu3 %v5334_v54 }
0x258e   : > { %3560 = vmatpush.msra.mxu3 %v5333_v58 }
0x2590   : > { %3561 = vmatpush.msra.mxu3 %v5332_v59  ;;  %v5375_v59 = vld [vmem:[%s7417_s1 + $0x158] sm:$0xff] }
0x2591   : > { %5326 = vmatmul.msk.f32.vlgmr.msrb.gmra.mxu3 %vm258_vm0, %v6735_v21  ;;  %v5338_v21 = vld [vmem:[%s7418_s2 + $0x108] sm:$0xff] }
0x2599   : > { %5336 = vmatmul.msk.f32.vlgmr.msra.gmra.mxu3 %vm258_vm0, %v6558_v42 }
0x260c   : > { %v3344_v62 = vpop.f32.mrf.mxu3 }
0x260d   : > { %5311 = vmatmul.msk.f32.vlgmr.msra.gmra.mxu0 %vm332_vm1, %v3344_v62  ;;  %v5372_v62 = vld [vmem:[%s7417_s1 + $0x140] sm:$0xff] }
0x260e   : > { %3583 = vmatpush.msra.mxu0 %v5340_v61  ;;  %v5373_v61 = vld [vmem:[%s7417_s1 + $0x148] sm:$0xff] }
0x2610   : > { %3584 = vmatpush.msra.mxu0 %v5339_v0 }
0x2612   : > { %3585 = vmatpush.msra.mxu0 %v5338_v21  ;;  %v5350_v21 = vld [vmem:[%s7420_s4 + $0x40] sm:$0xff] }
0x2614   : > { %v3445_v4 = vpop.f32.mrf.mxu3  ;;  %3586 = vmatpush.msra.mxu0 %v5337_v1 }
0x2615   : > { %5328 = vmatmul.msk.f32.vlgmr.msrb.gmra.mxu0 %vm332_vm1, %v3395_v2  ;;  %3505 = vmatpush.msrb.mxu1 %v3445_v4 }
0x2616   : > { %3697 = vmatpush.msrb.mxu0 %v5354_v3 }
0x2617   : > { %3608 = vmatpush.msra.mxu1 %v5345_v30  ;;  %v5382_v30 = vld [vmem:[%s7419_s3 + $0x140] sm:$0xff] }
0x2618   : > { %3698 = vmatpush.msrb.mxu0 %v5353_v5 }
0x2619   : > { %3609 = vmatpush.msra.mxu1 %v5344_v34  ;;  %v5395_v34 = vld [vmem:[%s7417_s1 + $0x178] sm:$0xff] }
0x261a   : > { %3699 = vmatpush.msrb.mxu0 %v5352_v6 }
0x261b   : > { %3610 = vmatpush.msra.mxu1 %v5343_v35 }
0x261c   : > { %3700 = vmatpush.msrb.mxu0 %v5351_v7  ;;  %v3563_v46 = vpop.f32.mrf.mxu3 }
0x261d   : > { %5341 = vmatmul.msk.f32.vlgmr.msra.gmra.mxu0 %vm258_vm0, %v6558_v42  ;;  %3611 = vmatpush.msra.mxu1 %v5342_v37  ;;  %v5394_v37 = vld [vmem:[%s7417_s1 + $0x170] sm:$0xff] }
0x2625   : > { %5355 = vmatmul.msk.f32.vlgmr.msrb.gmra.mxu0 %vm258_vm0, %v6558_v42 }
0x268a   : > { %v3369_v14 = vpop.f32.mrf.mxu0 }
0x268b   : > { %v3372_v15 = vadd.f32 %v3369_v14, %v3208_v13 }
0x2692   : > { %v3471_v16 = vpop.f32.mrf.mxu0 }
0x2693   : > { %v3474_v17 = vmul.f32 0.17677669, %v3471_v16  ;;  %v5379_v16 = vld [vmem:[%s7418_s2 + $0x150] sm:$0xff] }
0x2695   : > { %v3475_v19 = vsel %vm5853_vm2, %v3474_v17, -1e+30  ;;  %v5378_v17 = vld [vmem:[%s7418_s2 + $0x148] sm:$0xff] }
0x2696   : > { %v3476_v20 = vsel %vm332_vm1, %v3475_v19, -inf }
0x2697   : > { %3477 = vmax.xlane.f32.xlu2 %v3476_v20 }
0x269a   : > { %v3588_v22 = vpop.f32.mrf.mxu0 }
0x269b   : > { %5347 = vmatpush.xpose.msk.msra.mxu2 %vm332_vm1, %v3588_v22 }
0x26a2   : > { %v3702_v0 = vpop.f32.mrf.mxu0 }
0x270a   : > { %v3478_v23 = vpop.xlane.xlu2 %3477 }
0x270b   : > { %v3479_v24 = vsub.f32 %v3475_v19, %v3478_v23  ;;  %v5377_v19 = vld [vmem:[%s7418_s2 + $0x140] sm:$0xff] }
0x270d   : > { %v3480_v26 = vmul.f32 1.442695, %v3479_v24  ;;  %v5369_v24 = vld [vmem:[%s7420_s4 + $0x48] sm:$0xff] }
0x270f   : > { %5620 = vpow2.f32 %v3480_v26  ;;  %v5385_v26 = vld [vmem:[%s7419_s3 + $0x158] sm:$0xff] }
0x2715   : > { %v5621_v28 = vpop.eup %5620 }
0x2716   : > { %v3482_v29 = vsel %vm332_vm1, %v5621_v28, 0.0 }
0x2717   : > { %3483 = vadd.xlane.f32.xlu0 %v3482_v29  ;;  %v5383_v29 = vld [vmem:[%s7419_s3 + $0x148] sm:$0xff] }
0x278a   : > { %v3484_v38 = vpop.xlane.xlu0 %3483 }
0x278b   : > { %5622 = vrcp.f32 %v3484_v38  ;;  %v5393_v38 = vld [vmem:[%s7417_s1 + $0x168] sm:$0xff] }
0x2791   : > { %v5623_v39 = vpop.eup %5622 }
0x2792   : > { %v3486_v40 = vmul.f32 %v5623_v39, %v5621_v28  ;;  %v5384_v28 = vld [vmem:[%s7419_s3 + $0x150] sm:$0xff]  ;;  %v5392_v39 = vld [vmem:[%s7417_s1 + $0x160] sm:$0xff] }
0x2794   : > { %5329 = vmatmul.msk.f32.vlgmr.msrb.gmra.mxu1 %vm332_vm1, %v3486_v40  ;;  %v5400_v40 = vld [vmem:[%s7418_s2 + $0x178] sm:$0xff] }
0x2795   : > { %3722 = vmatpush.msrb.mxu1 %v5359_v41 }
0x2797   : > { %3723 = vmatpush.msrb.mxu1 %v5358_v11  ;;  %v5399_v11 = vld [vmem:[%s7418_s2 + $0x170] sm:$0xff] }
0x2799   : > { %3724 = vmatpush.msrb.mxu1 %v5357_v27 }
0x279b   : > { %3725 = vmatpush.msrb.mxu1 %v5356_v63  ;;  %v5398_v63 = vld [vmem:[%s7418_s2 + $0x168] sm:$0xff] }
0x279c   : > { %5346 = vmatmul.msk.f32.vlgmr.msra.gmra.mxu1 %vm258_vm0, %v6558_v42 }
0x279d   : > { %3837 = vmatpush.msra.mxu1 %v5369_v24 }
0x27a4   : > { %5360 = vmatmul.msk.f32.vlgmr.msrb.gmra.mxu1 %vm258_vm0, %v6558_v42 }
0x27a5   : > { %3932 = vmatpush.msrb.mxu1 %v5385_v26 }
0x27a7   : > { %3933 = vmatpush.msrb.mxu1 %v5384_v28 }
0x27a9   : > { %3934 = vmatpush.msrb.mxu1 %v5383_v29 }
0x27ab   : > { %3935 = vmatpush.msrb.mxu1 %v5382_v30 }
0x2811   : > { %v3507_v31 = vpop.f32.mrf.mxu1 }
0x2812   : > { %5331 = vmatmul.msk.f32.vlgmr.msrb.gmra.mxu2 %vm332_vm1, %v3507_v31  ;;  %v5390_v31 = vld [vmem:[%s7420_s4 + $0x50] sm:$0xff] }
0x2813   : > { %3747 = vmatpush.msrb.mxu2 %v5364_v36  ;;  %v5397_v36 = vld [vmem:[%s7418_s2 + $0x160] sm:$0xff] }
0x2815   : > { %3748 = vmatpush.msrb.mxu2 %v5363_v33 }
0x2817   : > { %3749 = vmatpush.msrb.mxu2 %v5362_v43 }
0x2819   : > { %v3613_v47 = vpop.f32.mrf.mxu1  ;;  %3750 = vmatpush.msrb.mxu2 %v5361_v44 }
0x281a   : > { %5348 = vmatmul.msk.f32.vlgmr.msra.gmra.mxu2 %vm332_vm1, %v3563_v46  ;;  %3673 = vmatpush.msrb.mxu3 %v3613_v47 }
0x281b   : > { %3860 = vmatpush.msra.mxu2 %v5350_v21  ;;  %v5540_v21 = vld [vmem:[%s7421_s5 + $0x5] ss:$0 sm:$0xff] }
0x2821   : > { %v3727_v48 = vpop.f32.mrf.mxu1 }
0x2822   : > { %5365 = vmatmul.msk.f32.vlgmr.msrb.gmra.mxu2 %vm258_vm0, %v6558_v42  ;;  %5366 = vmatpush.xpose.msk.msra.mxu3 %vm332_vm1, %v3727_v48 }
0x2895   : > { %v3532_v49 = vpop.f32.mrf.mxu2 }
0x2896   : > { %v7022_v50 = vadd.f32 %v3532_v49, %v3372_v15  ;;  %v5380_v15 = vld [vmem:[%s7418_s2 + $0x158] sm:$0xff] }
0x289d   : > { %v3639_v51 = vpop.f32.mrf.mxu2 }
0x289e   : > { %v3642_v52 = vmul.f32 0.17677669, %v3639_v51 }
0x28a0   : > { %v3643_v53 = vsel %vm5853_vm2, %v3642_v52, -1e+30 }
0x28a1   : > { %v3644_v55 = vsel %vm332_vm1, %v3643_v53, -inf }
0x28a2   : > { %3645 = vmax.xlane.f32.xlu1 %v3644_v55 }
0x28a5   : > { %v3752_v10 = vpop.f32.mrf.mxu2 }
0x28a6   : > { %3812 = vmatpush.msra.mxu0 %v3752_v10 }
0x28a8   : > { %3907 = vmatpush.msrb.mxu0 %v5380_v15  ;;  %v5410_v15 = vld [vmem:[%s7420_s4 + $0x58] sm:$0xff] }
0x28aa   : > { %3908 = vmatpush.msrb.mxu0 %v5379_v16 }
0x28ac   : > { %3909 = vmatpush.msrb.mxu0 %v5378_v17 }
0x28ae   : > { %3910 = vmatpush.msrb.mxu0 %v5377_v19 }
0x2915   : > { %v3646_v25 = vpop.xlane.xlu1 %3645 }
0x2916   : > { %v3647_v8 = vsub.f32 %v3643_v53, %v3646_v25 }
0x2918   : > { %v3648_v45 = vmul.f32 1.442695, %v3647_v8 }
0x291a   : > { %5624 = vpow2.f32 %v3648_v45  ;;  %v5405_v45 = vld [vmem:[%s7419_s3 + $0x178] sm:$0xff] }
0x2920   : > { %v5625_v9 = vpop.eup %5624 }
0x2921   : > { %v3650_v56 = vsel %vm332_vm1, %v5625_v9, 0.0 }
0x2922   : > { %3651 = vadd.xlane.f32.xlu2 %v3650_v56  ;;  %v5403_v56 = vld [vmem:[%s7419_s3 + $0x168] sm:$0xff] }
0x2995   : > { %v3652_v57 = vpop.xlane.xlu2 %3651 }
0x2996   : > { %5626 = vrcp.f32 %v3652_v57  ;;  %v5402_v57 = vld [vmem:[%s7419_s3 + $0x160] sm:$0xff] }
0x299c   : > { %v5627_v54 = vpop.eup %5626 }
0x299d   : > { %v3654_v58 = vmul.f32 %v5627_v54, %v5625_v9  ;;  %v5404_v9 = vld [vmem:[%s7419_s3 + $0x170] sm:$0xff] }
0x299f   : > { %5349 = vmatmul.msk.f32.vlgmr.msrb.gmra.mxu3 %vm332_vm1, %v3654_v58 }
0x29a0   : > { %3882 = vmatpush.msrb.mxu3 %v5375_v59 }
0x29a2   : > { %3883 = vmatpush.msrb.mxu3 %v5374_v60  ;;  %v5416_v60 = vld [vmem:[%s7417_s1 + $0x318] sm:$0xff] }
0x29a4   : > { %3884 = vmatpush.msrb.mxu3 %v5373_v61  ;;  %v5415_v61 = vld [vmem:[%s7417_s1 + $0x310] sm:$0xff] }
0x29a6   : > { %3885 = vmatpush.msrb.mxu3 %v5372_v62  ;;  %v5414_v62 = vld [vmem:[%s7417_s1 + $0x308] sm:$0xff] }
0x29a7   : > { %5367 = vmatmul.msk.f32.vlgmr.msra.gmra.mxu3 %vm332_vm1, %v3702_v0  ;;  %v5413_v0 = vld [vmem:[%s7417_s1 + $0x300] sm:$0xff] }
0x29af   : > { %5376 = vmatmul.msk.f32.vlgmr.msrb.gmra.mxu3 %vm258_vm0, %v6558_v42 }
0x2a22   : > { %v3675_v1 = vpop.f32.mrf.mxu3 }
0x2a23   : > { %5371 = vmatmul.msk.f32.vlgmr.msra.gmra.mxu2 %vm332_vm1, %v3675_v1  ;;  %v7156_v1 = vadd.f32 %v5540_v21, %v6745_v32  ;;  %v5419_v32 = vld [vmem:[%s7418_s2 + $0x308] sm:$0xff] }
0x2a2a   : > { %v3778_v2 = vpop.f32.mrf.mxu3 }
0x2a2b   : > { %v3781_v3 = vmul.f32 0.17677669, %v3778_v2  ;;  %v5421_v2 = vld [vmem:[%s7418_s2 + $0x318] sm:$0xff] }
0x2a2d   : > { %v3782_v4 = vsel %vm5853_vm2, %v3781_v3, -1e+30 }
0x2a2e   : > { %v3783_v5 = vsel %vm332_vm1, %v3782_v4, -inf }
0x2a2f   : > { %3784 = vmax.xlane.f32.xlu0 %v3783_v5  ;;  %v5435_v5 = vld [vmem:[%s7417_s1 + $0x338] sm:$0xff] }
0x2a32   : > { %v3887_v27 = vpop.f32.mrf.mxu3 }
0x2aa2   : > { %v3785_v6 = vpop.xlane.xlu0 %3784 }
0x2aa3   : > { %v3786_v7 = vsub.f32 %v3782_v4, %v3785_v6  ;;  %v5418_v4 = vld [vmem:[%s7418_s2 + $0x300] sm:$0xff] }
0x2aa5   : > { %v3787_v12 = vmul.f32 1.442695, %v3786_v7 }
0x2aa6   : > { %v3862_v33 = vpop.f32.mrf.mxu2 }
0x2aa7   : > { %5628 = vpow2.f32 %v3787_v12  ;;  %v5434_v12 = vld [vmem:[%s7417_s1 + $0x330] sm:$0xff] }
0x2aad   : > { %v5629_v13 = vpop.eup %5628 }
0x2aae   : > { %v3789_v14 = vsel %vm332_vm1, %v5629_v13, 0.0 }
0x2aaf   : > { %3790 = vadd.xlane.f32.xlu1 %v3789_v14  ;;  %v5432_v14 = vld [vmem:[%s7417_s1 + $0x320] sm:$0xff] }
0x2b22   : > { %v3791_v20 = vpop.xlane.xlu1 %3790 }
0x2b23   : > { %5630 = vrcp.f32 %v3791_v20 }
0x2b29   : > { %v5631_v22 = vpop.eup %5630 }
0x2b2a   : > { %v3793_v23 = vmul.f32 %v5631_v22, %v5629_v13  ;;  %v5433_v13 = vld [vmem:[%s7417_s1 + $0x328] sm:$0xff] }
0x2b2c   : > { %5368 = vmatmul.msk.f32.vlgmr.msra.gmra.mxu0 %vm332_vm1, %v3793_v23 }
0x2b2d   : > { %4022 = vmatpush.msra.mxu0 %v5390_v31  ;;  %v5437_v31 = vld [vmem:[%s7418_s2 + $0x320] sm:$0xff] }
0x2b34   : > { %5381 = vmatmul.msk.f32.vlgmr.msrb.gmra.mxu0 %vm258_vm0, %v6558_v42 }
0x2ba9   : > { %v3814_v35 = vpop.f32.mrf.mxu0 }
0x2baa   : > { %5370 = vmatmul.msk.f32.vlgmr.msra.gmra.mxu1 %vm332_vm1, %v3814_v35  ;;  %v5426_v35 = vld [vmem:[%s7419_s3 + $0x318] sm:$0xff] }
0x2bab   : > { %4045 = vmatpush.msra.mxu1 %v5395_v34 }
0x2bad   : > { %4046 = vmatpush.msra.mxu1 %v5394_v37  ;;  %v5425_v37 = vld [vmem:[%s7419_s3 + $0x310] sm:$0xff] }
0x2baf   : > { %4047 = vmatpush.msra.mxu1 %v5393_v38  ;;  %v5424_v38 = vld [vmem:[%s7419_s3 + $0x308] sm:$0xff] }
0x2bb1   : > { %v3912_v41 = vpop.f32.mrf.mxu0  ;;  %4048 = vmatpush.msra.mxu1 %v5392_v39  ;;  %v5423_v39 = vld [vmem:[%s7419_s3 + $0x300] sm:$0xff] }
0x2bb2   : > { %5386 = vmatmul.msk.f32.vlgmr.msrb.gmra.mxu1 %vm258_vm0, %v6558_v42  ;;  %5387 = vmatpush.xpose.msk.msrb.mxu2 %vm332_vm1, %v3912_v41 }
0x2bb5   : > { %5388 = vmatmul.msk.f32.vlgmr.msrb.gmra.mxu2 %vm332_vm1, %v3887_v27  ;;  %v5440_v27 = vld [vmem:[%s7418_s2 + $0x338] sm:$0xff] }
0x2bb6   : > { %4070 = vmatpush.msra.mxu2 %v5400_v40 }
0x2bb8   : > { %4071 = vmatpush.msra.mxu2 %v5399_v11 }
0x2bba   : > { %4072 = vmatpush.msra.mxu2 %v5398_v63  ;;  %5396 = vmatmul.msk.f32.vlgmr.msra.gmra.mxu1 %vm258_vm0, %v6558_v42  ;;  %v5439_v63 = vld [vmem:[%s7418_s2 + $0x330] sm:$0xff] }
0x2bbc   : > { %4073 = vmatpush.msra.mxu2 %v5397_v36  ;;  %v5438_v36 = vld [vmem:[%s7418_s2 + $0x328] sm:$0xff] }
0x2bbd   : > { %5401 = vmatmul.msk.f32.vlgmr.msra.gmra.mxu2 %vm258_vm0, %v6558_v42 }
0x2bbe   : > { %4185 = vmatpush.msrb.mxu2 %v5410_v15 }
0x2c27   : > { %v3839_v43 = vpop.f32.mrf.mxu1 }
0x2c28   : > { %v7118_v44 = vadd.f32 %v3862_v33, %v3839_v43  ;;  %v5445_v33 = vld [vmem:[%s7419_s3 + $0x338] sm:$0xff] }
0x2c2f   : > { %v3937_v46 = vpop.f32.mrf.mxu1 }
0x2c30   : > { %3997 = vmatpush.msra.mxu3 %v3937_v46  ;;  %v5443_v46 = vld [vmem:[%s7419_s3 + $0x328] sm:$0xff] }
0x2c32   : > { %4095 = vmatpush.msrb.mxu3 %v5405_v45 }
0x2c34   : > { %4096 = vmatpush.msrb.mxu3 %v5404_v9 }
0x2c36   : > { %4097 = vmatpush.msrb.mxu3 %v5403_v56 }
0x2c37   : > { %v4050_v6 = vpop.f32.mrf.mxu1 }
0x2c38   : > { %v3963_v47 = vpop.f32.mrf.mxu2  ;;  %4098 = vmatpush.msrb.mxu3 %v5402_v57 }
0x2c39   : > { %v3966_v48 = vmul.f32 0.17677669, %v3963_v47  ;;  %v5442_v47 = vld [vmem:[%s7419_s3 + $0x320] sm:$0xff] }
0x2c3b   : > { %v3967_v49 = vsel %vm5853_vm2, %v3966_v48, -1e+30 }
0x2c3c   : > { %v3968_v51 = vsel %vm332_vm1, %v3967_v49, -inf }
0x2c3d   : > { %3969 = vmax.xlane.f32.xlu2 %v3968_v51 }
0x2c40   : > { %v4075_v52 = vpop.f32.mrf.mxu2 }
0x2c41   : > { %5407 = vmatpush.xpose.msk.msrb.mxu0 %vm332_vm1, %v4075_v52  ;;  %v5541_v52 = vld [vmem:[%s7421_s5] ss:$0 sm:$0xff] }
0x2cb0   : > { %v3970_v53 = vpop.xlane.xlu2 %3969 }
0x2cb1   : > { %v3971_v55 = vsub.f32 %v3967_v49, %v3970_v53  ;;  %v5542_v53 = vld [vmem:[%s7421_s5 + $0x2] ss:$0 sm:$0xff] }
0x2cb3   : > { %v3972_v10 = vmul.f32 1.442695, %v3971_v55 }
0x2cb5   : > { %5632 = vpow2.f32 %v3972_v10 }
0x2cbb   : > { %v5633_v25 = vpop.eup %5632 }
0x2cbc   : > { %v3974_v8 = vsel %vm332_vm1, %v5633_v25, 0.0 }
0x2cbd   : > { %3975 = vadd.xlane.f32.xlu0 %v3974_v8 }
0x2d30   : > { %v3976_v54 = vpop.xlane.xlu0 %3975 }
0x2d31   : > { %5634 = vrcp.f32 %v3976_v54 }
0x2d37   : > { %v5635_v58 = vpop.eup %5634 }
0x2d38   : > { %v3978_v59 = vmul.f32 %v5635_v58, %v5633_v25  ;;  %v3540_v25 = vadd.f32 %v5541_v52, %v7022_v50 }
0x2d3a   : > { %5389 = vmatmul.msk.f32.vlgmr.msra.gmra.mxu3 %vm332_vm1, %v3978_v59 }
0x2d3b   : > { %4217 = vmatpush.msra.mxu3 %v5416_v60 }
0x2d3d   : > { %4218 = vmatpush.msra.mxu3 %v5415_v61 }
0x2d3f   : > { %4219 = vmatpush.msra.mxu3 %v5414_v62 }
0x2d41   : > { %4220 = vmatpush.msra.mxu3 %v5413_v0 }
0x2d42   : > { %5406 = vmatmul.msk.f32.vlgmr.msrb.gmra.mxu3 %vm258_vm0, %v6558_v42  ;;  %v5420_v42 = vld [vmem:[%s7418_s2 + $0x310] sm:$0xff] }
0x2d4a   : > { %5417 = vmatmul.msk.f32.vlgmr.msra.gmra.mxu3 %vm258_vm0, %v7156_v1 }
0x2dbd   : > { %v3999_v3 = vpop.f32.mrf.mxu3 }
0x2dbe   : > { %5391 = vmatmul.msk.f32.vlgmr.msra.gmra.mxu0 %vm332_vm1, %v3999_v3  ;;  %v5456_v3 = vld [vmem:[%s7417_s1 + $0x358] sm:$0xff] }
0x2dbf   : > { %4242 = vmatpush.msra.mxu0 %v5421_v2 }
0x2dc1   : > { %4243 = vmatpush.msra.mxu0 %v5420_v42  ;;  %v5455_v42 = vld [vmem:[%s7417_s1 + $0x350] sm:$0xff] }
0x2dc3   : > { %4244 = vmatpush.msra.mxu0 %v5419_v32  ;;  %v5454_v32 = vld [vmem:[%s7417_s1 + $0x348] sm:$0xff] }
0x2dc5   : > { %v4100_v7 = vpop.f32.mrf.mxu3  ;;  %4245 = vmatpush.msra.mxu0 %v5418_v4  ;;  %v5453_v4 = vld [vmem:[%s7417_s1 + $0x340] sm:$0xff] }
0x2dc6   : > { %5408 = vmatmul.msk.f32.vlgmr.msrb.gmra.mxu0 %vm332_vm1, %v4050_v6  ;;  %4160 = vmatpush.msrb.mxu1 %v4100_v7  ;;  %v5431_v6 = vld [vmem:[%s7420_s4 + $0xc0] sm:$0xff] }
0x2dc7   : > { %4356 = vmatpush.msrb.mxu0 %v5435_v5 }
0x2dc8   : > { %4267 = vmatpush.msra.mxu1 %v5426_v35  ;;  %v5450_v35 = vld [vmem:[%s7420_s4 + $0xc8] sm:$0xff] }
0x2dc9   : > { %4357 = vmatpush.msrb.mxu0 %v5434_v12 }
0x2dca   : > { %4268 = vmatpush.msra.mxu1 %v5425_v37  ;;  %v5466_v37 = vld [vmem:[%s7419_s3 + $0x358] sm:$0xff] }
0x2dcb   : > { %4358 = vmatpush.msrb.mxu0 %v5433_v13 }
0x2dcc   : > { %4269 = vmatpush.msra.mxu1 %v5424_v38  ;;  %v5465_v38 = vld [vmem:[%s7419_s3 + $0x350] sm:$0xff] }
0x2dcd   : > { %4359 = vmatpush.msrb.mxu0 %v5432_v14  ;;  %v4222_v48 = vpop.f32.mrf.mxu3 }
0x2dce   : > { %5422 = vmatmul.msk.f32.vlgmr.msra.gmra.mxu0 %vm258_vm0, %v7156_v1  ;;  %4270 = vmatpush.msra.mxu1 %v5423_v39  ;;  %v5464_v39 = vld [vmem:[%s7419_s3 + $0x348] sm:$0xff] }
0x2dd6   : > { %5436 = vmatmul.msk.f32.vlgmr.msrb.gmra.mxu0 %vm258_vm0, %v7156_v1 }
0x2e3b   : > { %v4024_v16 = vpop.f32.mrf.mxu0 }
0x2e3c   : > { %v4027_v17 = vadd.f32 %v4024_v16, %v7118_v44  ;;  %v5444_v44 = vld [vmem:[%s7419_s3 + $0x330] sm:$0xff] }
0x2e43   : > { %v4126_v19 = vpop.f32.mrf.mxu0 }
0x2e44   : > { %v4129_v20 = vmul.f32 0.17677669, %v4126_v19 }
0x2e46   : > { %v4130_v22 = vsel %vm5853_vm2, %v4129_v20, -1e+30 }
0x2e47   : > { %v4131_v23 = vsel %vm332_vm1, %v4130_v22, -inf }
0x2e48   : > { %4132 = vmax.xlane.f32.xlu1 %v4131_v23  ;;  %v5461_v23 = vld [vmem:[%s7418_s2 + $0x358] sm:$0xff] }
0x2e4b   : > { %v4247_v24 = vpop.f32.mrf.mxu0 }
0x2e4c   : > { %5428 = vmatpush.xpose.msk.msra.mxu2 %vm332_vm1, %v4247_v24  ;;  %v5460_v24 = vld [vmem:[%s7418_s2 + $0x350] sm:$0xff] }
0x2e53   : > { %v4361_v5 = vpop.f32.mrf.mxu0 }
0x2ebb   : > { %v4133_v26 = vpop.xlane.xlu1 %4132 }
0x2ebc   : > { %v4134_v28 = vsub.f32 %v4130_v22, %v4133_v26  ;;  %v5459_v26 = vld [vmem:[%s7418_s2 + $0x348] sm:$0xff] }
0x2ebe   : > { %v4135_v29 = vmul.f32 1.442695, %v4134_v28  ;;  %v5458_v28 = vld [vmem:[%s7418_s2 + $0x340] sm:$0xff] }
0x2ec0   : > { %5636 = vpow2.f32 %v4135_v29 }
0x2ec6   : > { %v5637_v30 = vpop.eup %5636 }
0x2ec7   : > { %v4137_v34 = vsel %vm332_vm1, %v5637_v30, 0.0 }
0x2ec8   : > { %4138 = vadd.xlane.f32.xlu2 %v4137_v34 }
0x2f3b   : > { %v4139_v40 = vpop.xlane.xlu2 %4138 }
0x2f3c   : > { %5638 = vrcp.f32 %v4139_v40  ;;  %v5463_v40 = vld [vmem:[%s7419_s3 + $0x340] sm:$0xff] }
0x2f42   : > { %v5639_v41 = vpop.eup %5638 }
0x2f43   : > { %v4141_v11 = vmul.f32 %v5639_v41, %v5637_v30  ;;  %v5476_v41 = vld [vmem:[%s7417_s1 + $0x378] sm:$0xff] }
0x2f45   : > { %5409 = vmatmul.msk.f32.vlgmr.msrb.gmra.mxu1 %vm332_vm1, %v4141_v11 }
0x2f46   : > { %4381 = vmatpush.msrb.mxu1 %v5440_v27  ;;  %v5475_v27 = vld [vmem:[%s7417_s1 + $0x370] sm:$0xff] }
0x2f48   : > { %4382 = vmatpush.msrb.mxu1 %v5439_v63  ;;  %v5474_v63 = vld [vmem:[%s7417_s1 + $0x368] sm:$0xff] }
0x2f4a   : > { %4383 = vmatpush.msrb.mxu1 %v5438_v36  ;;  %v5473_v36 = vld [vmem:[%s7417_s1 + $0x360] sm:$0xff] }
0x2f4c   : > { %4384 = vmatpush.msrb.mxu1 %v5437_v31  ;;  %v5481_v31 = vld [vmem:[%s7418_s2 + $0x378] sm:$0xff] }
0x2f4d   : > { %5427 = vmatmul.msk.f32.vlgmr.msra.gmra.mxu1 %vm258_vm0, %v7156_v1 }
0x2f4e   : > { %4496 = vmatpush.msra.mxu1 %v5450_v35 }
0x2f55   : > { %5441 = vmatmul.msk.f32.vlgmr.msrb.gmra.mxu1 %vm258_vm0, %v7156_v1 }
0x2f56   : > { %4591 = vmatpush.msrb.mxu1 %v5466_v37 }
0x2f58   : > { %4592 = vmatpush.msrb.mxu1 %v5465_v38 }
0x2f5a   : > { %4593 = vmatpush.msrb.mxu1 %v5464_v39 }
0x2f5c   : > { %4594 = vmatpush.msrb.mxu1 %v5463_v40 }
0x2fc2   : > { %v4162_v43 = vpop.f32.mrf.mxu1 }
0x2fc3   : > { %5411 = vmatmul.msk.f32.vlgmr.msrb.gmra.mxu2 %vm332_vm1, %v4162_v43  ;;  %v5480_v43 = vld [vmem:[%s7418_s2 + $0x370] sm:$0xff] }
0x2fc4   : > { %4406 = vmatpush.msrb.mxu2 %v5445_v33 }
0x2fc6   : > { %4407 = vmatpush.msrb.mxu2 %v5444_v44 }
0x2fc8   : > { %4408 = vmatpush.msrb.mxu2 %v5443_v46  ;;  %v5479_v46 = vld [vmem:[%s7418_s2 + $0x368] sm:$0xff] }
0x2fca   : > { %v4272_v49 = vpop.f32.mrf.mxu1  ;;  %4409 = vmatpush.msrb.mxu2 %v5442_v47  ;;  %v5478_v47 = vld [vmem:[%s7418_s2 + $0x360] sm:$0xff] }
0x2fcb   : > { %5429 = vmatmul.msk.f32.vlgmr.msra.gmra.mxu2 %vm332_vm1, %v4222_v48  ;;  %4332 = vmatpush.msrb.mxu3 %v4272_v49  ;;  %v5471_v48 = vld [vmem:[%s7420_s4 + $0xd0] sm:$0xff] }
0x2fcc   : > { %4519 = vmatpush.msra.mxu2 %v5431_v6 }
0x2fd2   : > { %v4386_v51 = vpop.f32.mrf.mxu1 }
0x2fd3   : > { %5446 = vmatmul.msk.f32.vlgmr.msrb.gmra.mxu2 %vm258_vm0, %v7156_v1  ;;  %5447 = vmatpush.xpose.msk.msra.mxu3 %vm332_vm1, %v4386_v51 }
0x3046   : > { %v4187_v55 = vpop.f32.mrf.mxu2 }
0x3047   : > { %v4190_v10 = vadd.f32 %v4187_v55, %v4027_v17 }
0x3049   : > { %v4196_v8 = vadd.f32 %v5542_v53, %v4190_v10 }
0x304b   : > { %v7252_v45 = vadd.f32 %v4196_v8, %v3540_v25 }
0x304e   : > { %v4298_v9 = vpop.f32.mrf.mxu2 }
0x304f   : > { %v4301_v56 = vmul.f32 0.17677669, %v4298_v9 }
0x3051   : > { %v4302_v57 = vsel %vm5853_vm2, %v4301_v56, -1e+30 }
0x3052   : > { %v4303_v54 = vsel %vm332_vm1, %v4302_v57, -inf }
0x3053   : > { %4304 = vmax.xlane.f32.xlu0 %v4303_v54 }
0x3056   : > { %v4411_v58 = vpop.f32.mrf.mxu2 }
0x3057   : > { %4471 = vmatpush.msra.mxu0 %v4411_v58 }
0x3059   : > { %4566 = vmatpush.msrb.mxu0 %v5461_v23 }
0x305b   : > { %4567 = vmatpush.msrb.mxu0 %v5460_v24  ;;  %v5543_v24 = vld [vmem:[%s7421_s5 + $0x6] ss:$0 sm:$0xff] }
0x305d   : > { %4568 = vmatpush.msrb.mxu0 %v5459_v26 }
0x305f   : > { %4569 = vmatpush.msrb.mxu0 %v5458_v28 }
0x30c6   : > { %v4305_v59 = vpop.xlane.xlu0 %4304 }
0x30c7   : > { %v4306_v60 = vsub.f32 %v4302_v57, %v4305_v59 }
0x30c9   : > { %v4307_v61 = vmul.f32 1.442695, %v4306_v60  ;;  %v5486_v60 = vld [vmem:[%s7419_s3 + $0x378] sm:$0xff] }
0x30cb   : > { %5640 = vpow2.f32 %v4307_v61  ;;  %v5485_v61 = vld [vmem:[%s7419_s3 + $0x370] sm:$0xff] }
0x30d1   : > { %v5641_v62 = vpop.eup %5640 }
0x30d2   : > { %v4309_v50 = vsel %vm332_vm1, %v5641_v62, 0.0 }
0x30d3   : > { %4310 = vadd.xlane.f32.xlu1 %v4309_v50  ;;  %v5483_v50 = vld [vmem:[%s7419_s3 + $0x360] sm:$0xff] }
0x3146   : > { %v4311_v0 = vpop.xlane.xlu1 %4310 }
0x3147   : > { %5642 = vrcp.f32 %v4311_v0 }
0x314d   : > { %v5643_v21 = vpop.eup %5642 }
0x314e   : > { %v4313_v2 = vmul.f32 %v5643_v21, %v5641_v62  ;;  %v5484_v62 = vld [vmem:[%s7419_s3 + $0x368] sm:$0xff] }
0x3150   : > { %5430 = vmatmul.msk.f32.vlgmr.msrb.gmra.mxu3 %vm332_vm1, %v4313_v2 }
0x3151   : > { %4541 = vmatpush.msrb.mxu3 %v5456_v3 }
0x3153   : > { %4542 = vmatpush.msrb.mxu3 %v5455_v42 }
0x3155   : > { %4543 = vmatpush.msrb.mxu3 %v5454_v32 }
0x3157   : > { %4544 = vmatpush.msrb.mxu3 %v5453_v4 }
0x3158   : > { %5448 = vmatmul.msk.f32.vlgmr.msra.gmra.mxu3 %vm332_vm1, %v4361_v5 }
0x3160   : > { %5457 = vmatmul.msk.f32.vlgmr.msrb.gmra.mxu3 %vm258_vm0, %v7156_v1 }
0x31d3   : > { %v4334_v7 = vpop.f32.mrf.mxu3 }
0x31d4   : > { %5452 = vmatmul.msk.f32.vlgmr.msra.gmra.mxu2 %vm332_vm1, %v4334_v7 }
0x31db   : > { %v4437_v12 = vpop.f32.mrf.mxu3 }
0x31dc   : > { %v4440_v13 = vmul.f32 0.17677669, %v4437_v12 }
0x31de   : > { %v4441_v14 = vsel %vm5853_vm2, %v4440_v13, -1e+30 }
0x31df   : > { %v4442_v15 = vsel %vm332_vm1, %v4441_v14, -inf }
0x31e0   : > { %4443 = vmax.xlane.f32.xlu2 %v4442_v15 }
0x31e3   : > { %v4546_v44 = vpop.f32.mrf.mxu3 }
0x3253   : > { %v4444_v16 = vpop.xlane.xlu2 %4443 }
0x3254   : > { %v4445_v17 = vsub.f32 %v4441_v14, %v4444_v16 }
0x3256   : > { %v4446_v19 = vmul.f32 1.442695, %v4445_v17 }
0x3257   : > { %v4521_v49 = vpop.f32.mrf.mxu2 }
0x3258   : > { %5644 = vpow2.f32 %v4446_v19  ;;  %v5491_v19 = vld [vmem:[%s7420_s4 + $0xd8] sm:$0xff] }
0x325e   : > { %v5645_v20 = vpop.eup %5644 }
0x325f   : > { %v4448_v22 = vsel %vm332_vm1, %v5645_v20, 0.0 }
0x3260   : > { %4449 = vadd.xlane.f32.xlu0 %v4448_v22 }
0x32d3   : > { %v4450_v29 = vpop.xlane.xlu0 %4449 }
0x32d4   : > { %5646 = vrcp.f32 %v4450_v29 }
0x32da   : > { %v5647_v30 = vpop.eup %5646 }
0x32db   : > { %v4452_v34 = vmul.f32 %v5647_v30, %v5645_v20 }
0x32dd   : > { %5449 = vmatmul.msk.f32.vlgmr.msra.gmra.mxu0 %vm332_vm1, %v4452_v34 }
0x32de   : > { %4681 = vmatpush.msra.mxu0 %v5471_v48 }
0x32e5   : > { %5462 = vmatmul.msk.f32.vlgmr.msrb.gmra.mxu0 %vm258_vm0, %v7156_v1 }
0x335a   : > { %v4473_v11 = vpop.f32.mrf.mxu0 }
0x335b   : > { %5451 = vmatmul.msk.f32.vlgmr.msra.gmra.mxu1 %vm332_vm1, %v4473_v11 }
0x335c   : > { %4704 = vmatpush.msra.mxu1 %v5476_v41 }
0x335e   : > { %4705 = vmatpush.msra.mxu1 %v5475_v27 }
0x3360   : > { %4706 = vmatpush.msra.mxu1 %v5474_v63 }
0x3362   : > { %v4571_v33 = vpop.f32.mrf.mxu0  ;;  %4707 = vmatpush.msra.mxu1 %v5473_v36 }
0x3363   : > { %5467 = vmatmul.msk.f32.vlgmr.msrb.gmra.mxu1 %vm258_vm0, %v7156_v1  ;;  %5468 = vmatpush.xpose.msk.msrb.mxu2 %vm332_vm1, %v4571_v33 }
0x3366   : > { %5469 = vmatmul.msk.f32.vlgmr.msrb.gmra.mxu2 %vm332_vm1, %v4546_v44 }
0x3367   : > { %4729 = vmatpush.msra.mxu2 %v5481_v31 }
0x3369   : > { %4730 = vmatpush.msra.mxu2 %v5480_v43 }
0x336b   : > { %4731 = vmatpush.msra.mxu2 %v5479_v46  ;;  %5477 = vmatmul.msk.f32.vlgmr.msra.gmra.mxu1 %vm258_vm0, %v7156_v1 }
0x336d   : > { %4732 = vmatpush.msra.mxu2 %v5478_v47 }
0x336e   : > { %5482 = vmatmul.msk.f32.vlgmr.msra.gmra.mxu2 %vm258_vm0, %v7156_v1 }
0x336f   : > { %4844 = vmatpush.msrb.mxu2 %v5491_v19 }
0x33d8   : > { %v4498_v51 = vpop.f32.mrf.mxu1 }
0x33d9   : > { %v4522_v52 = vadd.f32 %v4521_v49, %v4498_v51 }
0x33e0   : > { %v4596_v53 = vpop.f32.mrf.mxu1 }
0x33e1   : > { %4656 = vmatpush.msra.mxu3 %v4596_v53 }
0x33e3   : > { %4754 = vmatpush.msrb.mxu3 %v5486_v60 }
0x33e5   : > { %4755 = vmatpush.msrb.mxu3 %v5485_v61 }
0x33e7   : > { %4756 = vmatpush.msrb.mxu3 %v5484_v62 }
0x33e8   : > { %v4709_v42 = vpop.f32.mrf.mxu1 }
0x33e9   : > { %v4622_v55 = vpop.f32.mrf.mxu2  ;;  %4757 = vmatpush.msrb.mxu3 %v5483_v50 }
0x33ea   : > { %v4625_v10 = vmul.f32 0.17677669, %v4622_v55 }
0x33ec   : > { %v4626_v25 = vsel %vm5853_vm2, %v4625_v10, -1e+30 }
0x33ed   : > { %v4627_v8 = vsel %vm332_vm1, %v4626_v25, -inf }
0x33ee   : > { %4628 = vmax.xlane.f32.xlu1 %v4627_v8 }
0x33f1   : > { %v4734_v9 = vpop.f32.mrf.mxu2 }
0x33f2   : > { %5488 = vmatpush.xpose.msk.msrb.mxu0 %vm332_vm1, %v4734_v9 }
0x3461   : > { %v4629_v56 = vpop.xlane.xlu1 %4628 }
0x3462   : > { %v4630_v57 = vsub.f32 %v4626_v25, %v4629_v56 }
0x3464   : > { %v4631_v54 = vmul.f32 1.442695, %v4630_v57 }
0x3466   : > { %5648 = vpow2.f32 %v4631_v54 }
0x346c   : > { %v5649_v58 = vpop.eup %5648 }
0x346d   : > { %v4633_v59 = vsel %vm332_vm1, %v5649_v58, 0.0 }
0x346e   : > { %4634 = vadd.xlane.f32.xlu2 %v4633_v59 }
0x34e1   : > { %v4635_v0 = vpop.xlane.xlu2 %4634 }
0x34e2   : > { %5650 = vrcp.f32 %v4635_v0 }
0x34e8   : > { %v5651_v21 = vpop.eup %5650 }
0x34e9   : > { %v4637_v2 = vmul.f32 %v5651_v21, %v5649_v58 }
0x34eb   : > { %5470 = vmatmul.msk.f32.vlgmr.msra.gmra.mxu3 %vm332_vm1, %v4637_v2 }
0x34f3   : > { %5487 = vmatmul.msk.f32.vlgmr.msrb.gmra.mxu3 %vm258_vm0, %v7156_v1 }
0x356e   : > { %v4658_v3 = vpop.f32.mrf.mxu3 }
0x356f   : > { %5472 = vmatmul.msk.f32.vlgmr.msra.gmra.mxu0 %vm332_vm1, %v4658_v3 }
0x3576   : > { %v4759_v32 = vpop.f32.mrf.mxu3 }
0x3577   : > { %5489 = vmatmul.msk.f32.vlgmr.msrb.gmra.mxu0 %vm332_vm1, %v4709_v42  ;;  %4819 = vmatpush.msrb.mxu1 %v4759_v32 }
0x35ec   : > { %v4683_v4 = vpop.f32.mrf.mxu0 }
0x35ed   : > { %v4686_v5 = vadd.f32 %v4683_v4, %v4522_v52 }
0x35f4   : > { %v4785_v6 = vpop.f32.mrf.mxu0 }
0x35f5   : > { %v4788_v7 = vmul.f32 0.17677669, %v4785_v6 }
0x35f7   : > { %v4789_v12 = vsel %vm5853_vm2, %v4788_v7, -1e+30 }
0x35f8   : > { %v4790_v13 = vsel %vm332_vm1, %v4789_v12, -inf }
0x35f9   : > { %4791 = vmax.xlane.f32.xlu0 %v4790_v13 }
0x366c   : > { %v4792_v14 = vpop.xlane.xlu0 %4791 }
0x366d   : > { %v4793_v1 = vsub.f32 %v4789_v12, %v4792_v14 }
0x366f   : > { %v4794_v15 = vmul.f32 1.442695, %v4793_v1 }
0x3671   : > { %5652 = vpow2.f32 %v4794_v15 }
0x3677   : > { %v5653_v16 = vpop.eup %5652 }
0x3678   : > { %v4796_v17 = vsel %vm332_vm1, %v5653_v16, 0.0 }
0x3679   : > { %4797 = vadd.xlane.f32.xlu1 %v4796_v17 }
0x36ec   : > { %v4798_v18 = vpop.xlane.xlu1 %4797 }
0x36ed   : > { %5654 = vrcp.f32 %v4798_v18 }
0x36f3   : > { %v5655_v20 = vpop.eup %5654 }
0x36f4   : > { %v4800_v22 = vmul.f32 %v5655_v20, %v5653_v16 }
0x36f6   : > { %5490 = vmatmul.msk.f32.vlgmr.msrb.gmra.mxu1 %vm332_vm1, %v4800_v22 }
0x3773   : > { %v4821_v23 = vpop.f32.mrf.mxu1 }
0x3774   : > { %5492 = vmatmul.msk.f32.vlgmr.msrb.gmra.mxu2 %vm332_vm1, %v4821_v23 }
0x37f7   : > { %v4846_v26 = vpop.f32.mrf.mxu2 }
0x37f8   : > { %v4849_v28 = vadd.f32 %v4846_v26, %v4686_v5 }
0x37fa   : > { %v4855_v29 = vadd.f32 %v5543_v24, %v4849_v28 }
0x37fc   : > { %v4857_v30 = vadd.f32 %v7252_v45, %v4855_v29 }
0x37fe   : > { %v4858_v34 = vmul.f32 0.33333334, %v4857_v30 }
0x3800   : > { %4859 = vst.msk [vmem:[%s242_s11] sm:$0xff] %vm258_vm0, %v4858_v34 }
0x3801   : > { %5684 = shalt.err (!%p5681_p3)
}
0x3802   : > { %5498 = dma.vmem_to_hbm [thread:$0]  (%p5794_p5), %s4874_s12, 128, %s4876_s13, %s4861_s25  }
0x3803 PF: > { %p5504_p4 = scmp.ge.s32.totalorder %s5719_s24, 2  ;;  %s4887_s18 = sand.u32 1, %s5707_s21  }
0x3804   : > { %s4888_s28 = scalar_lea.sflag [#allocation3], %s4887_s18 }
0x3805   : > { %p5501_p7 = pnand %p5504_p4, %p5798_p6 }
0x3807   : > { %p5502_p8 = pneg %p5501_p7 }
0x3809   : > { %5702 = dma.done.wait (%p5502_p8), %s4888_s28, 128  }
0x380a   : > { %5704 = vsyncadd (%p5502_p8), %s4888_s28, 4294967168  ;;  %p16_p9 = scmp.ge.s32.totalorder %s5781_s27, 4   ;;  %s7427_s21 = smov %s5711_s22 }
0x380b   : > { %s7428_s22 = smov %s5715_s23  ;;  %s7429_s23 = smov %s5792_s30 }
0x380c   : > { %s7430_s24 = smov %s5781_s27  ;;  %18 = sbr.rel (!%p16_p9) target bundleno = 3 (0x3), region = 193 }
0x3811   :  { %4894 = vsyncpa [#allocation3], 1 }
0x3812   :  { %4896 = vsyncpa [#allocation3 + $0x1], 1 }

</bundles_post_ra>
